<compile_context>
chip_gen: v6e
topology: v6e:2x2x1
jax: 0.10.0
libtpu: 0.0.40
codegen_flags: <defaults>
</compile_context>

<pallas_src>
import functools

import jax
import jax.numpy as jnp
import numpy as np
from jax import lax
from jax.experimental import pallas as pl
from jax.experimental.pallas import tpu as pltpu


# ----------------------------------------------------------------------------
# Pallas kernel: BlockDecoder forward for a slab of Bt images in (C, Bt*P) layout.
# ----------------------------------------------------------------------------
def _block_decoder_kernel(x_ref, wq_ref, w4_ref, wconv_ref, dw4_ref, bias_ref,
                          o_ref, taps_ref, *, H, W, Bt, mm_dtype):
    P = H * W
    C = x_ref.shape[1]
    C2 = w4_ref.shape[1]
    N = Bt * P

    def mm(a, b):
        # MXU matmul with configurable operand dtype, f32 accumulation.
        return jnp.dot(a.astype(mm_dtype), b.astype(mm_dtype),
                       preferred_element_type=jnp.float32)

    def lane_shift(v, s):
        # Pinned pltpu.roll semantics (== jnp.roll): out[..., i] = in[..., i - s].
        # Any cyclic wrap (across the slab or across image boundaries) only ever lands
        # on first/last row/col lanes, which are always overwritten by the masks below.
        s = s % N
        if s == 0:
            return v
        return pltpu.roll(v, s, axis=1)

    def _mod(a, m):
        # Power-of-two divisors lower to a bitwise AND (always VPU-supported).
        return (a & (m - 1)) if (m & (m - 1)) == 0 else (a % m)

    # ---- Bt images -> one (C, Bt*P) lane-dense slab (lane concat at 128-multiples) ----
    if Bt == 1:
        x = x_ref[0]
    else:
        x = jnp.concatenate([x_ref[b] for b in range(Bt)], axis=-1)

    # ---- per-image replicate-padding edge masks, built in-kernel from iota ----
    lane = lax.broadcasted_iota(jnp.int32, (1, N), 1)
    pix = _mod(lane, P)                       # pixel index within its own image
    col = _mod(pix, W)
    first_row = pix < W
    last_row = pix >= (P - W)
    first_col = col == 0
    last_col = col == (W - 1)

    # ---- packed bias column (f32) ----
    bias = bias_ref[...]
    bq = bias[0:3 * C2]
    b4 = bias[3 * C2:3 * C2 + C]
    db1 = bias[3 * C2 + C:3 * C2 + 2 * C]
    db2 = bias[3 * C2 + 2 * C:3 * C2 + 3 * C]
    db3 = bias[3 * C2 + 3 * C:3 * C2 + 4 * C]
    db4 = bias[3 * C2 + 4 * C:3 * C2 + 5 * C]

    # ---------------- GSM ----------------
    # Fused theta/phi/g projection: one (3*C2, C) x (C, Bt*P) matmul for the whole slab.
    qkv = mm(wq_ref[...], x) + bq
    theta = qkv[0:C2]
    phi = qkv[C2:2 * C2]
    g = qkv[2 * C2:3 * C2]
    w4 = w4_ref[...]

    def softmax_whole(a):                     # softmax over the full (C2, P) map, f32
        m = jnp.max(a, axis=(0, 1), keepdims=True)
        e = jnp.exp(a - m)
        s = jnp.sum(e, axis=(0, 1), keepdims=True)
        return e * pl.reciprocal(s, approx=True)

    # Per-image softmax + tiny gram: short, statically unrolled loop over the slab.
    gsm_chunks = []
    for b in range(Bt):
        lo, hi = b * P, (b + 1) * P
        phi_s = softmax_whole(phi[:, lo:hi])
        g_s = softmax_whole(g[:, lo:hi])
        # (C2, C2) gram: contraction over the lane axis of both operands.
        # TODO(synk): at production P, check the Mosaic lowering for a materialized XLU
        # transpose of phi_s; if present, tile this contraction in 128-lane chunks.
        gram = lax.dot_general(theta[:, lo:hi].astype(mm_dtype), phi_s.astype(mm_dtype),
                               (((1,), (1,)), ((), ())),
                               preferred_element_type=jnp.float32)
        wg = mm(w4, gram)                     # fold the output 1x1 conv into the gram
        gsm_chunks.append(mm(wg, g_s))        # (C, P)
    gsm = gsm_chunks[0] if Bt == 1 else jnp.concatenate(gsm_chunks, axis=-1)
    gsm = gsm + b4 + x                        # (C, Bt*P), f32

    # ---------------- DCM ----------------
    def conv3x3(u, conv_idx, b_col):
        # Row-group accumulation: three K=3*C matmuls into a 2-slot tap scratch, so tap
        # staging for group kh+1 (XLU roll + VPU mask + store) overlaps the MXU matmul
        # of group kh.  Tap math stays f32; only the scratch/matmul operands are mm_dtype.
        rows = (jnp.where(first_row, u, lane_shift(u, W)),     # kh = 0 (row above)
                u,                                             # kh = 1 (same row)
                jnp.where(last_row, u, lane_shift(u, -W)))     # kh = 2 (row below)
        acc = b_col
        for kh in range(3):
            v = rows[kh]
            slot = kh % 2
            taps_ref[slot, 0 * C:1 * C, :] = jnp.where(first_col, v,
                                                       lane_shift(v, 1)).astype(mm_dtype)
            taps_ref[slot, 1 * C:2 * C, :] = v.astype(mm_dtype)
            taps_ref[slot, 2 * C:3 * C, :] = jnp.where(last_col, v,
                                                       lane_shift(v, -1)).astype(mm_dtype)
            acc = acc + jnp.dot(wconv_ref[3 * conv_idx + kh], taps_ref[slot],
                                preferred_element_type=jnp.float32)
        return acc

    c1 = jnp.maximum(conv3x3(gsm, 0, db1), 0.0)
    t1 = gsm + c1
    c2 = jnp.maximum(conv3x3(t1, 1, db2), 0.0)
    t2 = t1 + c2
    c3 = jnp.maximum(conv3x3(t2, 2, db3), 0.0)
    t3 = t2 + c3
    c4 = mm(dw4_ref[...], t3) + db4           # 1x1 conv, no relu

    out = x + c4                              # BlockDecoder residual: x + DCM(GSM(x))
    if Bt == 1:
        o_ref[0] = out
    else:
        for b in range(Bt):
            o_ref[b] = out[:, b * P:(b + 1) * P]


# ----------------------------------------------------------------------------
# Wrapper helpers
# ----------------------------------------------------------------------------
def _round_up(v, m):
    return -(-int(v) // m) * m


def _padded_block_bytes(shape, dtype):
    """Approximate VMEM footprint of one block after (sublane, 128) tile padding."""
    itemsize = np.dtype(dtype).itemsize
    sub = 8 * max(1, 4 // itemsize)           # 8 rows for f32 tiles, 16 for bf16
    if len(shape) == 1:
        lead, s, l = 1, 1, shape[0]
    else:
        *lead_dims, s, l = shape
        lead = 1
        for d in lead_dims:
            lead *= int(d)
    return lead * _round_up(s, sub) * _round_up(l, 128) * itemsize


def _choose_batch_tile(B, C, P):
    """Number of images folded into one (C, Bt*P) slab per grid step."""
    budget = 20 << 20                         # conservative per-step budget (v7x: 64 MiB/core)
    per_image = 24 * C * P * 4                # ~live f32 slabs + tap scratch per image
    cap = max(1, budget // max(per_image, 1))
    bt = max(d for d in range(1, B + 1) if B % d == 0 and d <= cap)
    # Prefer an even number of grid steps (v7x: 2 TensorCores share the "parallel" axis)
    # as long as each slab still holds at least 2 images.
    if (B // bt) % 2 == 1 and bt % 2 == 0 and bt >= 4:
        bt //= 2
    return bt


def block_decoder_pallas(x_nchw, params, *, matmul_dtype=jnp.bfloat16):
    """BlockDecoder forward.  `matmul_dtype` selects the MXU operand dtype (weights +
    tap scratch); softmax, reductions and residual math are always f32."""
    return _block_decoder_impl(x_nchw, params, matmul_dtype=matmul_dtype)


@functools.partial(jax.jit, static_argnames=("matmul_dtype",))
def _block_decoder_impl(x_nchw, params, *, matmul_dtype):
    mm_dtype = np.dtype(matmul_dtype)
    B, C, H, W = x_nchw.shape
    C2 = C // 2
    P = H * W
    Bt = _choose_batch_tile(B, C, P)
    N = Bt * P

    # channels-first "C x pixels": NCHW -> (B, C, P) is a pure reshape (no transpose).
    xm = x_nchw.reshape(B, C, P).astype(jnp.float32)

    def mat1x1(w):                            # (O, I, 1, 1) -> (O, I)
        return w[:, :, 0, 0]

    def colb(b):                              # (O,) -> (O, 1) f32
        return b.astype(jnp.float32)[:, None]

    def kh_groups(w):                         # (O, I, 3, 3) -> (3, O, 3*I), inner (kw, i)
        o, i = w.shape[0], w.shape[1]
        return jnp.transpose(w, (2, 0, 3, 1)).reshape(3, o, 3 * i)

    # Consolidated constants (5 arrays total).
    wq = jnp.concatenate([mat1x1(params["gw1"]), mat1x1(params["gw2"]),
                          mat1x1(params["gw3"])], axis=0).astype(mm_dtype)       # (3*C2, C)
    w4 = mat1x1(params["gw4"]).astype(mm_dtype)                                  # (C, C2)
    wconv = jnp.concatenate([kh_groups(params["dw1"]), kh_groups(params["dw2"]),
                             kh_groups(params["dw3"])], axis=0).astype(mm_dtype)  # (9, C, 3C)
    dw4 = mat1x1(params["dw4"]).astype(mm_dtype)                                 # (C, C)
    bias = jnp.concatenate([colb(params["gb1"]), colb(params["gb2"]),
                            colb(params["gb3"]), colb(params["gb4"]),
                            colb(params["db1"]), colb(params["db2"]),
                            colb(params["db3"]), colb(params["db4"])], axis=0)   # (3C2+5C, 1)

    ins = [xm, wq, w4, wconv, dw4, bias]

    in_specs = [pl.BlockSpec((Bt, C, P), lambda s: (s, 0, 0))]
    for a in ins[1:]:
        in_specs.append(pl.BlockSpec(tuple(a.shape), lambda s, _n=a.ndim: (0,) * _n))
    out_spec = pl.BlockSpec((Bt, C, P), lambda s: (s, 0, 0))
    scratch_shapes = [pltpu.VMEM((2, 3 * C, N), mm_dtype)]

    # Scoped-VMEM limit: double-buffered pipeline blocks + scratch + in-kernel live
    # intermediates, one 1.5x headroom factor, clamped to 75% of the queried per-core
    # VMEM capacity (~48 MiB on v7x, ~96 MiB on v5e/v6e).
    blocks = [((Bt, C, P), jnp.float32), ((Bt, C, P), jnp.float32)]
    blocks += [(tuple(a.shape), a.dtype) for a in ins[1:]]
    live = 16 * _padded_block_bytes((C, N), jnp.float32)     # x, gsm, t*, c*, row taps...
    need = (2 * sum(_padded_block_bytes(s, d) for s, d in blocks)
            + _padded_block_bytes((2, 3 * C, N), mm_dtype) + live)
    try:
        cap = int(pltpu.get_tpu_info().vmem_capacity_bytes)
    except Exception:
        cap = 64 << 20                                        # conservative (v7x per-core)
    vmem_limit = int(min(3 * cap // 4, max(16 << 20, 3 * need // 2)))

    kernel = functools.partial(_block_decoder_kernel, H=H, W=W, Bt=Bt, mm_dtype=mm_dtype)

    out = pl.pallas_call(
        kernel,
        out_shape=jax.ShapeDtypeStruct((B, C, P), jnp.float32),
        grid_spec=pltpu.PrefetchScalarGridSpec(
            num_scalar_prefetch=0,
            grid=(B // Bt,),
            in_specs=in_specs,
            out_specs=out_spec,
            scratch_shapes=scratch_shapes,
        ),
        compiler_params=pltpu.CompilerParams(
            dimension_semantics=("parallel",),
            vmem_limit_bytes=vmem_limit,
        ),
    )(*ins)

    return out.reshape(B, C, H, W)


# ----------------------------------------------------------------------------
# Pure-JAX reference (mirrors the PyTorch module, NCHW)
# ----------------------------------------------------------------------------
def _conv1x1(x, w, b):
    return jnp.einsum("oi,bihw->bohw", w[:, :, 0, 0], x,
                      precision=lax.Precision.HIGHEST) + b[None, :, None, None]


def _conv3x3_rep(x, w, b):
    xp = jnp.pad(x, ((0, 0), (0, 0), (1, 1), (1, 1)), mode="edge")
    out = lax.conv_general_dilated(xp, w, (1, 1), "VALID",
                                   dimension_numbers=("NCHW", "OIHW", "NCHW"),
                                   precision=lax.Precision.HIGHEST)
    return out + b[None, :, None, None]


def block_decoder_ref(x, p):
    B, C, H, W = x.shape
    C2 = C // 2
    # GSM
    theta = _conv1x1(x, p["gw1"], p["gb1"]).reshape(B, C2, H * W)
    phi = _conv1x1(x, p["gw2"], p["gb2"]).reshape(B, C2, H * W)
    g = _conv1x1(x, p["gw3"], p["gb3"]).reshape(B, C2, H * W)
    phi1 = jax.nn.softmax(phi.reshape(B, -1), axis=-1).reshape(B, C2, H * W)
    g1 = jax.nn.softmax(g.reshape(B, -1), axis=-1).reshape(B, C2, H * W)
    y = jnp.einsum("bip,bpj->bij", theta, jnp.transpose(phi1, (0, 2, 1)),
                   precision=lax.Precision.HIGHEST)
    y = jnp.einsum("bij,bjp->bip", y, g1, precision=lax.Precision.HIGHEST)
    F_s = y.reshape(B, C2, H, W)
    gsm_x = _conv1x1(F_s, p["gw4"], p["gb4"]) + x
    # DCM
    c1 = jax.nn.relu(_conv3x3_rep(gsm_x, p["dw1"], p["db1"])); t1 = c1 + gsm_x
    c2 = jax.nn.relu(_conv3x3_rep(t1, p["dw2"], p["db2"])); t2 = t1 + c2
    c3 = jax.nn.relu(_conv3x3_rep(t2, p["dw3"], p["db3"])); t3 = t2 + c3
    dcm_x = _conv1x1(t3, p["dw4"], p["db4"])
    return x + dcm_x


# ----------------------------------------------------------------------------
# Deterministic parameter init (PyTorch-shaped weights, synthetic values)
# ----------------------------------------------------------------------------
def init_params(key, C):
    C2 = C // 2
    shapes = {
        "gw1": (C2, C, 1, 1), "gb1": (C2,),
        "gw2": (C2, C, 1, 1), "gb2": (C2,),
        "gw3": (C2, C, 1, 1), "gb3": (C2,),
        "gw4": (C, C2, 1, 1), "gb4": (C,),
        "dw1": (C, C, 3, 3), "db1": (C,),
        "dw2": (C, C, 3, 3), "db2": (C,),
        "dw3": (C, C, 3, 3), "db3": (C,),
        "dw4": (C, C, 1, 1), "db4": (C,),
    }
    keys = jax.random.split(key, len(shapes))
    params = {}
    for (name, shp), k in zip(shapes.items(), keys):
        scale = 0.1 if name.startswith(("gw", "dw")) else 0.05
        params[name] = scale * jax.random.normal(k, shp, jnp.float32)
    return params


if __name__ == "__main__":
    B, C, H, W = 4, 4, 16, 16
    root = jax.random.PRNGKey(0)
    k_x, k_p = jax.random.split(root)
    x = jax.random.normal(k_x, (B, C, H, W), jnp.float32)
    params = init_params(k_p, C)

    ref = block_decoder_ref(x, params)

    # f32 MXU operands: tight check against the pure-JAX reference (also pins the
    # pltpu.roll direction and the replicate-padding tap construction).
    out_f32 = jax.block_until_ready(
        block_decoder_pallas(x, params, matmul_dtype=jnp.float32))
    assert out_f32.shape == (B, C, H, W)
    err_f32 = float(jnp.max(jnp.abs(out_f32 - ref)))
    assert err_f32 < 2e-2, f"f32 max abs error too large: {err_f32}"

    # bf16 MXU operands (default / production config): looser numerical check.
    out_bf16 = jax.block_until_ready(block_decoder_pallas(x, params))
    err_bf16 = float(jnp.max(jnp.abs(out_bf16 - ref)))
    assert err_bf16 < 1e-1, f"bf16 max abs error too large: {err_bf16}"

    print("KERNEL_OK")
</pallas_src>

<mosaic_0001>
module attributes {stable_mosaic.version = 11 : i64} {
  func.func @_block_decoder_kernel(%arg0: i32, %arg1: memref<2x4x256xf32, #tpu.memory_space<vmem>>, %arg2: memref<6x4xf32, #tpu.memory_space<vmem>>, %arg3: memref<4x2xf32, #tpu.memory_space<vmem>>, %arg4: memref<9x4x12xf32, #tpu.memory_space<vmem>>, %arg5: memref<4x4xf32, #tpu.memory_space<vmem>>, %arg6: memref<26x1xf32, #tpu.memory_space<vmem>>, %arg7: memref<2x4x256xf32, #tpu.memory_space<vmem>>, %arg8: memref<2x12x512xf32, #tpu.memory_space<vmem>>) attributes {dimension_semantics = [#tpu.dimension_semantics<parallel>], iteration_bounds = array<i64: 2>, scalar_prefetch = 0 : i64, scratch_operands = 1 : i64, tpu.core_type = #tpu.core_type<tc>, window_params = [{transform_indices = @transform_0, window_bounds = array<i64: 2, 4, 256>}, {pipeline_mode = #tpu.pipeline_mode<synchronous>, transform_indices = @transform_1, window_bounds = array<i64: 6, 4>}, {pipeline_mode = #tpu.pipeline_mode<synchronous>, transform_indices = @transform_2, window_bounds = array<i64: 4, 2>}, {pipeline_mode = #tpu.pipeline_mode<synchronous>, transform_indices = @transform_3, window_bounds = array<i64: 9, 4, 12>}, {pipeline_mode = #tpu.pipeline_mode<synchronous>, transform_indices = @transform_4, window_bounds = array<i64: 4, 4>}, {pipeline_mode = #tpu.pipeline_mode<synchronous>, transform_indices = @transform_5, window_bounds = array<i64: 26, 1>}, {transform_indices = @transform_6, window_bounds = array<i64: 2, 4, 256>}]} {
    %c0 = arith.constant 0 : index
    %c0_0 = arith.constant 0 : index
    %c0_1 = arith.constant 0 : index
    %0 = vector.load %arg1[%c0, %c0_0, %c0_1] : memref<2x4x256xf32, #tpu.memory_space<vmem>>, vector<1x4x256xf32>
    %1 = vector.shape_cast %0 : vector<1x4x256xf32> to vector<4x256xf32>
    %c1 = arith.constant 1 : index
    %c0_2 = arith.constant 0 : index
    %c0_3 = arith.constant 0 : index
    %2 = vector.load %arg1[%c1, %c0_2, %c0_3] : memref<2x4x256xf32, #tpu.memory_space<vmem>>, vector<1x4x256xf32>
    %3 = vector.shape_cast %2 : vector<1x4x256xf32> to vector<4x256xf32>
    %4 = tpu.concatenate %1, %3 in 1 : vector<4x256xf32>, vector<4x256xf32> -> vector<4x512xf32>
    %5 = tpu.iota {dimensions = array<i32: 1>} : vector<1x512xi32>
    %c255_i32 = arith.constant 255 : i32
    %6 = vector.broadcast %c255_i32 : i32 to vector<1x512xi32>
    %7 = arith.andi %5, %6 : vector<1x512xi32>
    %c15_i32 = arith.constant 15 : i32
    %8 = vector.broadcast %c15_i32 : i32 to vector<1x512xi32>
    %9 = arith.andi %7, %8 : vector<1x512xi32>
    %c16_i32 = arith.constant 16 : i32
    %10 = vector.broadcast %c16_i32 : i32 to vector<1x512xi32>
    %11 = arith.cmpi slt, %7, %10 : vector<1x512xi32>
    %c240_i32 = arith.constant 240 : i32
    %12 = vector.broadcast %c240_i32 : i32 to vector<1x512xi32>
    %13 = arith.cmpi sge, %7, %12 : vector<1x512xi32>
    %c0_i32 = arith.constant 0 : i32
    %14 = vector.broadcast %c0_i32 : i32 to vector<1x512xi32>
    %15 = arith.cmpi eq, %9, %14 : vector<1x512xi32>
    %c15_i32_4 = arith.constant 15 : i32
    %16 = vector.broadcast %c15_i32_4 : i32 to vector<1x512xi32>
    %17 = arith.cmpi eq, %9, %16 : vector<1x512xi32>
    %c0_5 = arith.constant 0 : index
    %c0_6 = arith.constant 0 : index
    %18 = vector.load %arg6[%c0_5, %c0_6] : memref<26x1xf32, #tpu.memory_space<vmem>>, vector<26x1xf32>
    %19 = vector.extract_strided_slice %18 {offsets = [0, 0], sizes = [6, 1], strides = [1, 1]} : vector<26x1xf32> to vector<6x1xf32>
    %20 = vector.extract_strided_slice %18 {offsets = [6, 0], sizes = [4, 1], strides = [1, 1]} : vector<26x1xf32> to vector<4x1xf32>
    %21 = vector.extract_strided_slice %18 {offsets = [10, 0], sizes = [4, 1], strides = [1, 1]} : vector<26x1xf32> to vector<4x1xf32>
    %22 = vector.extract_strided_slice %18 {offsets = [14, 0], sizes = [4, 1], strides = [1, 1]} : vector<26x1xf32> to vector<4x1xf32>
    %23 = vector.extract_strided_slice %18 {offsets = [18, 0], sizes = [4, 1], strides = [1, 1]} : vector<26x1xf32> to vector<4x1xf32>
    %24 = vector.extract_strided_slice %18 {offsets = [22, 0], sizes = [4, 1], strides = [1, 1]} : vector<26x1xf32> to vector<4x1xf32>
    %c0_7 = arith.constant 0 : index
    %c0_8 = arith.constant 0 : index
    %25 = vector.load %arg2[%c0_7, %c0_8] : memref<6x4xf32, #tpu.memory_space<vmem>>, vector<6x4xf32>
    %cst = arith.constant dense<0.000000e+00> : vector<6x512xf32>
    %26 = tpu.matmul %25, %4, %cst {dimension_numbers = #tpu.dot_dimension_numbers<[1], [0], [0], [1], [0, 0, 1, 1], [], []>} : vector<6x4xf32>, vector<4x512xf32>, vector<6x512xf32> -> vector<6x512xf32>
    %27 = vector.broadcast %19 : vector<6x1xf32> to vector<6x512xf32>
    %28 = arith.addf %26, %27 : vector<6x512xf32>
    %29 = vector.extract_strided_slice %28 {offsets = [0, 0], sizes = [2, 512], strides = [1, 1]} : vector<6x512xf32> to vector<2x512xf32>
    %30 = vector.extract_strided_slice %28 {offsets = [2, 0], sizes = [2, 512], strides = [1, 1]} : vector<6x512xf32> to vector<2x512xf32>
    %31 = vector.extract_strided_slice %28 {offsets = [4, 0], sizes = [2, 512], strides = [1, 1]} : vector<6x512xf32> to vector<2x512xf32>
    %c0_9 = arith.constant 0 : index
    %c0_10 = arith.constant 0 : index
    %32 = vector.load %arg3[%c0_9, %c0_10] : memref<4x2xf32, #tpu.memory_space<vmem>>, vector<4x2xf32>
    %33 = vector.extract_strided_slice %30 {offsets = [0, 0], sizes = [2, 256], strides = [1, 1]} : vector<2x512xf32> to vector<2x256xf32>
    %34 = vector.shape_cast %33 : vector<2x256xf32> to vector<1x2x256xf32>
    %cst_11 = arith.constant dense<0xFF800000> : vector<1xf32>
    %35 = vector.multi_reduction <maximumf>, %34, %cst_11 [1, 2] : vector<1x2x256xf32> to vector<1xf32>
    %36 = vector.shape_cast %35 : vector<1xf32> to vector<1x1x1xf32>
    %37 = vector.extract %36[0, 0, 0] : f32 from vector<1x1x1xf32>
    %38 = vector.broadcast %37 : f32 to vector<1x1xf32>
    %39 = vector.broadcast %38 : vector<1x1xf32> to vector<2x256xf32>
    %40 = arith.subf %33, %39 : vector<2x256xf32>
    %41 = math.exp %40 : vector<2x256xf32>
    %42 = vector.shape_cast %41 : vector<2x256xf32> to vector<1x2x256xf32>
    %cst_12 = arith.constant dense<0.000000e+00> : vector<1xf32>
    %43 = vector.multi_reduction <add>, %42, %cst_12 [1, 2] : vector<1x2x256xf32> to vector<1xf32>
    %44 = vector.shape_cast %43 : vector<1xf32> to vector<1x1x1xf32>
    %45 = vector.extract %44[0, 0, 0] : f32 from vector<1x1x1xf32>
    %46 = vector.broadcast %45 : f32 to vector<1x1xf32>
    %47 = tpu.reciprocal %46 {approx = true} : vector<1x1xf32> -> vector<1x1xf32>
    %48 = vector.broadcast %47 : vector<1x1xf32> to vector<2x256xf32>
    %49 = arith.mulf %41, %48 : vector<2x256xf32>
    %50 = vector.extract_strided_slice %31 {offsets = [0, 0], sizes = [2, 256], strides = [1, 1]} : vector<2x512xf32> to vector<2x256xf32>
    %51 = vector.shape_cast %50 : vector<2x256xf32> to vector<1x2x256xf32>
    %cst_13 = arith.constant dense<0xFF800000> : vector<1xf32>
    %52 = vector.multi_reduction <maximumf>, %51, %cst_13 [1, 2] : vector<1x2x256xf32> to vector<1xf32>
    %53 = vector.shape_cast %52 : vector<1xf32> to vector<1x1x1xf32>
    %54 = vector.extract %53[0, 0, 0] : f32 from vector<1x1x1xf32>
    %55 = vector.broadcast %54 : f32 to vector<1x1xf32>
    %56 = vector.broadcast %55 : vector<1x1xf32> to vector<2x256xf32>
    %57 = arith.subf %50, %56 : vector<2x256xf32>
    %58 = math.exp %57 : vector<2x256xf32>
    %59 = vector.shape_cast %58 : vector<2x256xf32> to vector<1x2x256xf32>
    %cst_14 = arith.constant dense<0.000000e+00> : vector<1xf32>
    %60 = vector.multi_reduction <add>, %59, %cst_14 [1, 2] : vector<1x2x256xf32> to vector<1xf32>
    %61 = vector.shape_cast %60 : vector<1xf32> to vector<1x1x1xf32>
    %62 = vector.extract %61[0, 0, 0] : f32 from vector<1x1x1xf32>
    %63 = vector.broadcast %62 : f32 to vector<1x1xf32>
    %64 = tpu.reciprocal %63 {approx = true} : vector<1x1xf32> -> vector<1x1xf32>
    %65 = vector.broadcast %64 : vector<1x1xf32> to vector<2x256xf32>
    %66 = arith.mulf %58, %65 : vector<2x256xf32>
    %67 = vector.extract_strided_slice %29 {offsets = [0, 0], sizes = [2, 256], strides = [1, 1]} : vector<2x512xf32> to vector<2x256xf32>
    %cst_15 = arith.constant dense<0.000000e+00> : vector<2x2xf32>
    %68 = tpu.matmul %67, %49, %cst_15 {dimension_numbers = #tpu.dot_dimension_numbers<[1], [1], [0], [0], [0, 0, 1, 0], [], []>} : vector<2x256xf32>, vector<2x256xf32>, vector<2x2xf32> -> vector<2x2xf32>
    %cst_16 = arith.constant dense<0.000000e+00> : vector<4x2xf32>
    %69 = tpu.matmul %32, %68, %cst_16 {dimension_numbers = #tpu.dot_dimension_numbers<[1], [0], [0], [1], [0, 0, 1, 1], [], []>} : vector<4x2xf32>, vector<2x2xf32>, vector<4x2xf32> -> vector<4x2xf32>
    %cst_17 = arith.constant dense<0.000000e+00> : vector<4x256xf32>
    %70 = tpu.matmul %69, %66, %cst_17 {dimension_numbers = #tpu.dot_dimension_numbers<[1], [0], [0], [1], [0, 0, 1, 1], [], []>} : vector<4x2xf32>, vector<2x256xf32>, vector<4x256xf32> -> vector<4x256xf32>
    %71 = vector.extract_strided_slice %30 {offsets = [0, 256], sizes = [2, 256], strides = [1, 1]} : vector<2x512xf32> to vector<2x256xf32>
    %72 = vector.shape_cast %71 : vector<2x256xf32> to vector<1x2x256xf32>
    %cst_18 = arith.constant dense<0xFF800000> : vector<1xf32>
    %73 = vector.multi_reduction <maximumf>, %72, %cst_18 [1, 2] : vector<1x2x256xf32> to vector<1xf32>
    %74 = vector.shape_cast %73 : vector<1xf32> to vector<1x1x1xf32>
    %75 = vector.extract %74[0, 0, 0] : f32 from vector<1x1x1xf32>
    %76 = vector.broadcast %75 : f32 to vector<1x1xf32>
    %77 = vector.broadcast %76 : vector<1x1xf32> to vector<2x256xf32>
    %78 = arith.subf %71, %77 : vector<2x256xf32>
    %79 = math.exp %78 : vector<2x256xf32>
    %80 = vector.shape_cast %79 : vector<2x256xf32> to vector<1x2x256xf32>
    %cst_19 = arith.constant dense<0.000000e+00> : vector<1xf32>
    %81 = vector.multi_reduction <add>, %80, %cst_19 [1, 2] : vector<1x2x256xf32> to vector<1xf32>
    %82 = vector.shape_cast %81 : vector<1xf32> to vector<1x1x1xf32>
    %83 = vector.extract %82[0, 0, 0] : f32 from vector<1x1x1xf32>
    %84 = vector.broadcast %83 : f32 to vector<1x1xf32>
    %85 = tpu.reciprocal %84 {approx = true} : vector<1x1xf32> -> vector<1x1xf32>
    %86 = vector.broadcast %85 : vector<1x1xf32> to vector<2x256xf32>
    %87 = arith.mulf %79, %86 : vector<2x256xf32>
    %88 = vector.extract_strided_slice %31 {offsets = [0, 256], sizes = [2, 256], strides = [1, 1]} : vector<2x512xf32> to vector<2x256xf32>
    %89 = vector.shape_cast %88 : vector<2x256xf32> to vector<1x2x256xf32>
    %cst_20 = arith.constant dense<0xFF800000> : vector<1xf32>
    %90 = vector.multi_reduction <maximumf>, %89, %cst_20 [1, 2] : vector<1x2x256xf32> to vector<1xf32>
    %91 = vector.shape_cast %90 : vector<1xf32> to vector<1x1x1xf32>
    %92 = vector.extract %91[0, 0, 0] : f32 from vector<1x1x1xf32>
    %93 = vector.broadcast %92 : f32 to vector<1x1xf32>
    %94 = vector.broadcast %93 : vector<1x1xf32> to vector<2x256xf32>
    %95 = arith.subf %88, %94 : vector<2x256xf32>
    %96 = math.exp %95 : vector<2x256xf32>
    %97 = vector.shape_cast %96 : vector<2x256xf32> to vector<1x2x256xf32>
    %cst_21 = arith.constant dense<0.000000e+00> : vector<1xf32>
    %98 = vector.multi_reduction <add>, %97, %cst_21 [1, 2] : vector<1x2x256xf32> to vector<1xf32>
    %99 = vector.shape_cast %98 : vector<1xf32> to vector<1x1x1xf32>
    %100 = vector.extract %99[0, 0, 0] : f32 from vector<1x1x1xf32>
    %101 = vector.broadcast %100 : f32 to vector<1x1xf32>
    %102 = tpu.reciprocal %101 {approx = true} : vector<1x1xf32> -> vector<1x1xf32>
    %103 = vector.broadcast %102 : vector<1x1xf32> to vector<2x256xf32>
    %104 = arith.mulf %96, %103 : vector<2x256xf32>
    %105 = vector.extract_strided_slice %29 {offsets = [0, 256], sizes = [2, 256], strides = [1, 1]} : vector<2x512xf32> to vector<2x256xf32>
    %cst_22 = arith.constant dense<0.000000e+00> : vector<2x2xf32>
    %106 = tpu.matmul %105, %87, %cst_22 {dimension_numbers = #tpu.dot_dimension_numbers<[1], [1], [0], [0], [0, 0, 1, 0], [], []>} : vector<2x256xf32>, vector<2x256xf32>, vector<2x2xf32> -> vector<2x2xf32>
    %cst_23 = arith.constant dense<0.000000e+00> : vector<4x2xf32>
    %107 = tpu.matmul %32, %106, %cst_23 {dimension_numbers = #tpu.dot_dimension_numbers<[1], [0], [0], [1], [0, 0, 1, 1], [], []>} : vector<4x2xf32>, vector<2x2xf32>, vector<4x2xf32> -> vector<4x2xf32>
    %cst_24 = arith.constant dense<0.000000e+00> : vector<4x256xf32>
    %108 = tpu.matmul %107, %104, %cst_24 {dimension_numbers = #tpu.dot_dimension_numbers<[1], [0], [0], [1], [0, 0, 1, 1], [], []>} : vector<4x2xf32>, vector<2x256xf32>, vector<4x256xf32> -> vector<4x256xf32>
    %109 = tpu.concatenate %70, %108 in 1 : vector<4x256xf32>, vector<4x256xf32> -> vector<4x512xf32>
    %110 = vector.broadcast %20 : vector<4x1xf32> to vector<4x512xf32>
    %111 = arith.addf %109, %110 : vector<4x512xf32>
    %112 = arith.addf %111, %4 : vector<4x512xf32>
    %c16_i32_25 = arith.constant 16 : i32
    %113 = tpu.dynamic_rotate %112 by %c16_i32_25 dim 1 : vector<4x512xf32>, i32 -> vector<4x512xf32>
    %114 = vector.shape_cast %11 : vector<1x512xi1> to vector<1x512xi1>
    %115 = vector.broadcast %114 : vector<1x512xi1> to vector<4x512xi1>
    %116 = arith.select %115, %112, %113 : vector<4x512xi1>, vector<4x512xf32>
    %c496_i32 = arith.constant 496 : i32
    %117 = tpu.dynamic_rotate %112 by %c496_i32 dim 1 : vector<4x512xf32>, i32 -> vector<4x512xf32>
    %118 = vector.shape_cast %13 : vector<1x512xi1> to vector<1x512xi1>
    %119 = vector.broadcast %118 : vector<1x512xi1> to vector<4x512xi1>
    %120 = arith.select %119, %112, %117 : vector<4x512xi1>, vector<4x512xf32>
    %c1_i32 = arith.constant 1 : i32
    %121 = tpu.dynamic_rotate %116 by %c1_i32 dim 1 : vector<4x512xf32>, i32 -> vector<4x512xf32>
    %122 = vector.shape_cast %15 : vector<1x512xi1> to vector<1x512xi1>
    %123 = vector.broadcast %122 : vector<1x512xi1> to vector<4x512xi1>
    %124 = arith.select %123, %116, %121 : vector<4x512xi1>, vector<4x512xf32>
    %c0_26 = arith.constant 0 : index
    %c0_27 = arith.constant 0 : index
    %c0_28 = arith.constant 0 : index
    %125 = vector.load %arg8[%c0_26, %c0_27, %c0_28] : memref<2x12x512xf32, #tpu.memory_space<vmem>>, vector<1x4x512xf32>
    %126 = vector.shape_cast %125 : vector<1x4x512xf32> to vector<4x512xf32>
    %127 = vector.shape_cast %124 : vector<4x512xf32> to vector<1x4x512xf32>
    tpu.vector_store %arg8[%c0_26, %c0_27, %c0_28], %127 {strides = array<i32>} : memref<2x12x512xf32, #tpu.memory_space<vmem>>, vector<1x4x512xf32>,
    %c0_29 = arith.constant 0 : index
    %c4 = arith.constant 4 : index
    %c0_30 = arith.constant 0 : index
    %128 = vector.load %arg8[%c0_29, %c4, %c0_30] : memref<2x12x512xf32, #tpu.memory_space<vmem>>, vector<1x4x512xf32>
    %129 = vector.shape_cast %128 : vector<1x4x512xf32> to vector<4x512xf32>
    %130 = vector.shape_cast %116 : vector<4x512xf32> to vector<1x4x512xf32>
    tpu.vector_store %arg8[%c0_29, %c4, %c0_30], %130 {strides = array<i32>} : memref<2x12x512xf32, #tpu.memory_space<vmem>>, vector<1x4x512xf32>,
    %c511_i32 = arith.constant 511 : i32
    %131 = tpu.dynamic_rotate %116 by %c511_i32 dim 1 : vector<4x512xf32>, i32 -> vector<4x512xf32>
    %132 = vector.shape_cast %17 : vector<1x512xi1> to vector<1x512xi1>
    %133 = vector.broadcast %132 : vector<1x512xi1> to vector<4x512xi1>
    %134 = arith.select %133, %116, %131 : vector<4x512xi1>, vector<4x512xf32>
    %c0_31 = arith.constant 0 : index
    %c8 = arith.constant 8 : index
    %c0_32 = arith.constant 0 : index
    %135 = vector.load %arg8[%c0_31, %c8, %c0_32] : memref<2x12x512xf32, #tpu.memory_space<vmem>>, vector<1x4x512xf32>
    %136 = vector.shape_cast %135 : vector<1x4x512xf32> to vector<4x512xf32>
    %137 = vector.shape_cast %134 : vector<4x512xf32> to vector<1x4x512xf32>
    tpu.vector_store %arg8[%c0_31, %c8, %c0_32], %137 {strides = array<i32>} : memref<2x12x512xf32, #tpu.memory_space<vmem>>, vector<1x4x512xf32>,
    %c0_33 = arith.constant 0 : index
    %c0_34 = arith.constant 0 : index
    %c0_35 = arith.constant 0 : index
    %138 = vector.load %arg4[%c0_33, %c0_34, %c0_35] : memref<9x4x12xf32, #tpu.memory_space<vmem>>, vector<1x4x12xf32>
    %139 = vector.shape_cast %138 : vector<1x4x12xf32> to vector<4x12xf32>
    %c0_36 = arith.constant 0 : index
    %c0_37 = arith.constant 0 : index
    %c0_38 = arith.constant 0 : index
    %140 = vector.load %arg8[%c0_36, %c0_37, %c0_38] : memref<2x12x512xf32, #tpu.memory_space<vmem>>, vector<1x12x512xf32>
    %141 = vector.shape_cast %140 : vector<1x12x512xf32> to vector<12x512xf32>
    %cst_39 = arith.constant dense<0.000000e+00> : vector<4x512xf32>
    %142 = tpu.matmul %139, %141, %cst_39 {dimension_numbers = #tpu.dot_dimension_numbers<[1], [0], [0], [1], [0, 0, 1, 1], [], []>} : vector<4x12xf32>, vector<12x512xf32>, vector<4x512xf32> -> vector<4x512xf32>
    %143 = vector.broadcast %21 : vector<4x1xf32> to vector<4x512xf32>
    %144 = arith.addf %143, %142 : vector<4x512xf32>
    %c1_i32_40 = arith.constant 1 : i32
    %145 = tpu.dynamic_rotate %112 by %c1_i32_40 dim 1 : vector<4x512xf32>, i32 -> vector<4x512xf32>
    %146 = vector.shape_cast %15 : vector<1x512xi1> to vector<1x512xi1>
    %147 = vector.broadcast %146 : vector<1x512xi1> to vector<4x512xi1>
    %148 = arith.select %147, %112, %145 : vector<4x512xi1>, vector<4x512xf32>
    %c1_41 = arith.constant 1 : index
    %c0_42 = arith.constant 0 : index
    %c0_43 = arith.constant 0 : index
    %149 = vector.load %arg8[%c1_41, %c0_42, %c0_43] : memref<2x12x512xf32, #tpu.memory_space<vmem>>, vector<1x4x512xf32>
    %150 = vector.shape_cast %149 : vector<1x4x512xf32> to vector<4x512xf32>
    %151 = vector.shape_cast %148 : vector<4x512xf32> to vector<1x4x512xf32>
    tpu.vector_store %arg8[%c1_41, %c0_42, %c0_43], %151 {strides = array<i32>} : memref<2x12x512xf32, #tpu.memory_space<vmem>>, vector<1x4x512xf32>,
    %c1_44 = arith.constant 1 : index
    %c4_45 = arith.constant 4 : index
    %c0_46 = arith.constant 0 : index
    %152 = vector.load %arg8[%c1_44, %c4_45, %c0_46] : memref<2x12x512xf32, #tpu.memory_space<vmem>>, vector<1x4x512xf32>
    %153 = vector.shape_cast %152 : vector<1x4x512xf32> to vector<4x512xf32>
    %154 = vector.shape_cast %112 : vector<4x512xf32> to vector<1x4x512xf32>
    tpu.vector_store %arg8[%c1_44, %c4_45, %c0_46], %154 {strides = array<i32>} : memref<2x12x512xf32, #tpu.memory_space<vmem>>, vector<1x4x512xf32>,
    %c511_i32_47 = arith.constant 511 : i32
    %155 = tpu.dynamic_rotate %112 by %c511_i32_47 dim 1 : vector<4x512xf32>, i32 -> vector<4x512xf32>
    %156 = vector.shape_cast %17 : vector<1x512xi1> to vector<1x512xi1>
    %157 = vector.broadcast %156 : vector<1x512xi1> to vector<4x512xi1>
    %158 = arith.select %157, %112, %155 : vector<4x512xi1>, vector<4x512xf32>
    %c1_48 = arith.constant 1 : index
    %c8_49 = arith.constant 8 : index
    %c0_50 = arith.constant 0 : index
    %159 = vector.load %arg8[%c1_48, %c8_49, %c0_50] : memref<2x12x512xf32, #tpu.memory_space<vmem>>, vector<1x4x512xf32>
    %160 = vector.shape_cast %159 : vector<1x4x512xf32> to vector<4x512xf32>
    %161 = vector.shape_cast %158 : vector<4x512xf32> to vector<1x4x512xf32>
    tpu.vector_store %arg8[%c1_48, %c8_49, %c0_50], %161 {strides = array<i32>} : memref<2x12x512xf32, #tpu.memory_space<vmem>>, vector<1x4x512xf32>,
    %c1_51 = arith.constant 1 : index
    %c0_52 = arith.constant 0 : index
    %c0_53 = arith.constant 0 : index
    %162 = vector.load %arg4[%c1_51, %c0_52, %c0_53] : memref<9x4x12xf32, #tpu.memory_space<vmem>>, vector<1x4x12xf32>
    %163 = vector.shape_cast %162 : vector<1x4x12xf32> to vector<4x12xf32>
    %c1_54 = arith.constant 1 : index
    %c0_55 = arith.constant 0 : index
    %c0_56 = arith.constant 0 : index
    %164 = vector.load %arg8[%c1_54, %c0_55, %c0_56] : memref<2x12x512xf32, #tpu.memory_space<vmem>>, vector<1x12x512xf32>
    %165 = vector.shape_cast %164 : vector<1x12x512xf32> to vector<12x512xf32>
    %cst_57 = arith.constant dense<0.000000e+00> : vector<4x512xf32>
    %166 = tpu.matmul %163, %165, %cst_57 {dimension_numbers = #tpu.dot_dimension_numbers<[1], [0], [0], [1], [0, 0, 1, 1], [], []>} : vector<4x12xf32>, vector<12x512xf32>, vector<4x512xf32> -> vector<4x512xf32>
    %167 = arith.addf %144, %166 : vector<4x512xf32>
    %c1_i32_58 = arith.constant 1 : i32
    %168 = tpu.dynamic_rotate %120 by %c1_i32_58 dim 1 : vector<4x512xf32>, i32 -> vector<4x512xf32>
    %169 = vector.shape_cast %15 : vector<1x512xi1> to vector<1x512xi1>
    %170 = vector.broadcast %169 : vector<1x512xi1> to vector<4x512xi1>
    %171 = arith.select %170, %120, %168 : vector<4x512xi1>, vector<4x512xf32>
    %c0_59 = arith.constant 0 : index
    %c0_60 = arith.constant 0 : index
    %c0_61 = arith.constant 0 : index
    %172 = vector.load %arg8[%c0_59, %c0_60, %c0_61] : memref<2x12x512xf32, #tpu.memory_space<vmem>>, vector<1x4x512xf32>
    %173 = vector.shape_cast %172 : vector<1x4x512xf32> to vector<4x512xf32>
    %174 = vector.shape_cast %171 : vector<4x512xf32> to vector<1x4x512xf32>
    tpu.vector_store %arg8[%c0_59, %c0_60, %c0_61], %174 {strides = array<i32>} : memref<2x12x512xf32, #tpu.memory_space<vmem>>, vector<1x4x512xf32>,
    %c0_62 = arith.constant 0 : index
    %c4_63 = arith.constant 4 : index
    %c0_64 = arith.constant 0 : index
    %175 = vector.load %arg8[%c0_62, %c4_63, %c0_64] : memref<2x12x512xf32, #tpu.memory_space<vmem>>, vector<1x4x512xf32>
    %176 = vector.shape_cast %175 : vector<1x4x512xf32> to vector<4x512xf32>
    %177 = vector.shape_cast %120 : vector<4x512xf32> to vector<1x4x512xf32>
    tpu.vector_store %arg8[%c0_62, %c4_63, %c0_64], %177 {strides = array<i32>} : memref<2x12x512xf32, #tpu.memory_space<vmem>>, vector<1x4x512xf32>,
    %c511_i32_65 = arith.constant 511 : i32
    %178 = tpu.dynamic_rotate %120 by %c511_i32_65 dim 1 : vector<4x512xf32>, i32 -> vector<4x512xf32>
    %179 = vector.shape_cast %17 : vector<1x512xi1> to vector<1x512xi1>
    %180 = vector.broadcast %179 : vector<1x512xi1> to vector<4x512xi1>
    %181 = arith.select %180, %120, %178 : vector<4x512xi1>, vector<4x512xf32>
    %c0_66 = arith.constant 0 : index
    %c8_67 = arith.constant 8 : index
    %c0_68 = arith.constant 0 : index
    %182 = vector.load %arg8[%c0_66, %c8_67, %c0_68] : memref<2x12x512xf32, #tpu.memory_space<vmem>>, vector<1x4x512xf32>
    %183 = vector.shape_cast %182 : vector<1x4x512xf32> to vector<4x512xf32>
    %184 = vector.shape_cast %181 : vector<4x512xf32> to vector<1x4x512xf32>
    tpu.vector_store %arg8[%c0_66, %c8_67, %c0_68], %184 {strides = array<i32>} : memref<2x12x512xf32, #tpu.memory_space<vmem>>, vector<1x4x512xf32>,
    %c2 = arith.constant 2 : index
    %c0_69 = arith.constant 0 : index
    %c0_70 = arith.constant 0 : index
    %185 = vector.load %arg4[%c2, %c0_69, %c0_70] : memref<9x4x12xf32, #tpu.memory_space<vmem>>, vector<1x4x12xf32>
    %186 = vector.shape_cast %185 : vector<1x4x12xf32> to vector<4x12xf32>
    %c0_71 = arith.constant 0 : index
    %c0_72 = arith.constant 0 : index
    %c0_73 = arith.constant 0 : index
    %187 = vector.load %arg8[%c0_71, %c0_72, %c0_73] : memref<2x12x512xf32, #tpu.memory_space<vmem>>, vector<1x12x512xf32>
    %188 = vector.shape_cast %187 : vector<1x12x512xf32> to vector<12x512xf32>
    %cst_74 = arith.constant dense<0.000000e+00> : vector<4x512xf32>
    %189 = tpu.matmul %186, %188, %cst_74 {dimension_numbers = #tpu.dot_dimension_numbers<[1], [0], [0], [1], [0, 0, 1, 1], [], []>} : vector<4x12xf32>, vector<12x512xf32>, vector<4x512xf32> -> vector<4x512xf32>
    %190 = arith.addf %167, %189 : vector<4x512xf32>
    %cst_75 = arith.constant 0.000000e+00 : f32
    %191 = vector.broadcast %cst_75 : f32 to vector<4x512xf32>
    %192 = arith.maximumf %190, %191 : vector<4x512xf32>
    %193 = arith.addf %112, %192 : vector<4x512xf32>
    %c16_i32_76 = arith.constant 16 : i32
    %194 = tpu.dynamic_rotate %193 by %c16_i32_76 dim 1 : vector<4x512xf32>, i32 -> vector<4x512xf32>
    %195 = vector.shape_cast %11 : vector<1x512xi1> to vector<1x512xi1>
    %196 = vector.broadcast %195 : vector<1x512xi1> to vector<4x512xi1>
    %197 = arith.select %196, %193, %194 : vector<4x512xi1>, vector<4x512xf32>
    %c496_i32_77 = arith.constant 496 : i32
    %198 = tpu.dynamic_rotate %193 by %c496_i32_77 dim 1 : vector<4x512xf32>, i32 -> vector<4x512xf32>
    %199 = vector.shape_cast %13 : vector<1x512xi1> to vector<1x512xi1>
    %200 = vector.broadcast %199 : vector<1x512xi1> to vector<4x512xi1>
    %201 = arith.select %200, %193, %198 : vector<4x512xi1>, vector<4x512xf32>
    %c1_i32_78 = arith.constant 1 : i32
    %202 = tpu.dynamic_rotate %197 by %c1_i32_78 dim 1 : vector<4x512xf32>, i32 -> vector<4x512xf32>
    %203 = vector.shape_cast %15 : vector<1x512xi1> to vector<1x512xi1>
    %204 = vector.broadcast %203 : vector<1x512xi1> to vector<4x512xi1>
    %205 = arith.select %204, %197, %202 : vector<4x512xi1>, vector<4x512xf32>
    %c0_79 = arith.constant 0 : index
    %c0_80 = arith.constant 0 : index
    %c0_81 = arith.constant 0 : index
    %206 = vector.load %arg8[%c0_79, %c0_80, %c0_81] : memref<2x12x512xf32, #tpu.memory_space<vmem>>, vector<1x4x512xf32>
    %207 = vector.shape_cast %206 : vector<1x4x512xf32> to vector<4x512xf32>
    %208 = vector.shape_cast %205 : vector<4x512xf32> to vector<1x4x512xf32>
    tpu.vector_store %arg8[%c0_79, %c0_80, %c0_81], %208 {strides = array<i32>} : memref<2x12x512xf32, #tpu.memory_space<vmem>>, vector<1x4x512xf32>,
    %c0_82 = arith.constant 0 : index
    %c4_83 = arith.constant 4 : index
    %c0_84 = arith.constant 0 : index
    %209 = vector.load %arg8[%c0_82, %c4_83, %c0_84] : memref<2x12x512xf32, #tpu.memory_space<vmem>>, vector<1x4x512xf32>
    %210 = vector.shape_cast %209 : vector<1x4x512xf32> to vector<4x512xf32>
    %211 = vector.shape_cast %197 : vector<4x512xf32> to vector<1x4x512xf32>
    tpu.vector_store %arg8[%c0_82, %c4_83, %c0_84], %211 {strides = array<i32>} : memref<2x12x512xf32, #tpu.memory_space<vmem>>, vector<1x4x512xf32>,
    %c511_i32_85 = arith.constant 511 : i32
    %212 = tpu.dynamic_rotate %197 by %c511_i32_85 dim 1 : vector<4x512xf32>, i32 -> vector<4x512xf32>
    %213 = vector.shape_cast %17 : vector<1x512xi1> to vector<1x512xi1>
    %214 = vector.broadcast %213 : vector<1x512xi1> to vector<4x512xi1>
    %215 = arith.select %214, %197, %212 : vector<4x512xi1>, vector<4x512xf32>
    %c0_86 = arith.constant 0 : index
    %c8_87 = arith.constant 8 : index
    %c0_88 = arith.constant 0 : index
    %216 = vector.load %arg8[%c0_86, %c8_87, %c0_88] : memref<2x12x512xf32, #tpu.memory_space<vmem>>, vector<1x4x512xf32>
    %217 = vector.shape_cast %216 : vector<1x4x512xf32> to vector<4x512xf32>
    %218 = vector.shape_cast %215 : vector<4x512xf32> to vector<1x4x512xf32>
    tpu.vector_store %arg8[%c0_86, %c8_87, %c0_88], %218 {strides = array<i32>} : memref<2x12x512xf32, #tpu.memory_space<vmem>>, vector<1x4x512xf32>,
    %c3 = arith.constant 3 : index
    %c0_89 = arith.constant 0 : index
    %c0_90 = arith.constant 0 : index
    %219 = vector.load %arg4[%c3, %c0_89, %c0_90] : memref<9x4x12xf32, #tpu.memory_space<vmem>>, vector<1x4x12xf32>
    %220 = vector.shape_cast %219 : vector<1x4x12xf32> to vector<4x12xf32>
    %c0_91 = arith.constant 0 : index
    %c0_92 = arith.constant 0 : index
    %c0_93 = arith.constant 0 : index
    %221 = vector.load %arg8[%c0_91, %c0_92, %c0_93] : memref<2x12x512xf32, #tpu.memory_space<vmem>>, vector<1x12x512xf32>
    %222 = vector.shape_cast %221 : vector<1x12x512xf32> to vector<12x512xf32>
    %cst_94 = arith.constant dense<0.000000e+00> : vector<4x512xf32>
    %223 = tpu.matmul %220, %222, %cst_94 {dimension_numbers = #tpu.dot_dimension_numbers<[1], [0], [0], [1], [0, 0, 1, 1], [], []>} : vector<4x12xf32>, vector<12x512xf32>, vector<4x512xf32> -> vector<4x512xf32>
    %224 = vector.broadcast %22 : vector<4x1xf32> to vector<4x512xf32>
    %225 = arith.addf %224, %223 : vector<4x512xf32>
    %c1_i32_95 = arith.constant 1 : i32
    %226 = tpu.dynamic_rotate %193 by %c1_i32_95 dim 1 : vector<4x512xf32>, i32 -> vector<4x512xf32>
    %227 = vector.shape_cast %15 : vector<1x512xi1> to vector<1x512xi1>
    %228 = vector.broadcast %227 : vector<1x512xi1> to vector<4x512xi1>
    %229 = arith.select %228, %193, %226 : vector<4x512xi1>, vector<4x512xf32>
    %c1_96 = arith.constant 1 : index
    %c0_97 = arith.constant 0 : index
    %c0_98 = arith.constant 0 : index
    %230 = vector.load %arg8[%c1_96, %c0_97, %c0_98] : memref<2x12x512xf32, #tpu.memory_space<vmem>>, vector<1x4x512xf32>
    %231 = vector.shape_cast %230 : vector<1x4x512xf32> to vector<4x512xf32>
    %232 = vector.shape_cast %229 : vector<4x512xf32> to vector<1x4x512xf32>
    tpu.vector_store %arg8[%c1_96, %c0_97, %c0_98], %232 {strides = array<i32>} : memref<2x12x512xf32, #tpu.memory_space<vmem>>, vector<1x4x512xf32>,
    %c1_99 = arith.constant 1 : index
    %c4_100 = arith.constant 4 : index
    %c0_101 = arith.constant 0 : index
    %233 = vector.load %arg8[%c1_99, %c4_100, %c0_101] : memref<2x12x512xf32, #tpu.memory_space<vmem>>, vector<1x4x512xf32>
    %234 = vector.shape_cast %233 : vector<1x4x512xf32> to vector<4x512xf32>
    %235 = vector.shape_cast %193 : vector<4x512xf32> to vector<1x4x512xf32>
    tpu.vector_store %arg8[%c1_99, %c4_100, %c0_101], %235 {strides = array<i32>} : memref<2x12x512xf32, #tpu.memory_space<vmem>>, vector<1x4x512xf32>,
    %c511_i32_102 = arith.constant 511 : i32
    %236 = tpu.dynamic_rotate %193 by %c511_i32_102 dim 1 : vector<4x512xf32>, i32 -> vector<4x512xf32>
    %237 = vector.shape_cast %17 : vector<1x512xi1> to vector<1x512xi1>
    %238 = vector.broadcast %237 : vector<1x512xi1> to vector<4x512xi1>
    %239 = arith.select %238, %193, %236 : vector<4x512xi1>, vector<4x512xf32>
    %c1_103 = arith.constant 1 : index
    %c8_104 = arith.constant 8 : index
    %c0_105 = arith.constant 0 : index
    %240 = vector.load %arg8[%c1_103, %c8_104, %c0_105] : memref<2x12x512xf32, #tpu.memory_space<vmem>>, vector<1x4x512xf32>
    %241 = vector.shape_cast %240 : vector<1x4x512xf32> to vector<4x512xf32>
    %242 = vector.shape_cast %239 : vector<4x512xf32> to vector<1x4x512xf32>
    tpu.vector_store %arg8[%c1_103, %c8_104, %c0_105], %242 {strides = array<i32>} : memref<2x12x512xf32, #tpu.memory_space<vmem>>, vector<1x4x512xf32>,
    %c4_106 = arith.constant 4 : index
    %c0_107 = arith.constant 0 : index
    %c0_108 = arith.constant 0 : index
    %243 = vector.load %arg4[%c4_106, %c0_107, %c0_108] : memref<9x4x12xf32, #tpu.memory_space<vmem>>, vector<1x4x12xf32>
    %244 = vector.shape_cast %243 : vector<1x4x12xf32> to vector<4x12xf32>
    %c1_109 = arith.constant 1 : index
    %c0_110 = arith.constant 0 : index
    %c0_111 = arith.constant 0 : index
    %245 = vector.load %arg8[%c1_109, %c0_110, %c0_111] : memref<2x12x512xf32, #tpu.memory_space<vmem>>, vector<1x12x512xf32>
    %246 = vector.shape_cast %245 : vector<1x12x512xf32> to vector<12x512xf32>
    %cst_112 = arith.constant dense<0.000000e+00> : vector<4x512xf32>
    %247 = tpu.matmul %244, %246, %cst_112 {dimension_numbers = #tpu.dot_dimension_numbers<[1], [0], [0], [1], [0, 0, 1, 1], [], []>} : vector<4x12xf32>, vector<12x512xf32>, vector<4x512xf32> -> vector<4x512xf32>
    %248 = arith.addf %225, %247 : vector<4x512xf32>
    %c1_i32_113 = arith.constant 1 : i32
    %249 = tpu.dynamic_rotate %201 by %c1_i32_113 dim 1 : vector<4x512xf32>, i32 -> vector<4x512xf32>
    %250 = vector.shape_cast %15 : vector<1x512xi1> to vector<1x512xi1>
    %251 = vector.broadcast %250 : vector<1x512xi1> to vector<4x512xi1>
    %252 = arith.select %251, %201, %249 : vector<4x512xi1>, vector<4x512xf32>
    %c0_114 = arith.constant 0 : index
    %c0_115 = arith.constant 0 : index
    %c0_116 = arith.constant 0 : index
    %253 = vector.load %arg8[%c0_114, %c0_115, %c0_116] : memref<2x12x512xf32, #tpu.memory_space<vmem>>, vector<1x4x512xf32>
    %254 = vector.shape_cast %253 : vector<1x4x512xf32> to vector<4x512xf32>
    %255 = vector.shape_cast %252 : vector<4x512xf32> to vector<1x4x512xf32>
    tpu.vector_store %arg8[%c0_114, %c0_115, %c0_116], %255 {strides = array<i32>} : memref<2x12x512xf32, #tpu.memory_space<vmem>>, vector<1x4x512xf32>,
    %c0_117 = arith.constant 0 : index
    %c4_118 = arith.constant 4 : index
    %c0_119 = arith.constant 0 : index
    %256 = vector.load %arg8[%c0_117, %c4_118, %c0_119] : memref<2x12x512xf32, #tpu.memory_space<vmem>>, vector<1x4x512xf32>
    %257 = vector.shape_cast %256 : vector<1x4x512xf32> to vector<4x512xf32>
    %258 = vector.shape_cast %201 : vector<4x512xf32> to vector<1x4x512xf32>
    tpu.vector_store %arg8[%c0_117, %c4_118, %c0_119], %258 {strides = array<i32>} : memref<2x12x512xf32, #tpu.memory_space<vmem>>, vector<1x4x512xf32>,
    %c511_i32_120 = arith.constant 511 : i32
    %259 = tpu.dynamic_rotate %201 by %c511_i32_120 dim 1 : vector<4x512xf32>, i32 -> vector<4x512xf32>
    %260 = vector.shape_cast %17 : vector<1x512xi1> to vector<1x512xi1>
    %261 = vector.broadcast %260 : vector<1x512xi1> to vector<4x512xi1>
    %262 = arith.select %261, %201, %259 : vector<4x512xi1>, vector<4x512xf32>
    %c0_121 = arith.constant 0 : index
    %c8_122 = arith.constant 8 : index
    %c0_123 = arith.constant 0 : index
    %263 = vector.load %arg8[%c0_121, %c8_122, %c0_123] : memref<2x12x512xf32, #tpu.memory_space<vmem>>, vector<1x4x512xf32>
    %264 = vector.shape_cast %263 : vector<1x4x512xf32> to vector<4x512xf32>
    %265 = vector.shape_cast %262 : vector<4x512xf32> to vector<1x4x512xf32>
    tpu.vector_store %arg8[%c0_121, %c8_122, %c0_123], %265 {strides = array<i32>} : memref<2x12x512xf32, #tpu.memory_space<vmem>>, vector<1x4x512xf32>,
    %c5 = arith.constant 5 : index
    %c0_124 = arith.constant 0 : index
    %c0_125 = arith.constant 0 : index
    %266 = vector.load %arg4[%c5, %c0_124, %c0_125] : memref<9x4x12xf32, #tpu.memory_space<vmem>>, vector<1x4x12xf32>
    %267 = vector.shape_cast %266 : vector<1x4x12xf32> to vector<4x12xf32>
    %c0_126 = arith.constant 0 : index
    %c0_127 = arith.constant 0 : index
    %c0_128 = arith.constant 0 : index
    %268 = vector.load %arg8[%c0_126, %c0_127, %c0_128] : memref<2x12x512xf32, #tpu.memory_space<vmem>>, vector<1x12x512xf32>
    %269 = vector.shape_cast %268 : vector<1x12x512xf32> to vector<12x512xf32>
    %cst_129 = arith.constant dense<0.000000e+00> : vector<4x512xf32>
    %270 = tpu.matmul %267, %269, %cst_129 {dimension_numbers = #tpu.dot_dimension_numbers<[1], [0], [0], [1], [0, 0, 1, 1], [], []>} : vector<4x12xf32>, vector<12x512xf32>, vector<4x512xf32> -> vector<4x512xf32>
    %271 = arith.addf %248, %270 : vector<4x512xf32>
    %cst_130 = arith.constant 0.000000e+00 : f32
    %272 = vector.broadcast %cst_130 : f32 to vector<4x512xf32>
    %273 = arith.maximumf %271, %272 : vector<4x512xf32>
    %274 = arith.addf %193, %273 : vector<4x512xf32>
    %c16_i32_131 = arith.constant 16 : i32
    %275 = tpu.dynamic_rotate %274 by %c16_i32_131 dim 1 : vector<4x512xf32>, i32 -> vector<4x512xf32>
    %276 = vector.shape_cast %11 : vector<1x512xi1> to vector<1x512xi1>
    %277 = vector.broadcast %276 : vector<1x512xi1> to vector<4x512xi1>
    %278 = arith.select %277, %274, %275 : vector<4x512xi1>, vector<4x512xf32>
    %c496_i32_132 = arith.constant 496 : i32
    %279 = tpu.dynamic_rotate %274 by %c496_i32_132 dim 1 : vector<4x512xf32>, i32 -> vector<4x512xf32>
    %280 = vector.shape_cast %13 : vector<1x512xi1> to vector<1x512xi1>
    %281 = vector.broadcast %280 : vector<1x512xi1> to vector<4x512xi1>
    %282 = arith.select %281, %274, %279 : vector<4x512xi1>, vector<4x512xf32>
    %c1_i32_133 = arith.constant 1 : i32
    %283 = tpu.dynamic_rotate %278 by %c1_i32_133 dim 1 : vector<4x512xf32>, i32 -> vector<4x512xf32>
    %284 = vector.shape_cast %15 : vector<1x512xi1> to vector<1x512xi1>
    %285 = vector.broadcast %284 : vector<1x512xi1> to vector<4x512xi1>
    %286 = arith.select %285, %278, %283 : vector<4x512xi1>, vector<4x512xf32>
    %c0_134 = arith.constant 0 : index
    %c0_135 = arith.constant 0 : index
    %c0_136 = arith.constant 0 : index
    %287 = vector.load %arg8[%c0_134, %c0_135, %c0_136] : memref<2x12x512xf32, #tpu.memory_space<vmem>>, vector<1x4x512xf32>
    %288 = vector.shape_cast %287 : vector<1x4x512xf32> to vector<4x512xf32>
    %289 = vector.shape_cast %286 : vector<4x512xf32> to vector<1x4x512xf32>
    tpu.vector_store %arg8[%c0_134, %c0_135, %c0_136], %289 {strides = array<i32>} : memref<2x12x512xf32, #tpu.memory_space<vmem>>, vector<1x4x512xf32>,
    %c0_137 = arith.constant 0 : index
    %c4_138 = arith.constant 4 : index
    %c0_139 = arith.constant 0 : index
    %290 = vector.load %arg8[%c0_137, %c4_138, %c0_139] : memref<2x12x512xf32, #tpu.memory_space<vmem>>, vector<1x4x512xf32>
    %291 = vector.shape_cast %290 : vector<1x4x512xf32> to vector<4x512xf32>
    %292 = vector.shape_cast %278 : vector<4x512xf32> to vector<1x4x512xf32>
    tpu.vector_store %arg8[%c0_137, %c4_138, %c0_139], %292 {strides = array<i32>} : memref<2x12x512xf32, #tpu.memory_space<vmem>>, vector<1x4x512xf32>,
    %c511_i32_140 = arith.constant 511 : i32
    %293 = tpu.dynamic_rotate %278 by %c511_i32_140 dim 1 : vector<4x512xf32>, i32 -> vector<4x512xf32>
    %294 = vector.shape_cast %17 : vector<1x512xi1> to vector<1x512xi1>
    %295 = vector.broadcast %294 : vector<1x512xi1> to vector<4x512xi1>
    %296 = arith.select %295, %278, %293 : vector<4x512xi1>, vector<4x512xf32>
    %c0_141 = arith.constant 0 : index
    %c8_142 = arith.constant 8 : index
    %c0_143 = arith.constant 0 : index
    %297 = vector.load %arg8[%c0_141, %c8_142, %c0_143] : memref<2x12x512xf32, #tpu.memory_space<vmem>>, vector<1x4x512xf32>
    %298 = vector.shape_cast %297 : vector<1x4x512xf32> to vector<4x512xf32>
    %299 = vector.shape_cast %296 : vector<4x512xf32> to vector<1x4x512xf32>
    tpu.vector_store %arg8[%c0_141, %c8_142, %c0_143], %299 {strides = array<i32>} : memref<2x12x512xf32, #tpu.memory_space<vmem>>, vector<1x4x512xf32>,
    %c6 = arith.constant 6 : index
    %c0_144 = arith.constant 0 : index
    %c0_145 = arith.constant 0 : index
    %300 = vector.load %arg4[%c6, %c0_144, %c0_145] : memref<9x4x12xf32, #tpu.memory_space<vmem>>, vector<1x4x12xf32>
    %301 = vector.shape_cast %300 : vector<1x4x12xf32> to vector<4x12xf32>
    %c0_146 = arith.constant 0 : index
    %c0_147 = arith.constant 0 : index
    %c0_148 = arith.constant 0 : index
    %302 = vector.load %arg8[%c0_146, %c0_147, %c0_148] : memref<2x12x512xf32, #tpu.memory_space<vmem>>, vector<1x12x512xf32>
    %303 = vector.shape_cast %302 : vector<1x12x512xf32> to vector<12x512xf32>
    %cst_149 = arith.constant dense<0.000000e+00> : vector<4x512xf32>
    %304 = tpu.matmul %301, %303, %cst_149 {dimension_numbers = #tpu.dot_dimension_numbers<[1], [0], [0], [1], [0, 0, 1, 1], [], []>} : vector<4x12xf32>, vector<12x512xf32>, vector<4x512xf32> -> vector<4x512xf32>
    %305 = vector.broadcast %23 : vector<4x1xf32> to vector<4x512xf32>
    %306 = arith.addf %305, %304 : vector<4x512xf32>
    %c1_i32_150 = arith.constant 1 : i32
    %307 = tpu.dynamic_rotate %274 by %c1_i32_150 dim 1 : vector<4x512xf32>, i32 -> vector<4x512xf32>
    %308 = vector.shape_cast %15 : vector<1x512xi1> to vector<1x512xi1>
    %309 = vector.broadcast %308 : vector<1x512xi1> to vector<4x512xi1>
    %310 = arith.select %309, %274, %307 : vector<4x512xi1>, vector<4x512xf32>
    %c1_151 = arith.constant 1 : index
    %c0_152 = arith.constant 0 : index
    %c0_153 = arith.constant 0 : index
    %311 = vector.load %arg8[%c1_151, %c0_152, %c0_153] : memref<2x12x512xf32, #tpu.memory_space<vmem>>, vector<1x4x512xf32>
    %312 = vector.shape_cast %311 : vector<1x4x512xf32> to vector<4x512xf32>
    %313 = vector.shape_cast %310 : vector<4x512xf32> to vector<1x4x512xf32>
    tpu.vector_store %arg8[%c1_151, %c0_152, %c0_153], %313 {strides = array<i32>} : memref<2x12x512xf32, #tpu.memory_space<vmem>>, vector<1x4x512xf32>,
    %c1_154 = arith.constant 1 : index
    %c4_155 = arith.constant 4 : index
    %c0_156 = arith.constant 0 : index
    %314 = vector.load %arg8[%c1_154, %c4_155, %c0_156] : memref<2x12x512xf32, #tpu.memory_space<vmem>>, vector<1x4x512xf32>
    %315 = vector.shape_cast %314 : vector<1x4x512xf32> to vector<4x512xf32>
    %316 = vector.shape_cast %274 : vector<4x512xf32> to vector<1x4x512xf32>
    tpu.vector_store %arg8[%c1_154, %c4_155, %c0_156], %316 {strides = array<i32>} : memref<2x12x512xf32, #tpu.memory_space<vmem>>, vector<1x4x512xf32>,
    %c511_i32_157 = arith.constant 511 : i32
    %317 = tpu.dynamic_rotate %274 by %c511_i32_157 dim 1 : vector<4x512xf32>, i32 -> vector<4x512xf32>
    %318 = vector.shape_cast %17 : vector<1x512xi1> to vector<1x512xi1>
    %319 = vector.broadcast %318 : vector<1x512xi1> to vector<4x512xi1>
    %320 = arith.select %319, %274, %317 : vector<4x512xi1>, vector<4x512xf32>
    %c1_158 = arith.constant 1 : index
    %c8_159 = arith.constant 8 : index
    %c0_160 = arith.constant 0 : index
    %321 = vector.load %arg8[%c1_158, %c8_159, %c0_160] : memref<2x12x512xf32, #tpu.memory_space<vmem>>, vector<1x4x512xf32>
    %322 = vector.shape_cast %321 : vector<1x4x512xf32> to vector<4x512xf32>
    %323 = vector.shape_cast %320 : vector<4x512xf32> to vector<1x4x512xf32>
    tpu.vector_store %arg8[%c1_158, %c8_159, %c0_160], %323 {strides = array<i32>} : memref<2x12x512xf32, #tpu.memory_space<vmem>>, vector<1x4x512xf32>,
    %c7 = arith.constant 7 : index
    %c0_161 = arith.constant 0 : index
    %c0_162 = arith.constant 0 : index
    %324 = vector.load %arg4[%c7, %c0_161, %c0_162] : memref<9x4x12xf32, #tpu.memory_space<vmem>>, vector<1x4x12xf32>
    %325 = vector.shape_cast %324 : vector<1x4x12xf32> to vector<4x12xf32>
    %c1_163 = arith.constant 1 : index
    %c0_164 = arith.constant 0 : index
    %c0_165 = arith.constant 0 : index
    %326 = vector.load %arg8[%c1_163, %c0_164, %c0_165] : memref<2x12x512xf32, #tpu.memory_space<vmem>>, vector<1x12x512xf32>
    %327 = vector.shape_cast %326 : vector<1x12x512xf32> to vector<12x512xf32>
    %cst_166 = arith.constant dense<0.000000e+00> : vector<4x512xf32>
    %328 = tpu.matmul %325, %327, %cst_166 {dimension_numbers = #tpu.dot_dimension_numbers<[1], [0], [0], [1], [0, 0, 1, 1], [], []>} : vector<4x12xf32>, vector<12x512xf32>, vector<4x512xf32> -> vector<4x512xf32>
    %329 = arith.addf %306, %328 : vector<4x512xf32>
    %c1_i32_167 = arith.constant 1 : i32
    %330 = tpu.dynamic_rotate %282 by %c1_i32_167 dim 1 : vector<4x512xf32>, i32 -> vector<4x512xf32>
    %331 = vector.shape_cast %15 : vector<1x512xi1> to vector<1x512xi1>
    %332 = vector.broadcast %331 : vector<1x512xi1> to vector<4x512xi1>
    %333 = arith.select %332, %282, %330 : vector<4x512xi1>, vector<4x512xf32>
    %c0_168 = arith.constant 0 : index
    %c0_169 = arith.constant 0 : index
    %c0_170 = arith.constant 0 : index
    %334 = vector.load %arg8[%c0_168, %c0_169, %c0_170] : memref<2x12x512xf32, #tpu.memory_space<vmem>>, vector<1x4x512xf32>
    %335 = vector.shape_cast %334 : vector<1x4x512xf32> to vector<4x512xf32>
    %336 = vector.shape_cast %333 : vector<4x512xf32> to vector<1x4x512xf32>
    tpu.vector_store %arg8[%c0_168, %c0_169, %c0_170], %336 {strides = array<i32>} : memref<2x12x512xf32, #tpu.memory_space<vmem>>, vector<1x4x512xf32>,
    %c0_171 = arith.constant 0 : index
    %c4_172 = arith.constant 4 : index
    %c0_173 = arith.constant 0 : index
    %337 = vector.load %arg8[%c0_171, %c4_172, %c0_173] : memref<2x12x512xf32, #tpu.memory_space<vmem>>, vector<1x4x512xf32>
    %338 = vector.shape_cast %337 : vector<1x4x512xf32> to vector<4x512xf32>
    %339 = vector.shape_cast %282 : vector<4x512xf32> to vector<1x4x512xf32>
    tpu.vector_store %arg8[%c0_171, %c4_172, %c0_173], %339 {strides = array<i32>} : memref<2x12x512xf32, #tpu.memory_space<vmem>>, vector<1x4x512xf32>,
    %c511_i32_174 = arith.constant 511 : i32
    %340 = tpu.dynamic_rotate %282 by %c511_i32_174 dim 1 : vector<4x512xf32>, i32 -> vector<4x512xf32>
    %341 = vector.shape_cast %17 : vector<1x512xi1> to vector<1x512xi1>
    %342 = vector.broadcast %341 : vector<1x512xi1> to vector<4x512xi1>
    %343 = arith.select %342, %282, %340 : vector<4x512xi1>, vector<4x512xf32>
    %c0_175 = arith.constant 0 : index
    %c8_176 = arith.constant 8 : index
    %c0_177 = arith.constant 0 : index
    %344 = vector.load %arg8[%c0_175, %c8_176, %c0_177] : memref<2x12x512xf32, #tpu.memory_space<vmem>>, vector<1x4x512xf32>
    %345 = vector.shape_cast %344 : vector<1x4x512xf32> to vector<4x512xf32>
    %346 = vector.shape_cast %343 : vector<4x512xf32> to vector<1x4x512xf32>
    tpu.vector_store %arg8[%c0_175, %c8_176, %c0_177], %346 {strides = array<i32>} : memref<2x12x512xf32, #tpu.memory_space<vmem>>, vector<1x4x512xf32>,
    %c8_178 = arith.constant 8 : index
    %c0_179 = arith.constant 0 : index
    %c0_180 = arith.constant 0 : index
    %347 = vector.load %arg4[%c8_178, %c0_179, %c0_180] : memref<9x4x12xf32, #tpu.memory_space<vmem>>, vector<1x4x12xf32>
    %348 = vector.shape_cast %347 : vector<1x4x12xf32> to vector<4x12xf32>
    %c0_181 = arith.constant 0 : index
    %c0_182 = arith.constant 0 : index
    %c0_183 = arith.constant 0 : index
    %349 = vector.load %arg8[%c0_181, %c0_182, %c0_183] : memref<2x12x512xf32, #tpu.memory_space<vmem>>, vector<1x12x512xf32>
    %350 = vector.shape_cast %349 : vector<1x12x512xf32> to vector<12x512xf32>
    %cst_184 = arith.constant dense<0.000000e+00> : vector<4x512xf32>
    %351 = tpu.matmul %348, %350, %cst_184 {dimension_numbers = #tpu.dot_dimension_numbers<[1], [0], [0], [1], [0, 0, 1, 1], [], []>} : vector<4x12xf32>, vector<12x512xf32>, vector<4x512xf32> -> vector<4x512xf32>
    %352 = arith.addf %329, %351 : vector<4x512xf32>
    %cst_185 = arith.constant 0.000000e+00 : f32
    %353 = vector.broadcast %cst_185 : f32 to vector<4x512xf32>
    %354 = arith.maximumf %352, %353 : vector<4x512xf32>
    %355 = arith.addf %274, %354 : vector<4x512xf32>
    %c0_186 = arith.constant 0 : index
    %c0_187 = arith.constant 0 : index
    %356 = vector.load %arg5[%c0_186, %c0_187] : memref<4x4xf32, #tpu.memory_space<vmem>>, vector<4x4xf32>
    %cst_188 = arith.constant dense<0.000000e+00> : vector<4x512xf32>
    %357 = tpu.matmul %356, %355, %cst_188 {dimension_numbers = #tpu.dot_dimension_numbers<[1], [0], [0], [1], [0, 0, 1, 1], [], []>} : vector<4x4xf32>, vector<4x512xf32>, vector<4x512xf32> -> vector<4x512xf32>
    %358 = vector.broadcast %24 : vector<4x1xf32> to vector<4x512xf32>
    %359 = arith.addf %357, %358 : vector<4x512xf32>
    %360 = arith.addf %4, %359 : vector<4x512xf32>
    %361 = vector.extract_strided_slice %360 {offsets = [0, 0], sizes = [4, 256], strides = [1, 1]} : vector<4x512xf32> to vector<4x256xf32>
    %c0_189 = arith.constant 0 : index
    %c0_190 = arith.constant 0 : index
    %c0_191 = arith.constant 0 : index
    %362 = vector.load %arg7[%c0_189, %c0_190, %c0_191] : memref<2x4x256xf32, #tpu.memory_space<vmem>>, vector<1x4x256xf32>
    %363 = vector.shape_cast %362 : vector<1x4x256xf32> to vector<4x256xf32>
    %364 = vector.shape_cast %361 : vector<4x256xf32> to vector<1x4x256xf32>
    tpu.vector_store %arg7[%c0_189, %c0_190, %c0_191], %364 {strides = array<i32>} : memref<2x4x256xf32, #tpu.memory_space<vmem>>, vector<1x4x256xf32>,
    %365 = vector.extract_strided_slice %360 {offsets = [0, 256], sizes = [4, 256], strides = [1, 1]} : vector<4x512xf32> to vector<4x256xf32>
    %c1_192 = arith.constant 1 : index
    %c0_193 = arith.constant 0 : index
    %c0_194 = arith.constant 0 : index
    %366 = vector.load %arg7[%c1_192, %c0_193, %c0_194] : memref<2x4x256xf32, #tpu.memory_space<vmem>>, vector<1x4x256xf32>
    %367 = vector.shape_cast %366 : vector<1x4x256xf32> to vector<4x256xf32>
    %368 = vector.shape_cast %365 : vector<4x256xf32> to vector<1x4x256xf32>
    tpu.vector_store %arg7[%c1_192, %c0_193, %c0_194], %368 {strides = array<i32>} : memref<2x4x256xf32, #tpu.memory_space<vmem>>, vector<1x4x256xf32>,
    return
  }
  func.func @transform_0(%arg0: i32) -> (i32, i32, i32) {
    %c0_i32 = arith.constant 0 : i32
    %c0_i32_0 = arith.constant 0 : i32
    %c0_i32_1 = arith.constant 0 : i32
    return %arg0, %c0_i32, %c0_i32_0 : i32, i32, i32
  }
  func.func @transform_1(%arg0: i32) -> (i32, i32) {
    %c0_i32 = arith.constant 0 : i32
    %c0_i32_0 = arith.constant 0 : i32
    %c0_i32_1 = arith.constant 0 : i32
    return %c0_i32, %c0_i32_0 : i32, i32
  }
  func.func @transform_2(%arg0: i32) -> (i32, i32) {
    %c0_i32 = arith.constant 0 : i32
    %c0_i32_0 = arith.constant 0 : i32
    %c0_i32_1 = arith.constant 0 : i32
    return %c0_i32, %c0_i32_0 : i32, i32
  }
  func.func @transform_3(%arg0: i32) -> (i32, i32, i32) {
    %c0_i32 = arith.constant 0 : i32
    %c0_i32_0 = arith.constant 0 : i32
    %c0_i32_1 = arith.constant 0 : i32
    %c0_i32_2 = arith.constant 0 : i32
    return %c0_i32, %c0_i32_0, %c0_i32_1 : i32, i32, i32
  }
  func.func @transform_4(%arg0: i32) -> (i32, i32) {
    %c0_i32 = arith.constant 0 : i32
    %c0_i32_0 = arith.constant 0 : i32
    %c0_i32_1 = arith.constant 0 : i32
    return %c0_i32, %c0_i32_0 : i32, i32
  }
  func.func @transform_5(%arg0: i32) -> (i32, i32) {
    %c0_i32 = arith.constant 0 : i32
    %c0_i32_0 = arith.constant 0 : i32
    %c0_i32_1 = arith.constant 0 : i32
    return %c0_i32, %c0_i32_0 : i32, i32
  }
  func.func @transform_6(%arg0: i32) -> (i32, i32, i32) {
    %c0_i32 = arith.constant 0 : i32
    %c0_i32_0 = arith.constant 0 : i32
    %c0_i32_1 = arith.constant 0 : i32
    return %arg0, %c0_i32, %c0_i32_0 : i32, i32, i32
  }
}

</mosaic_0001>

<bundles_post_ra>
// kernel: _block_decoder_impl.1
= control target key start
LH: loop header
LB: loop body
LE: loop exit
PB: predicated region body
PF: predicated region fallthrough
CT: control target
= control target key end

     0   :  { %s3956_s21 = smov 0   ;;  %s5066_s0 = inlined_call_operand.vmem [shape: f32[4,4,256], index: 0, kind: input, shape index: {}]   ;;  %s5067_s1 = inlined_call_operand.vmem [shape: f32[6,4], index: 1, kind: input, shape index: {}]   ;;  %s5068_s2 = inlined_call_operand.vmem [shape: f32[4,2], index: 2, kind: input, shape index: {}]   ;;  %s5069_s3 = inlined_call_operand.vmem [shape: f32[9,4,12], index: 3, kind: input, shape index: {}]   ;;  %s5070_s4 = inlined_call_operand.vmem [shape: f32[4,4], index: 4, kind: input, shape index: {}]   ;;  %s5071_s5 = inlined_call_operand.vmem [shape: f32[26,1], index: 5, kind: input, shape index: {}]   ;;  %s5072_s6 = inlined_call_operand.vmem [shape: f32[4,4,256], index: 6, kind: output, shape index: {}]  }
   0x1 LB: > { %s3730_s22 = sadd.s32 4294967295, %s3912_s21   ;;  %p3734_p0 = scmp.ge.s32.totalorder %s3912_s21, 1  ;;  %s3912_s21 = sphi %s3956_s21, %s16_s21  }
   0x2   : > { %p214_p1 = scmp.lt.s32.totalorder %s3912_s21, 3 }
   0x4   : > { %p215_p2 = pnand %p3734_p0, %p214_p1 }
   0x5   : > { %s3735_s23 = sshll.u32 (!%p215_p2), %s3730_s22, 1  ;;  %s3917_s19 = smov (!%p215_p2), 16  }
   0x6   : > { %218 = sbr.rel (%p215_p2) target bundleno = 3351 (0xd17), region = 44  ;;  %p247_p3 = scmp.lt.s32.totalorder (!%p215_p2), %s3735_s23, 3 }
   0x7   : > { %s3918_s20 = smov (!%p215_p2), 112   ;;  %s3919_s24 = smov (!%p215_p2), 127  }
   0x8   : > { %s3920_s25 = smov (!%p215_p2), 1  }
   0xb   : > { %v3914_v0 = vmov 0.0   ;;  %v298_v1 = vld [vmem:[%s5071_s5] sm:$0xff]  ;;  %v3915_v2 = vmov 0   ;;  %s5159_s23 = smov (!%p247_p3, %s3735_s23), 3  ;;  %vm5079_vm0 = vcmask 1043456   ;;  %vm5073_vm1 = vcmask 31744  }
   0xc   : > { %385 = vmatprep.mubr.f32.mxu0 %v3914_v0  ;;  %456 = vmatprep.mubr.f32.mxu1 %v3914_v0  ;;  %s3829_s26 = sshll.u32 %s5159_s23, 3  ;;  %v302_v7 = vld [vmem:[%s5067_s1] sm:$0x3f]  ;;  %vm464_vm2 = vcmask 1043458   ;;  %vm5074_vm3 = vcmask 1041408   ;;  %vm507_vm4 = vcmask 1045508  }
   0xd   : > { %3876 = vset.pattern.permute.xlu0 %v3915_v2  ;;  %3877 = vset.pattern.permute.xlu1 %v3915_v2  ;;  %s3977_s29 = scalar_lea.vmem %s5066_s0, %s3829_s26  ;;  %vm3916_vm5 = vmmov 0   ;;  %vm625_vm6 = vcmask 15360  }
   0xe   : > { %305 = vperm.xlu0 %3876, %v298_v1   ;;  %v3980_v3 = vld [vmem:[%s3977_s29] sm:$0xff]  ;;  %v3983_v4 = vld [vmem:[%s3977_s29 + $0x8] sm:$0xff] }
   0xf   : > { %v3987_v5 = vcombine.high %v3980_v3, %v3980_v3  ;;  %v3991_v6 = vcombine.high %v3983_v4, %v3983_v4 }
  0x11   : > { %3742 = vmatprep.subr.msk.mxu0 %vm5079_vm0, %v3987_v5  ;;  %3745 = vmatprep.subr.msk.mxu1 %vm5079_vm0, %v3991_v6 }
  0x12   : > { %3743 = vmatpush1.msk.msra.mxu0 %vm5079_vm0, %v3980_v3  ;;  %3746 = vmatpush1.msk.msra.mxu1 %vm5079_vm0, %v3983_v4 }
  0x13   : > { %3744 = vmatmul.mubr.msk.f32.vlgmr.msra.gmra.mxu0 %vm5073_vm1, %v302_v7  ;;  %3747 = vmatmul.mubr.msk.f32.vlgmr.msra.gmra.mxu1 %vm5073_vm1, %v302_v7 }
  0x14   : > { %3835 = vmatprep.subr.mxu1 %v3914_v0  ;;  %3837 = vmatprep.mubr.msk.f32.mxu1 %vm3916_vm5, %v3914_v0 }
  0x89   : > { %v4007_v8 = vpop.permute.xlu0 %305 }
  0xd3   : > { %v387_v9 = vpop.f32.mrf.mxu0  ;;  %v458_v61 = vpop.f32.mrf.mxu1 }
  0xd4   : > { %v4010_v10 = vadd.f32 %v387_v9, %v4007_v8 }
  0xd5   : > { %v389_v11 = vpop.f32.mrf.mxu0  ;;  %v460_v1 = vpop.f32.mrf.mxu1 }
  0xd6   : > { %v390_v12 = vadd.f32 %v389_v11, %v4007_v8  ;;  %v465_v13 = vsel %vm464_vm2, %v4010_v10, -inf  ;;  %v508_v36 = vsel %vm507_vm4, %v4010_v10, -inf  ;;  %v4025_v11 = vadd.f32 %v458_v61, %v4007_v8 }
  0xd8   : > { %619 = vmatprep.mubr.f32.mxu0 %v390_v12  ;;  %v466_v14 = vsel %vm464_vm2, %v390_v12, -inf  ;;  %v509_v35 = vsel %vm507_vm4, %v390_v12, -inf }
  0xd9   : > { %v467_v15 = vmax.f32 %v465_v13, %v466_v14  ;;  %v510_v37 = vmax.f32 %v508_v36, %v509_v35 }
  0xdb   : > { %468 = vmax.xlane.f32.xlu0 %v467_v15 }
 0x164   : > { %v469_v16 = vpop.xlane.xlu0 %468 }
 0x165   : > { %v470_v17 = vrot.slane %v469_v16, 4 }
 0x167   : > { %v471_v18 = vmax.f32 %v469_v16, %v470_v17  ;;  %v784_v17 = vsel %vm464_vm2, %v4025_v11, -inf }
 0x169   : > { %v472_v19 = vrot.slane %v471_v18, 2 }
 0x16b   : > { %v473_v20 = vmax.f32 %v471_v18, %v472_v19 }
 0x16d   : > { %v474_v21 = vrot.slane %v473_v20, 1 }
 0x16f   : > { %v475_v22 = vmax.f32 %v473_v20, %v474_v21 }
 0x171   : > { %3845 = vpush %v475_v22 }
 0x1a2   : > { %s3846_s8 = spop %3845 }
 0x1a3   : > { %v477_v23 = vstv %s3846_s8 }
 0x1a4   : > { %v478_v24 = vsub.f32 %v4010_v10, %v477_v23  ;;  %v479_v25 = vsub.f32 %v390_v12, %v477_v23 }
 0x1a6   : > { %v480_v26 = vmul.f32 1.442695, %v478_v24  ;;  %v482_v27 = vmul.f32 1.442695, %v479_v25 }
 0x1a8   : > { %3880 = vpow2.f32 %v480_v26 }
 0x1a9   : > { %3882 = vpow2.f32 %v482_v27 }
 0x1b5   : > { %v3881_v28 = vpop.eup %3880 }
 0x1b6   : > { %v3883_v29 = vpop.eup %3882  ;;  %v486_v30 = vrot.slane %v3881_v28, 2 }
 0x1b7   : > { %v487_v31 = vrot.slane %v3883_v29, 2 }
 0x1b8   : > { %v491_v32 = vsel %vm5074_vm3, %v486_v30, 0.0 }
 0x1b9   : > { %v492_v33 = vsel %vm5074_vm3, %v487_v31, 0.0 }
 0x1ba   : > { %v493_v34 = vadd.f32 %v492_v33, %v491_v32  ;;  %v4042_v33 = vld [vmem:[%s5068_s2] sm:$0xf] }
 0x1bc   : > { %494 = vadd.xlane.f32.xlu1 %v493_v34 }
 0x1c0   : > { %511 = vmax.xlane.f32.xlu1 %v510_v37 }
 0x245   : > { %v495_v38 = vpop.xlane.xlu1 %494 }
 0x246   : > { %v496_v39 = vrot.slane %v495_v38, 4 }
 0x248   : > { %v497_v40 = vadd.f32 %v496_v39, %v495_v38 }
 0x249   : > { %v512_v41 = vpop.xlane.xlu1 %511 }
 0x24a   : > { %v513_v42 = vrot.slane %v512_v41, 4  ;;  %v498_v43 = vrot.slane %v497_v40, 2 }
 0x24c   : > { %v514_v44 = vmax.f32 %v512_v41, %v513_v42  ;;  %v499_v45 = vadd.f32 %v498_v43, %v497_v40 }
 0x24e   : > { %v500_v46 = vrot.slane %v499_v45, 1  ;;  %v515_v47 = vrot.slane %v514_v44, 2 }
 0x250   : > { %v501_v48 = vadd.f32 %v500_v46, %v499_v45  ;;  %v516_v49 = vmax.f32 %v514_v44, %v515_v47 }
 0x252   : > { %3847 = vpush %v501_v48  ;;  %v517_v50 = vrot.slane %v516_v49, 1 }
 0x254   : > { %v518_v51 = vmax.f32 %v516_v49, %v517_v50 }
 0x256   : > { %3849 = vpush %v518_v51 }
 0x283   : > { %s3848_s9 = spop %3847 }
 0x284   : > { %v503_v52 = vstv %s3848_s9 }
 0x285   : > { %3884 = vrcp.f32 %v503_v52 }
 0x287   : > { %s3850_s10 = spop %3849 }
 0x288   : > { %v520_v53 = vstv %s3850_s10  ;;  %s258_s10 = scalar_lea.vmem %s5072_s6, %s3829_s26 }
 0x289   : > { %v521_v54 = vsub.f32 %v4010_v10, %v520_v53  ;;  %v522_v55 = vsub.f32 %v390_v12, %v520_v53  ;;  %v4028_v12 = vadd.f32 %v460_v1, %v4007_v8 }
 0x28b   : > { %v523_v56 = vmul.f32 1.442695, %v521_v54  ;;  %v525_v57 = vmul.f32 1.442695, %v522_v55  ;;  %v825_v54 = vsel %vm507_vm4, %v4025_v11, -inf  ;;  %v826_v55 = vsel %vm507_vm4, %v4028_v12, -inf }
 0x28d   : > { %3886 = vpow2.f32 %v523_v56  ;;  %v827_v56 = vmax.f32 %v825_v54, %v826_v55 }
 0x28e   : > { %3888 = vpow2.f32 %v525_v57 }
 0x292   : > { %v3885_v58 = vpop.eup %3884 }
 0x293   : > { %v506_v59 = vmul.f32 %v3885_v58, %v3883_v29  ;;  %v505_v60 = vmul.f32 %v3885_v58, %v3881_v28 }
 0x295   : > { %v552_v62 = vrot.slane %v506_v59, 2  ;;  %v551_v63 = vrot.slane %v505_v60, 2 }
 0x297   : > { %585 = vmatprep.subr.mxu0 %v552_v62 }
 0x298   : > { %586 = vmatpush1.xpose.msra.mxu0 %v551_v63 }
 0x29a   : > { %v3887_v2 = vpop.eup %3886 }
 0x29b   : > { %v3889_v7 = vpop.eup %3888  ;;  %620 = vmatmul.mubr.f32.vlgmr.msra.gmra.mxu0 %v4010_v10  ;;  %v529_v9 = vrot.slane %v3887_v2, 4  ;;  %v785_v10 = vsel %vm464_vm2, %v4028_v12, -inf }
 0x29c   : > { %v530_v13 = vrot.slane %v3889_v7, 4  ;;  %777 = vmatprep.mubr.f32.mxu0 %v3914_v0  ;;  %v786_v18 = vmax.f32 %v784_v17, %v785_v10 }
 0x29d   : > { %v533_v14 = vsel %vm5074_vm3, %v529_v9, 0.0 }
 0x29e   : > { %v534_v15 = vsel %vm5074_vm3, %v530_v13, 0.0 }
 0x29f   : > { %v535_v16 = vadd.f32 %v534_v15, %v533_v14 }
 0x2a1   : > { %536 = vadd.xlane.f32.xlu1 %v535_v16 }
 0x2a5   : > { %787 = vmax.xlane.f32.xlu1 %v786_v18 }
 0x32a   : > { %v537_v19 = vpop.xlane.xlu1 %536 }
 0x32b   : > { %v538_v20 = vrot.slane %v537_v19, 4 }
 0x32d   : > { %v539_v21 = vadd.f32 %v538_v20, %v537_v19 }
 0x32e   : > { %v788_v22 = vpop.xlane.xlu1 %787 }
 0x32f   : > { %v789_v23 = vrot.slane %v788_v22, 4  ;;  %v540_v24 = vrot.slane %v539_v21, 2 }
 0x331   : > { %v790_v25 = vmax.f32 %v788_v22, %v789_v23  ;;  %v541_v26 = vadd.f32 %v540_v24, %v539_v21 }
 0x333   : > { %v542_v27 = vrot.slane %v541_v26, 1  ;;  %v791_v28 = vrot.slane %v790_v25, 2 }
 0x335   : > { %v543_v29 = vadd.f32 %v542_v27, %v541_v26  ;;  %v792_v30 = vmax.f32 %v790_v25, %v791_v28 }
 0x337   : > { %3851 = vpush %v543_v29  ;;  %v793_v31 = vrot.slane %v792_v30, 1 }
 0x339   : > { %v794_v32 = vmax.f32 %v792_v30, %v793_v31 }
 0x33b   : > { %3853 = vpush %v794_v32 }
 0x35b   : > { %v621_v34 = vpop.f32.mrf.mxu0 }
 0x35c   : > { %3836 = vmatpush3.msk.msra.mxu1 %vm5074_vm3, %v621_v34 }
 0x35d   : > { %v623_v35 = vpop.f32.mrf.mxu0  ;;  %3838 = vmatmul.mubr.msk.f32.vlgmr.msra.gmra.mxu1 %vm625_vm6, %v4042_v33 }
 0x35e   : > { %936 = vmatprep.mubr.f32.mxu1 %v4028_v12  ;;  %v299_v35 = vld [vmem:[%s5071_s5 + $0x8] sm:$0xff] }
 0x368   : > { %s3852_s13 = spop %3851 }
 0x369   : > { %v545_v36 = vstv %s3852_s13 }
 0x36a   : > { %3890 = vrcp.f32 %v545_v36 }
 0x36c   : > { %s3854_s14 = spop %3853 }
 0x36d   : > { %v796_v37 = vstv %s3854_s14 }
 0x36e   : > { %v797_v38 = vsub.f32 %v4025_v11, %v796_v37  ;;  %v798_v39 = vsub.f32 %v4028_v12, %v796_v37 }
 0x370   : > { %v799_v40 = vmul.f32 1.442695, %v797_v38  ;;  %v801_v41 = vmul.f32 1.442695, %v798_v39 }
 0x372   : > { %3892 = vpow2.f32 %v799_v40  ;;  %v1101_v40 = vrot.slane %v4007_v8, 6 }
 0x373   : > { %3894 = vpow2.f32 %v801_v41 }
 0x377   : > { %v3891_v42 = vpop.eup %3890 }
 0x378   : > { %v548_v43 = vmul.f32 %v3891_v42, %v3889_v7  ;;  %v547_v44 = vmul.f32 %v3891_v42, %v3887_v2 }
 0x37a   : > { %v705_v45 = vrot.slane %v548_v43, 4  ;;  %v704_v46 = vrot.slane %v547_v44, 4 }
 0x37c   : > { %3750 = vmatprep.subr.msk.mxu0 %vm5074_vm3, %v705_v45 }
 0x37d   : > { %3751 = vmatpush1.msk.msra.mxu0 %vm5074_vm3, %v704_v46 }
 0x37e   : > { %3840 = vmatprep.subr.mxu0 %v3914_v0 }
 0x37f   : > { %v3893_v47 = vpop.eup %3892 }
 0x380   : > { %v3895_v48 = vpop.eup %3894  ;;  %v805_v49 = vrot.slane %v3893_v47, 2 }
 0x381   : > { %v806_v50 = vrot.slane %v3895_v48, 2 }
 0x382   : > { %v809_v51 = vsel %vm5074_vm3, %v805_v49, 0.0 }
 0x383   : > { %v810_v52 = vsel %vm5074_vm3, %v806_v50, 0.0 }
 0x384   : > { %v811_v53 = vadd.f32 %v810_v52, %v809_v51 }
 0x386   : > { %812 = vadd.xlane.f32.xlu1 %v811_v53 }
 0x38a   : > { %828 = vmax.xlane.f32.xlu1 %v827_v56 }
 0x40f   : > { %v813_v57 = vpop.xlane.xlu1 %812 }
 0x410   : > { %v814_v58 = vrot.slane %v813_v57, 4 }
 0x412   : > { %v815_v59 = vadd.f32 %v814_v58, %v813_v57 }
 0x413   : > { %v829_v60 = vpop.xlane.xlu1 %828 }
 0x414   : > { %v830_v61 = vrot.slane %v829_v60, 4  ;;  %v816_v62 = vrot.slane %v815_v59, 2 }
 0x416   : > { %v831_v63 = vmax.f32 %v829_v60, %v830_v61  ;;  %v817_v1 = vadd.f32 %v816_v62, %v815_v59  ;;  %v269_v60 = vlaneseq }
 0x418   : > { %v818_v2 = vrot.slane %v817_v1, 1  ;;  %v832_v7 = vrot.slane %v831_v63, 2  ;;  %v4102_v61 = vand.u32 127, %v269_v60 }
 0x41a   : > { %v819_v9 = vadd.f32 %v818_v2, %v817_v1  ;;  %v833_v13 = vmax.f32 %v831_v63, %v832_v7  ;;  %vm5077_vm7 = vcmp.lt.s32.totalorder %v4102_v61, 16  ;;  %vm1216_vm8 = vcmp.lt.s32.totalorder %v4102_v61, 127 }
 0x41b   : > { %vm5075_vm13 = vcmp.lt.s32.totalorder %v4102_v61, 112  ;;  %vm1171_vm2 = vcmp.lt.s32.totalorder %v4102_v61, 1 }
 0x41c   : > { %3855 = vpush %v819_v9  ;;  %v834_v14 = vrot.slane %v833_v13, 1  ;;  %v274_v9 = vand.u32 255, %v4102_v61 }
 0x41d   : > { %v698_v15 = vpop.f32.mrf.mxu1 }
 0x41e   : > { %v835_v16 = vmax.f32 %v833_v13, %v834_v14  ;;  %3752 = vmatmul.mubr.msk.f32.vlgmr.msra.gmra.mxu0 %vm625_vm6, %v698_v15  ;;  %vm4190_vm11 = vcmp.lt.s32.totalorder %v274_v9, 16 }
 0x41f   : > { %v3839_v17 = vpop.f32.mrf.mxu1  ;;  %3842 = vmatprep.mubr.msk.f32.mxu0 %vm3916_vm5, %v3914_v0 }
 0x420   : > { %3857 = vpush %v835_v16  ;;  %v4126_v16 = vand.u32 15, %v274_v9 }
 0x422   : > { %vm294_vm9 = vcmp.eq.s32.totalorder %v4126_v16, 15 }
 0x44d   : > { %s3856_s15 = spop %3855 }
 0x44e   : > { %v821_v10 = vstv %s3856_s15 }
 0x44f   : > { %3896 = vrcp.f32 %v821_v10 }
 0x451   : > { %s3858_s16 = spop %3857 }
 0x452   : > { %v837_v18 = vstv %s3858_s16 }
 0x453   : > { %v838_v19 = vsub.f32 %v4025_v11, %v837_v18  ;;  %v839_v20 = vsub.f32 %v4028_v12, %v837_v18 }
 0x455   : > { %v840_v21 = vmul.f32 1.442695, %v838_v19  ;;  %v842_v22 = vmul.f32 1.442695, %v839_v20 }
 0x457   : > { %3898 = vpow2.f32 %v840_v21 }
 0x458   : > { %3900 = vpow2.f32 %v842_v22 }
 0x45c   : > { %v3897_v23 = vpop.eup %3896 }
 0x45d   : > { %v824_v24 = vmul.f32 %v3897_v23, %v3895_v48  ;;  %v823_v25 = vmul.f32 %v3897_v23, %v3893_v47 }
 0x45f   : > { %v869_v26 = vrot.slane %v824_v24, 2  ;;  %v868_v27 = vrot.slane %v823_v25, 2 }
 0x461   : > { %902 = vmatprep.subr.mxu1 %v869_v26 }
 0x462   : > { %903 = vmatpush1.xpose.msra.mxu1 %v868_v27 }
 0x464   : > { %v3899_v28 = vpop.eup %3898 }
 0x465   : > { %v3901_v29 = vpop.eup %3900  ;;  %937 = vmatmul.mubr.f32.vlgmr.msra.gmra.mxu1 %v4025_v11  ;;  %v846_v30 = vrot.slane %v3899_v28, 4 }
 0x466   : > { %v847_v31 = vrot.slane %v3901_v29, 4  ;;  %1090 = vmatprep.mubr.f32.mxu1 %v3914_v0 }
 0x467   : > { %v850_v12 = vsel %vm5074_vm3, %v846_v30, 0.0  ;;  %v271_v30 = vadd.s32 128, %v4102_v61 }
 0x468   : > { %v851_v32 = vsel %vm5074_vm3, %v847_v31, 0.0 }
 0x469   : > { %v852_v34 = vadd.f32 %v851_v32, %v850_v12 }
 0x46b   : > { %853 = vadd.xlane.f32.xlu1 %v852_v34 }
 0x47c   : > { %1099 = vperm.xlu1 %3877, %v299_v35  }
 0x4de   : > { %v779_v38 = vpop.f32.mrf.mxu0 }
 0x4e0   : > { %v781_v42 = vpop.f32.mrf.mxu0 }
 0x4f4   : > { %v854_v36 = vpop.xlane.xlu1 %853 }
 0x4f5   : > { %v855_v37 = vrot.slane %v854_v36, 4 }
 0x4f7   : > { %v856_v39 = vadd.f32 %v855_v37, %v854_v36  ;;  %v275_v36 = vand.u32 255, %v271_v30 }
 0x4f8   : > { %v4071_v11 = vpop.permute.xlu1 %1099 }
 0x4f9   : > { %v1102_v41 = vrot.slane %v4071_v11, 6  ;;  %v857_v43 = vrot.slane %v856_v39, 2  ;;  %vm4209_vm12 = vcmp.ge.s32.totalorder %v275_v36, 240 }
 0x4fb   : > { %v4076_v44 = vsel %vm5074_vm3, %v1101_v40, %v1102_v41  ;;  %v858_v45 = vadd.f32 %v857_v43, %v856_v39 }
 0x4fc   : > { %v1105_v46 = vadd.f32 %v4076_v44, %v779_v38  ;;  %v1106_v47 = vadd.f32 %v4076_v44, %v781_v42 }
 0x4fd   : > { %v859_v48 = vrot.slane %v858_v45, 1 }
 0x4fe   : > { %v4081_v49 = vadd.f32 %v1105_v46, %v3980_v3  ;;  %v4084_v50 = vadd.f32 %v1106_v47, %v3987_v5  ;;  %v273_v47 = vadd.s32 384, %v4102_v61 }
 0x4ff   : > { %v860_v8 = vadd.f32 %v859_v48, %v858_v45 }
 0x500   : > { %1115 = vrot.lane.b32.xlu0 %v4084_v50, %s3917_s19  ;;  %1113 = vrot.lane.b32.xlu1 %v4081_v49, %s3917_s19  ;;  %v1447_v51 = vrot.slane %v4084_v50, 4  ;;  %v1446_v52 = vrot.slane %v4081_v49, 4 }
 0x501   : > { %3859 = vpush %v860_v8 }
 0x502   : > { %1455 = vst [vmem:[#allocation2 + $0x20] sm:$0xf0] %v1447_v51  ;;  %1454 = vst [vmem:[#allocation2 + $0x40] sm:$0xf0] %v1446_v52  ;;  %v4231_v51 = vand.u32 15, %v275_v36  ;;  %v277_v52 = vand.u32 255, %v273_v47 }
 0x504   : > { %1140 = vrot.lane.b32.xlu0 %v4084_v50, %s3918_s20  ;;  %vm295_vm14 = vcmp.eq.s32.totalorder %v4231_v51, 15  ;;  %vm4242_vm15 = vcmp.ge.s32.totalorder %v277_v52, 240  ;;  %vm291_vm5 = vcmp.eq.s32.totalorder %v4231_v51, 0 }
 0x508   : > { %1138 = vrot.lane.b32.xlu0 %v4081_v49, %s3918_s20 }
 0x525   : > { %v938_v3 = vpop.f32.mrf.mxu1 }
 0x526   : > { %3841 = vmatpush3.msk.msra.mxu0 %vm5074_vm3, %v938_v3 }
 0x527   : > { %v940_v53 = vpop.f32.mrf.mxu1  ;;  %3843 = vmatmul.mubr.msk.f32.vlgmr.msra.gmra.mxu0 %vm625_vm6, %v4042_v33 }
 0x528   : > { %1326 = vmatprep.mubr.f32.mxu0 %v3914_v0 }
 0x532   : > { %s3860_s22 = spop %3859 }
 0x533   : > { %v862_v54 = vstv %s3860_s22 }
 0x534   : > { %3902 = vrcp.f32 %v862_v54 }
 0x541   : > { %v3903_v55 = vpop.eup %3902 }
 0x542   : > { %v865_v56 = vmul.f32 %v3903_v55, %v3901_v29  ;;  %v864_v57 = vmul.f32 %v3903_v55, %v3899_v28 }
 0x544   : > { %v1018_v58 = vrot.slane %v865_v56, 4  ;;  %v1017_v59 = vrot.slane %v864_v57, 4 }
 0x546   : > { %3755 = vmatprep.subr.msk.mxu1 %vm5074_vm3, %v1018_v58 }
 0x547   : > { %3756 = vmatpush1.msk.msra.mxu1 %vm5074_vm3, %v1017_v59 }
 0x572   : > { %v1116_v33 = vpop.permute.xlu0 %1115  ;;  %v1114_v62 = vpop.permute.xlu1 %1113 }
 0x573   : > { %v4107_v63 = vsel %vm5077_vm7, %v1114_v62, %v1116_v33 }
 0x574   : > { %v1197_v1 = vrot.slane %v4107_v63, 4  ;;  %1210 = vrot.lane.b32.xlu0 %v4107_v63, %s3919_s24 }
 0x576   : > { %1205 = vst [vmem:[#allocation2] sm:$0xf0] %v1197_v1  ;;  %v4118_v2 = vpop.permute.xlu0 %1140 }
 0x578   : > { %1460 = vrot.lane.b32.xlu0 %v4084_v50, %s3919_s24 }
 0x57a   : > { %v4120_v7 = vpop.permute.xlu0 %1138 }
 0x57b   : > { %v4261_v59 = vsel %vm5075_vm13, %v4120_v7, %v4118_v2 }
 0x57c   : > { %1458 = vrot.lane.b32.xlu0 %v4081_v49, %s3919_s24 }
 0x580   : > { %1421 = vrot.lane.b32.xlu0 %v4081_v49, %s3920_s25 }
 0x5e6   : > { %v4123_v13 = vpop.permute.xlu0 %1210 }
 0x5e7   : > { %v1011_v14 = vpop.f32.mrf.mxu0 }
 0x5e8   : > { %3757 = vmatmul.mubr.msk.f32.vlgmr.msra.gmra.mxu1 %vm625_vm6, %v1011_v14 }
 0x5e9   : > { %v3844_v15 = vpop.f32.mrf.mxu0  ;;  %1397 = vmatprep.mubr.f32.mxu1 %v3914_v0 }
 0x5ea   : > { %v4129_v17 = vpop.permute.xlu0 %1460 }
 0x5ee   : > { %v4133_v10 = vpop.permute.xlu0 %1458 }
 0x5ef   : > { %v1468_v18 = vsel %vm1216_vm8, %v4133_v10, %v4129_v17 }
 0x5f0   : > { %v1470_v19 = vsel %vm294_vm9, %v4081_v49, %v1468_v18 }
 0x5f1   : > { %1474 = vst [vmem:[#allocation2 + $0x60] sm:$0xf] %v1470_v19 }
 0x5f2   : > { %v1422_v56 = vpop.permute.xlu0 %1421 }
 0x6a8   : > { %v1092_v20 = vpop.f32.mrf.mxu1 }
 0x6a9   : > { %v1107_v21 = vadd.f32 %v4076_v44, %v1092_v20 }
 0x6aa   : > { %v1094_v22 = vpop.f32.mrf.mxu1 }
 0x6ab   : > { %v4144_v23 = vadd.f32 %v3983_v4, %v1107_v21  ;;  %v1108_v24 = vadd.f32 %v4076_v44, %v1094_v22  ;;  %v272_v4 = vadd.s32 256, %v4102_v61 }
 0x6ad   : > { %v4148_v25 = vadd.f32 %v1108_v24, %v3991_v6  ;;  %1117 = vrot.lane.b32.xlu1 %v4144_v23, %s3917_s19  ;;  %1425 = vrot.lane.b32.xlu0 %v4144_v23, %s3920_s25  ;;  %v1448_v26 = vrot.slane %v4144_v23, 4  ;;  %v276_v28 = vand.u32 255, %v272_v4 }
 0x6af   : > { %v1449_v27 = vrot.slane %v4148_v25, 4  ;;  %1456 = vst [vmem:[#allocation2 + $0x10] sm:$0xf0] %v1448_v26  ;;  %vm4173_vm10 = vcmp.lt.s32.totalorder %v276_v28, 16  ;;  %v4239_v53 = vand.u32 15, %v276_v28 }
 0x6b1   : > { %1119 = vrot.lane.b32.xlu1 %v4148_v25, %s3917_s19  ;;  %1457 = vst [vmem:[#allocation2 + $0x38] sm:$0xf0] %v1449_v27  ;;  %vm5081_vm4 = vcmp.eq.s32.totalorder %v4239_v53, 0  ;;  %vm5076_vm6 = vcmp.eq.s32.totalorder %v4239_v53, 15 }
 0x6b5   : > { %1142 = vrot.lane.b32.xlu1 %v4144_v23, %s3918_s20 }
 0x6b9   : > { %1144 = vrot.lane.b32.xlu1 %v4148_v25, %s3918_s20 }
 0x6bd   : > { %1165 = vrot.lane.b32.xlu1 %v4107_v63, %s3920_s25 }
 0x6c1   : > { %1462 = vrot.lane.b32.xlu1 %v4144_v23, %s3919_s24 }
 0x6c5   : > { %1423 = vrot.lane.b32.xlu1 %v4084_v50, %s3920_s25 }
 0x6c9   : > { %1464 = vrot.lane.b32.xlu1 %v4148_v25, %s3919_s24 }
 0x6cd   : > { %1427 = vrot.lane.b32.xlu1 %v4148_v25, %s3920_s25 }
 0x71f   : > { %v1118_v31 = vpop.permute.xlu1 %1117  ;;  %v1426_v1 = vpop.permute.xlu0 %1425 }
 0x720   : > { %v1123_v12 = vsel %vm5077_vm7, %v1116_v33, %v1118_v31 }
 0x721   : > { %v4183_v32 = vsel %vm4173_vm10, %v4144_v23, %v1123_v12 }
 0x722   : > { %v1198_v34 = vrot.slane %v4183_v32, 4  ;;  %1167 = vrot.lane.b32.xlu0 %v4183_v32, %s3920_s25  ;;  %1212 = vrot.lane.b32.xlu1 %v4183_v32, %s3919_s24 }
 0x723   : > { %v1120_v37 = vpop.permute.xlu1 %1119 }
 0x724   : > { %1206 = vst [vmem:[#allocation2 + $0x58] sm:$0xf0] %v1198_v34  ;;  %v4196_v38 = vsel %vm5077_vm7, %v1118_v31, %v1120_v37  ;;  %v1125_v39 = vsel %vm5077_vm7, %v1120_v37, %v1114_v62  ;;  %v4273_v62 = vand.u32 15, %v277_v52 }
 0x725   : > { %v4203_v40 = vsel %vm4190_vm11, %v4081_v49, %v1125_v39  ;;  %v1199_v41 = vrot.slane %v4196_v38, 4 }
 0x726   : > { %v1196_v42 = vrot.slane %v4203_v40, 4  ;;  %1214 = vrot.lane.b32.xlu1 %v4196_v38, %s3919_s24  ;;  %vm297_vm1 = vcmp.eq.s32.totalorder %v4273_v62, 15  ;;  %vm5080_vm3 = vcmp.eq.s32.totalorder %v4273_v62, 0 }
 0x727   : > { %1207 = vst [vmem:[#allocation2 + $0x18] sm:$0xf0] %v1199_v41  ;;  %v1143_v44 = vpop.permute.xlu1 %1142 }
 0x728   : > { %1204 = vst [vmem:[#allocation2 + $0x30] sm:$0xf0] %v1196_v42  ;;  %v1148_v45 = vsel %vm5075_vm13, %v4118_v2, %v1143_v44 }
 0x729   : > { %v4220_v46 = vsel %vm4209_vm12, %v4084_v50, %v1148_v45 }
 0x72a   : > { %1169 = vrot.lane.b32.xlu1 %v4196_v38, %s3920_s25  ;;  %1699 = vrot.lane.b32.xlu0 %v4220_v46, %s3919_s24 }
 0x72b   : > { %v1145_v48 = vpop.permute.xlu1 %1144 }
 0x72c   : > { %v4229_v8 = vsel %vm5075_vm13, %v1143_v44, %v1145_v48  ;;  %v1150_v55 = vsel %vm5075_vm13, %v1145_v48, %v4120_v7  ;;  %vm5082_vm13 = vcmp.eq.s32.totalorder %v4126_v16, 0 }
 0x72d   : > { %v4266_v60 = vsel %vm4242_vm15, %v4148_v25, %v1150_v55  ;;  %v1687_v44 = vrot.slane %v4229_v8, 4 }
 0x72e   : > { %1208 = vrot.lane.b32.xlu0 %v4203_v40, %s3919_s24  ;;  %1701 = vrot.lane.b32.xlu1 %v4229_v8, %s3919_s24 }
 0x72f   : > { %v4237_v3 = vpop.permute.xlu1 %1165 }
 0x732   : > { %1163 = vrot.lane.b32.xlu0 %v4203_v40, %s3920_s25  ;;  %1663 = vrot.lane.b32.xlu1 %v4220_v46, %s3920_s25 }
 0x733   : > { %v1463_v57 = vpop.permute.xlu1 %1462 }
 0x734   : > { %v1467_v58 = vsel %vm1216_vm8, %v4129_v17, %v1463_v57 }
 0x735   : > { %v1471_v33 = vsel %vm295_vm14, %v4084_v50, %v1467_v58 }
 0x736   : > { %1475 = vst [vmem:[#allocation2 + $0x70] sm:$0xf] %v1471_v33  ;;  %1697 = vrot.lane.b32.xlu0 %v4261_v59, %s3919_s24  ;;  %1703 = vrot.lane.b32.xlu1 %v4266_v60, %s3919_s24 }
 0x737   : > { %v1424_v2 = vpop.permute.xlu1 %1423 }
 0x738   : > { %v1430_v7 = vsel %vm1171_vm2, %v1424_v2, %v1426_v1  ;;  %v1431_v9 = vsel %vm1171_vm2, %v1422_v56, %v1424_v2 }
 0x739   : > { %v1434_v14 = vsel %vm291_vm5, %v4084_v50, %v1431_v9  ;;  %v1435_v15 = vsel %vm5081_vm4, %v4144_v23, %v1430_v7  ;;  %v1688_v9 = vrot.slane %v4266_v60, 4 }
 0x73a   : > { %1439 = vst [vmem:[#allocation2 + $0x20] sm:$0xf] %v1434_v14  ;;  %1440 = vst [vmem:[#allocation2 + $0x10] sm:$0xf] %v1435_v15  ;;  %1661 = vrot.lane.b32.xlu0 %v4261_v59, %s3920_s25  ;;  %1667 = vrot.lane.b32.xlu1 %v4266_v60, %s3920_s25 }
 0x73b   : > { %v1465_v17 = vpop.permute.xlu1 %1464 }
 0x73c   : > { %v1466_v18 = vsel %vm1216_vm8, %v1463_v57, %v1465_v17  ;;  %v1469_v19 = vsel %vm1216_vm8, %v1465_v17, %v4133_v10 }
 0x73d   : > { %v1472_v20 = vsel %vm5076_vm6, %v4144_v23, %v1466_v18  ;;  %v1473_v21 = vsel %vm297_vm1, %v4148_v25, %v1469_v19 }
 0x73e   : > { %1476 = vst [vmem:[#allocation2 + $0x78] sm:$0xf] %v1472_v20  ;;  %1477 = vst [vmem:[#allocation2 + $0x28] sm:$0xf] %v1473_v21  ;;  %1665 = vrot.lane.b32.xlu0 %v4229_v8, %s3920_s25 }
 0x73f   : > { %v1428_v22 = vpop.permute.xlu1 %1427 }
 0x740   : > { %v1429_v10 = vsel %vm1171_vm2, %v1426_v1, %v1428_v22  ;;  %v1432_v24 = vsel %vm1171_vm2, %v1428_v22, %v1422_v56 }
 0x741   : > { %v1433_v26 = vsel %vm5082_vm13, %v4081_v49, %v1432_v24  ;;  %v1436_v27 = vsel %vm5080_vm3, %v4148_v25, %v1429_v10 }
 0x742   : > { %1438 = vst [vmem:[#allocation2 + $0x40] sm:$0xf] %v1433_v26  ;;  %1441 = vst [vmem:[#allocation2 + $0x38] sm:$0xf] %v1436_v27 }
 0x794   : > { %v1168_v4 = vpop.permute.xlu0 %1167  ;;  %v1213_v28 = vpop.permute.xlu1 %1212 }
 0x795   : > { %v1173_v30 = vsel %vm1171_vm2, %v4237_v3, %v1168_v4  ;;  %v1218_v31 = vsel %vm1216_vm8, %v4123_v13, %v1213_v28 }
 0x796   : > { %v1186_v12 = vsel %vm5081_vm4, %v4183_v32, %v1173_v30  ;;  %v1230_v34 = vsel %vm295_vm14, %v4107_v63, %v1218_v31  ;;  %v1237_v30 = vld [vmem:[%s5069_s3] sm:$0xf]  ;;  %v1685_v31 = vrot.slane %v4261_v59, 4 }
 0x797   : > { %1190 = vst [vmem:[#allocation2 + $0x58] sm:$0xf] %v1186_v12  ;;  %1234 = vst [vmem:[#allocation2 + $0x68] sm:$0xf] %v1230_v34  ;;  %v1686_v12 = vrot.slane %v4220_v46, 4 }
 0x798   : > { %v1215_v36 = vpop.permute.xlu1 %1214 }
 0x799   : > { %v1217_v37 = vsel %vm1216_vm8, %v1213_v28, %v1215_v36 }
 0x79a   : > { %v1231_v39 = vsel %vm5076_vm6, %v4183_v32, %v1217_v37 }
 0x79b   : > { %1235 = vst [vmem:[#allocation2 + $0x8] sm:$0xf] %v1231_v39 }
 0x79c   : > { %v1700_v41 = vpop.permute.xlu0 %1699  ;;  %v1170_v42 = vpop.permute.xlu1 %1169 }
 0x79d   : > { %v1172_v45 = vsel %vm1171_vm2, %v1168_v4, %v1170_v42 }
 0x79e   : > { %v1187_v47 = vsel %vm5080_vm3, %v4196_v38, %v1172_v45  ;;  %v1243_v48 = vld [vmem:[#allocation2 + $0x68] sm:$0xf]  ;;  %v1240_v52 = vld [vmem:[#allocation2 + $0x58] sm:$0xff] }
 0x79f   : > { %1191 = vst [vmem:[#allocation2 + $0x18] sm:$0xf] %v1187_v47  ;;  %3758 = vmatprep.subr.msk.mxu0 %vm5079_vm0, %v1243_v48  ;;  %1695 = vst [vmem:[#allocation2 + $0x58] sm:$0xf0] %v1687_v44  ;;  %v1487_v44 = vld [vmem:[#allocation2 + $0x28] sm:$0xf] }
 0x7a0   : > { %v1209_v55 = vpop.permute.xlu0 %1208  ;;  %v1702_v32 = vpop.permute.xlu1 %1701  ;;  %v1486_v47 = vld [vmem:[#allocation2 + $0x78] sm:$0xf]  ;;  %v1485_v48 = vld [vmem:[#allocation2 + $0x70] sm:$0xf] }
 0x7a1   : > { %v1219_v56 = vsel %vm1216_vm8, %v1209_v55, %v4123_v13  ;;  %v1220_v57 = vsel %vm1216_vm8, %v1215_v36, %v1209_v55  ;;  %v1706_v58 = vsel %vm1216_vm8, %v1700_v41, %v1702_v32  ;;  %v1484_v55 = vld [vmem:[#allocation2 + $0x60] sm:$0xf] }
 0x7a2   : > { %v1229_v33 = vsel %vm294_vm9, %v4203_v40, %v1219_v56  ;;  %v1232_v1 = vsel %vm297_vm1, %v4196_v38, %v1220_v57  ;;  %v1710_v2 = vsel %vm295_vm14, %v4220_v46, %v1706_v58  ;;  %v1244_v10 = vld [vmem:[#allocation2 + $0x8] sm:$0xf]  ;;  %v1482_v57 = vld [vmem:[#allocation2 + $0x10] sm:$0xff]  ;;  %v3764_v58 = vld [vmem:[%s5069_s3 + $0x4] sm:$0xf] }
 0x7a3   : > { %1233 = vst [vmem:[#allocation2 + $0x50] sm:$0xf] %v1229_v33  ;;  %1236 = vst [vmem:[#allocation2 + $0x48] sm:$0xf] %v1232_v1  ;;  %v1481_v1 = vld [vmem:[#allocation2 + $0x20] sm:$0xff] }
 0x7a4   : > { %1714 = vst [vmem:[#allocation2 + $0x68] sm:$0xf] %v1710_v2  ;;  %v1164_v13 = vpop.permute.xlu0 %1163  ;;  %v1664_v7 = vpop.permute.xlu1 %1663 }
 0x7a5   : > { %v1174_v14 = vsel %vm1171_vm2, %v1164_v13, %v4237_v3  ;;  %v1175_v15 = vsel %vm1171_vm2, %v1170_v42, %v1164_v13 }
 0x7a6   : > { %v1184_v38 = vsel %vm5082_vm13, %v4203_v40, %v1175_v15  ;;  %v1185_v17 = vsel %vm291_vm5, %v4107_v63, %v1174_v14  ;;  %v1241_v18 = vld [vmem:[#allocation2 + $0x18] sm:$0xff]  ;;  %v3771_v14 = vld [vmem:[%s5069_s3 + $0x8] sm:$0xf] }
 0x7a7   : > { %1188 = vst [vmem:[#allocation2 + $0x30] sm:$0xf] %v1184_v38  ;;  %1189 = vst [vmem:[#allocation2] sm:$0xf] %v1185_v17 }
 0x7a8   : > { %1696 = vst [vmem:[#allocation2 + $0x18] sm:$0xf0] %v1688_v9  ;;  %v1698_v19 = vpop.permute.xlu0 %1697  ;;  %v1704_v20 = vpop.permute.xlu1 %1703 }
 0x7a9   : > { %v1707_v3 = vsel %vm1216_vm8, %v1698_v19, %v1700_v41  ;;  %v1705_v21 = vsel %vm1216_vm8, %v1702_v32, %v1704_v20  ;;  %v1708_v22 = vsel %vm1216_vm8, %v1704_v20, %v1698_v19 }
 0x7aa   : > { %v1242_v40 = vld [vmem:[#allocation2 + $0x50] sm:$0xf]  ;;  %v1709_v63 = vsel %vm294_vm9, %v4261_v59, %v1707_v3  ;;  %v1245_v24 = vld [vmem:[#allocation2 + $0x48] sm:$0xf]  ;;  %v1711_v26 = vsel %vm5076_vm6, %v4229_v8, %v1705_v21  ;;  %v1712_v27 = vsel %vm297_vm1, %v4266_v60, %v1708_v22  ;;  %vm5078_vm6 = vcmask 97280  }
 0x7ab   : > { %1713 = vst [vmem:[#allocation2 + $0x50] sm:$0xf] %v1709_v63  ;;  %1715 = vst [vmem:[#allocation2 + $0x8] sm:$0xf] %v1711_v26  ;;  %3759 = vmatpush1.msk.msra.mxu0 %vm5079_vm0, %v1242_v40  ;;  %3761 = vmatprep.subr.msk.mxu1 %vm5079_vm0, %v1245_v24  ;;  %v1724_v2 = vld [vmem:[#allocation2 + $0x68] sm:$0xf] }
 0x7ac   : > { %1716 = vst [vmem:[#allocation2 + $0x48] sm:$0xf] %v1712_v27  ;;  %v1662_v4 = vpop.permute.xlu0 %1661  ;;  %3762 = vmatpush1.msk.msra.mxu1 %vm5079_vm0, %v1244_v10  ;;  %v1668_v28 = vpop.permute.xlu1 %1667 }
 0x7ad   : > { %v1671_v34 = vsel %vm1171_vm2, %v1662_v4, %v1664_v7  ;;  %v1672_v36 = vsel %vm1171_vm2, %v1668_v28, %v1662_v4  ;;  %1363 = vmatprep.subr.mxu1 %v1241_v18 }
 0x7ae   : > { %v1238_v37 = vld [vmem:[#allocation2 + $0x30] sm:$0xff]  ;;  %v1239_v39 = vld [vmem:[#allocation2] sm:$0xff]  ;;  %v1674_v41 = vsel %vm291_vm5, %v4220_v46, %v1671_v34  ;;  %v1673_v42 = vsel %vm5082_vm13, %v4261_v59, %v1672_v36  ;;  %1364 = vmatpush1.msra.mxu1 %v1240_v52  ;;  %v1483_v52 = vld [vmem:[#allocation2 + $0x38] sm:$0xff] }
 0x7af   : > { %1693 = vst [vmem:[#allocation2 + $0x30] sm:$0xf0] %v1685_v31  ;;  %1694 = vst [vmem:[#allocation2] sm:$0xf0] %v1686_v12  ;;  %1292 = vmatprep.subr.mxu0 %v1239_v39  ;;  %3763 = vmatmul.mubr.msk.f32.vlgmr.msra.gmra.mxu1 %vm5078_vm6, %v1237_v30 }
 0x7b0   : > { %1678 = vst [vmem:[#allocation2] sm:$0xf] %v1674_v41  ;;  %1677 = vst [vmem:[#allocation2 + $0x30] sm:$0xf] %v1673_v42  ;;  %3768 = vmatprep.subr.msk.mxu1 %vm5079_vm0, %v1487_v44  ;;  %v1666_v45 = vpop.permute.xlu0 %1665  ;;  %1293 = vmatpush1.msra.mxu0 %v1238_v37 }
 0x7b1   : > { %v1669_v46 = vsel %vm1171_vm2, %v1666_v45, %v1668_v28  ;;  %v1670_v59 = vsel %vm1171_vm2, %v1664_v7, %v1666_v45  ;;  %3769 = vmatpush1.msk.msra.mxu1 %vm5079_vm0, %v1486_v47  ;;  %3760 = vmatmul.mubr.msk.f32.vlgmr.msra.gmra.mxu0 %vm5078_vm6, %v1237_v30 }
 0x7b2   : > { %v1675_v32 = vsel %vm5081_vm4, %v4229_v8, %v1670_v59  ;;  %v1676_v56 = vsel %vm5080_vm3, %v4266_v60, %v1669_v46  ;;  %3765 = vmatprep.subr.msk.mxu0 %vm5079_vm0, %v1485_v48  ;;  %1604 = vmatprep.subr.mxu1 %v1483_v52  ;;  %v1725_v8 = vld [vmem:[#allocation2 + $0x8] sm:$0xf]  ;;  %v1480_v60 = vld [vmem:[#allocation2 + $0x40] sm:$0xff]  ;;  %v1723_v7 = vld [vmem:[#allocation2 + $0x50] sm:$0xf] }
 0x7b3   : > { %v1726_v33 = vld [vmem:[#allocation2 + $0x48] sm:$0xf]  ;;  %1679 = vst [vmem:[#allocation2 + $0x58] sm:$0xf] %v1675_v32  ;;  %1680 = vst [vmem:[#allocation2 + $0x18] sm:$0xf] %v1676_v56  ;;  %3766 = vmatpush1.msk.msra.mxu0 %vm5079_vm0, %v1484_v55  ;;  %1605 = vmatpush1.msra.mxu1 %v1482_v57 }
 0x7b4   : > { %1638 = vmatprep.mubr.f32.mxu1 %v3914_v0  ;;  %1533 = vmatprep.subr.mxu0 %v1481_v1 }
 0x7b5   : > { %3770 = vmatmul.mubr.msk.f32.vlgmr.msra.gmra.mxu1 %vm5078_vm6, %v3764_v58  ;;  %3775 = vmatprep.subr.msk.mxu1 %vm5079_vm0, %v1726_v33 }
 0x7b6   : > { %1534 = vmatpush1.msra.mxu0 %v1480_v60  ;;  %1567 = vmatprep.mubr.f32.mxu0 %v3914_v0 }
 0x7b7   : > { %3776 = vmatpush1.msk.msra.mxu1 %vm5079_vm0, %v1725_v8  ;;  %3767 = vmatmul.mubr.msk.f32.vlgmr.msra.gmra.mxu0 %vm5078_vm6, %v3764_v58  ;;  %v1720_v13 = vld [vmem:[#allocation2] sm:$0xff]  ;;  %v1719_v9 = vld [vmem:[#allocation2 + $0x30] sm:$0xff] }
 0x7b8   : > { %3772 = vmatprep.subr.msk.mxu0 %vm5079_vm0, %v1724_v2  ;;  %1806 = vmatprep.mubr.f32.mxu0 %v3914_v0 }
 0x7b9   : > { %3773 = vmatpush1.msk.msra.mxu0 %vm5079_vm0, %v1723_v7  ;;  %1877 = vmatprep.mubr.f32.mxu1 %v3914_v0 }
 0x7ba   : > { %1772 = vmatprep.subr.mxu0 %v1720_v13  ;;  %v1722_v15 = vld [vmem:[#allocation2 + $0x18] sm:$0xff] }
 0x7bb   : > { %v1721_v38 = vld [vmem:[#allocation2 + $0x58] sm:$0xff]  ;;  %1773 = vmatpush1.msra.mxu0 %v1719_v9  ;;  %1843 = vmatprep.subr.mxu1 %v1722_v15 }
 0x7bc   : > { %3774 = vmatmul.mubr.msk.f32.vlgmr.msra.gmra.mxu0 %vm5078_vm6, %v3771_v14  ;;  %1844 = vmatpush1.msra.mxu1 %v1721_v38 }
 0x7bd   : > { %3777 = vmatmul.mubr.msk.f32.vlgmr.msra.gmra.mxu1 %vm5078_vm6, %v3771_v14  ;;  %2097 = vmatprep.mubr.f32.mxu0 %v3914_v0  ;;  %vm5092_vm6 = vcmp.eq.s32.totalorder %v4239_v53, 15 }
 0x7be   : > { %2168 = vmatprep.mubr.f32.mxu1 %v3914_v0 }
 0x86f   : > { %v1399_v17 = vpop.f32.mrf.mxu1 }
 0x870   : > { %v1411_v40 = vrot.slane %v1399_v17, 6 }
 0x871   : > { %v1328_v18 = vpop.f32.mrf.mxu0  ;;  %v1401_v19 = vpop.f32.mrf.mxu1 }
 0x872   : > { %v1409_v21 = vrot.slane %v1328_v18, 6  ;;  %v1412_v27 = vrot.slane %v1401_v19, 6  ;;  %v1419_v31 = vadd.f32 %v1411_v40, %v4071_v11 }
 0x873   : > { %v1330_v20 = vpop.f32.mrf.mxu0 }
 0x874   : > { %v1410_v63 = vrot.slane %v1330_v20, 6  ;;  %v1417_v28 = vadd.f32 %v1409_v21, %v4071_v11  ;;  %v1420_v42 = vadd.f32 %v1412_v27, %v4071_v11 }
 0x875   : > { %v1640_v3 = vpop.f32.mrf.mxu1 }
 0x876   : > { %v1651_v4 = vrot.slane %v1640_v3, 6  ;;  %v1418_v36 = vadd.f32 %v1410_v63, %v4071_v11 }
 0x877   : > { %v1569_v22 = vpop.f32.mrf.mxu0  ;;  %v1642_v24 = vpop.f32.mrf.mxu1 }
 0x878   : > { %v1649_v10 = vrot.slane %v1569_v22, 6  ;;  %v1652_v12 = vrot.slane %v1642_v24, 6  ;;  %v1659_v44 = vadd.f32 %v1651_v4, %v1419_v31 }
 0x879   : > { %v1571_v26 = vpop.f32.mrf.mxu0 }
 0x87a   : > { %v1650_v30 = vrot.slane %v1571_v26, 6  ;;  %v1657_v37 = vadd.f32 %v1649_v10, %v1417_v28  ;;  %v1660_v55 = vadd.f32 %v1652_v12, %v1420_v42 }
 0x87c   : > { %v1808_v34 = vpop.f32.mrf.mxu0  ;;  %v1658_v46 = vadd.f32 %v1650_v30, %v1418_v36 }
 0x87d   : > { %v1888_v39 = vrot.slane %v1808_v34, 6  ;;  %v1879_v41 = vpop.f32.mrf.mxu1 }
 0x87e   : > { %v1810_v45 = vpop.f32.mrf.mxu0  ;;  %v1890_v47 = vrot.slane %v1879_v41, 6 }
 0x87f   : > { %v1896_v59 = vadd.f32 %v1888_v39, %v1657_v37  ;;  %v1889_v48 = vrot.slane %v1810_v45, 6  ;;  %v1881_v52 = vpop.f32.mrf.mxu1 }
 0x880   : > { %v1898_v32 = vadd.f32 %v1890_v47, %v1659_v44  ;;  %v1891_v56 = vrot.slane %v1881_v52, 6 }
 0x881   : > { %v1900_v57 = vmax.f32 %v1896_v59, 0.0  ;;  %v1897_v58 = vadd.f32 %v1889_v48, %v1658_v46 }
 0x882   : > { %v1902_v33 = vmax.f32 %v1898_v32, 0.0  ;;  %v1899_v1 = vadd.f32 %v1891_v56, %v1660_v55 }
 0x883   : > { %v1908_v8 = vrot.slane %v1900_v57, 2  ;;  %v1901_v60 = vmax.f32 %v1897_v58, 0.0 }
 0x884   : > { %v1910_v2 = vrot.slane %v1902_v33, 2  ;;  %v1903_v13 = vmax.f32 %v1899_v1, 0.0 }
 0x885   : > { %v4446_v7 = vadd.f32 %v1908_v8, %v4081_v49  ;;  %v1909_v9 = vrot.slane %v1901_v60, 2 }
 0x886   : > { %v4449_v14 = vadd.f32 %v1910_v2, %v4144_v23  ;;  %v1911_v15 = vrot.slane %v1903_v13, 2 }
 0x887   : > { %v4452_v38 = vadd.f32 %v1909_v9, %v4084_v50  ;;  %v2224_v17 = vrot.slane %v4446_v7, 4 }
 0x888   : > { %v4456_v18 = vadd.f32 %v1911_v15, %v4148_v25  ;;  %1924 = vrot.lane.b32.xlu1 %v4449_v14, %s3917_s19  ;;  %v2226_v19 = vrot.slane %v4449_v14, 4 }
 0x889   : > { %1922 = vrot.lane.b32.xlu0 %v4452_v38, %s3917_s19  ;;  %v2225_v49 = vrot.slane %v4452_v38, 4  ;;  %2232 = vst [vmem:[#allocation2 + $0x40] sm:$0xf0] %v2224_v17 }
 0x88a   : > { %v2227_v23 = vrot.slane %v4456_v18, 4  ;;  %2234 = vst [vmem:[#allocation2 + $0x10] sm:$0xf0] %v2226_v19 }
 0x88b   : > { %2233 = vst [vmem:[#allocation2 + $0x20] sm:$0xf0] %v2225_v49 }
 0x88c   : > { %1926 = vrot.lane.b32.xlu1 %v4456_v18, %s3917_s19  ;;  %2235 = vst [vmem:[#allocation2 + $0x38] sm:$0xf0] %v2227_v23 }
 0x88d   : > { %1920 = vrot.lane.b32.xlu0 %v4446_v7, %s3917_s19 }
 0x890   : > { %1940 = vrot.lane.b32.xlu1 %v4449_v14, %s3918_s20 }
 0x891   : > { %1938 = vrot.lane.b32.xlu0 %v4452_v38, %s3918_s20 }
 0x894   : > { %1942 = vrot.lane.b32.xlu1 %v4456_v18, %s3918_s20 }
 0x895   : > { %1936 = vrot.lane.b32.xlu0 %v4446_v7, %s3918_s20 }
 0x898   : > { %2240 = vrot.lane.b32.xlu1 %v4449_v14, %s3919_s24 }
 0x899   : > { %2238 = vrot.lane.b32.xlu0 %v4452_v38, %s3919_s24 }
 0x89c   : > { %2202 = vrot.lane.b32.xlu1 %v4452_v38, %s3920_s25 }
 0x89d   : > { %2236 = vrot.lane.b32.xlu0 %v4446_v7, %s3919_s24 }
 0x8a0   : > { %2242 = vrot.lane.b32.xlu1 %v4456_v18, %s3919_s24 }
 0x8a1   : > { %2200 = vrot.lane.b32.xlu0 %v4446_v7, %s3920_s25 }
 0x8a4   : > { %2206 = vrot.lane.b32.xlu1 %v4456_v18, %s3920_s25 }
 0x8a5   : > { %2204 = vrot.lane.b32.xlu0 %v4449_v14, %s3920_s25 }
 0x8fa   : > { %v1925_v50 = vpop.permute.xlu1 %1924 }
 0x8fb   : > { %v1923_v25 = vpop.permute.xlu0 %1922 }
 0x8fc   : > { %v1929_v20 = vsel %vm5077_vm7, %v1923_v25, %v1925_v50 }
 0x8fd   : > { %v4498_v3 = vsel %vm4173_vm10, %v4449_v14, %v1929_v20 }
 0x8fe   : > { %v1978_v21 = vrot.slane %v4498_v3, 4  ;;  %v1927_v22 = vpop.permute.xlu1 %1926 }
 0x8ff   : > { %v1921_v40 = vpop.permute.xlu0 %1920  ;;  %v4503_v63 = vsel %vm5077_vm7, %v1925_v50, %v1927_v22 }
 0x900   : > { %1986 = vst [vmem:[#allocation2 + $0x58] sm:$0xf0] %v1978_v21  ;;  %v4507_v10 = vsel %vm5077_vm7, %v1921_v40, %v1923_v25  ;;  %v1931_v24 = vsel %vm5077_vm7, %v1927_v22, %v1921_v40  ;;  %v1979_v26 = vrot.slane %v4503_v63, 4  ;;  %vm5091_vm7 = vcmp.lt.s32.totalorder %v4102_v61, 112  ;;  %v300_v25 = vld [vmem:[%s5071_s5 + $0x10] sm:$0xff] }
 0x901   : > { %v1977_v27 = vrot.slane %v4507_v10, 4  ;;  %v4516_v4 = vsel %vm4190_vm11, %v4446_v7, %v1931_v24  ;;  %1954 = vrot.lane.b32.xlu1 %v4507_v10, %s3920_s25  ;;  %1990 = vrot.lane.b32.xlu0 %v4507_v10, %s3919_s24  ;;  %vm5093_vm0 = vmmov %vm5091_vm7 }
 0x902   : > { %v1976_v28 = vrot.slane %v4516_v4, 4  ;;  %1987 = vst [vmem:[#allocation2 + $0x18] sm:$0xf0] %v1979_v26  ;;  %v1941_v30 = vpop.permute.xlu1 %1940 }
 0x903   : > { %1985 = vst [vmem:[#allocation2] sm:$0xf0] %v1977_v27  ;;  %v1939_v31 = vpop.permute.xlu0 %1938 }
 0x904   : > { %1984 = vst [vmem:[#allocation2 + $0x30] sm:$0xf0] %v1976_v28  ;;  %v1945_v12 = vsel %vm5091_vm7, %v1939_v31, %v1941_v30 }
 0x905   : > { %1992 = vrot.lane.b32.xlu1 %v4498_v3, %s3919_s24  ;;  %1956 = vrot.lane.b32.xlu0 %v4498_v3, %s3920_s25  ;;  %v4532_v34 = vsel %vm4209_vm12, %v4452_v38, %v1945_v12 }
 0x906   : > { %v1943_v36 = vpop.permute.xlu1 %1942 }
 0x907   : > { %v1937_v37 = vpop.permute.xlu0 %1936  ;;  %v4549_v46 = vsel %vm5091_vm7, %v1941_v30, %v1943_v36 }
 0x908   : > { %v4566_v57 = vsel %vm5091_vm7, %v1937_v37, %v1939_v31  ;;  %v1947_v8 = vsel %vm5093_vm0, %v1943_v36, %v1937_v37  ;;  %vm5094_vm0 = vmmov %vm5092_vm6 }
 0x909   : > { %1994 = vrot.lane.b32.xlu1 %v4503_v63, %s3919_s24  ;;  %2481 = vrot.lane.b32.xlu0 %v4532_v34, %s3919_s24  ;;  %v4590_v15 = vsel %vm4242_vm15, %v4456_v18, %v1947_v8 }
 0x90a   : > { %v2241_v39 = vpop.permute.xlu1 %2240 }
 0x90b   : > { %v2239_v41 = vpop.permute.xlu0 %2238 }
 0x90c   : > { %v2245_v42 = vsel %vm1216_vm8, %v2239_v41, %v2241_v39 }
 0x90d   : > { %v2249_v44 = vsel %vm295_vm14, %v4452_v38, %v2245_v42  ;;  %1958 = vrot.lane.b32.xlu1 %v4503_v63, %s3920_s25  ;;  %1988 = vrot.lane.b32.xlu0 %v4516_v4, %s3919_s24 }
 0x90e   : > { %2253 = vst [vmem:[#allocation2 + $0x70] sm:$0xf] %v2249_v44  ;;  %v2203_v45 = vpop.permute.xlu1 %2202 }
 0x90f   : > { %v2237_v47 = vpop.permute.xlu0 %2236 }
 0x910   : > { %v2246_v59 = vsel %vm1216_vm8, %v2237_v47, %v2239_v41  ;;  %v2469_v41 = vrot.slane %v4549_v46, 4 }
 0x911   : > { %v2248_v48 = vsel %vm294_vm9, %v4446_v7, %v2246_v59  ;;  %2483 = vrot.lane.b32.xlu1 %v4549_v46, %s3919_s24  ;;  %1952 = vrot.lane.b32.xlu0 %v4516_v4, %s3920_s25 }
 0x912   : > { %2252 = vst [vmem:[#allocation2 + $0x60] sm:$0xf] %v2248_v48  ;;  %v2243_v52 = vpop.permute.xlu1 %2242 }
 0x913   : > { %v2201_v55 = vpop.permute.xlu0 %2200  ;;  %v2244_v32 = vsel %vm1216_vm8, %v2241_v39, %v2243_v52  ;;  %v2247_v56 = vsel %vm1216_vm8, %v2243_v52, %v2237_v47 }
 0x914   : > { %v2210_v58 = vsel %vm1171_vm2, %v2201_v55, %v2203_v45  ;;  %v2250_v33 = vsel %vm5092_vm6, %v4449_v14, %v2244_v32  ;;  %v2251_v1 = vsel %vm297_vm1, %v4456_v18, %v2247_v56  ;;  %vm5095_vm6 = vcmask 1043456  }
 0x915   : > { %v2213_v60 = vsel %vm291_vm5, %v4452_v38, %v2210_v58  ;;  %2254 = vst [vmem:[#allocation2 + $0x78] sm:$0xf] %v2250_v33  ;;  %2255 = vst [vmem:[#allocation2 + $0x28] sm:$0xf] %v2251_v1  ;;  %2445 = vrot.lane.b32.xlu1 %v4532_v34, %s3920_s25  ;;  %2479 = vrot.lane.b32.xlu0 %v4566_v57, %s3919_s24 }
 0x916   : > { %2217 = vst [vmem:[#allocation2 + $0x20] sm:$0xf] %v2213_v60  ;;  %v2207_v2 = vpop.permute.xlu1 %2206  ;;  %vm5096_vm7 = vmmov %vm5095_vm6 }
 0x917   : > { %v2205_v13 = vpop.permute.xlu0 %2204  ;;  %v2211_v9 = vsel %vm1171_vm2, %v2207_v2, %v2201_v55 }
 0x918   : > { %v2209_v17 = vsel %vm1171_vm2, %v2203_v45, %v2205_v13  ;;  %v2208_v19 = vsel %vm1171_vm2, %v2205_v13, %v2207_v2  ;;  %v2212_v49 = vsel %vm5082_vm13, %v4446_v7, %v2211_v9  ;;  %v2470_v13 = vrot.slane %v4590_v15, 4 }
 0x919   : > { %v2214_v23 = vsel %vm5081_vm4, %v4449_v14, %v2209_v17  ;;  %v2215_v50 = vsel %vm5080_vm3, %v4456_v18, %v2208_v19  ;;  %2216 = vst [vmem:[#allocation2 + $0x40] sm:$0xf] %v2212_v49  ;;  %2485 = vrot.lane.b32.xlu1 %v4590_v15, %s3919_s24  ;;  %2443 = vrot.lane.b32.xlu0 %v4566_v57, %s3920_s25 }
 0x91a   : > { %2218 = vst [vmem:[#allocation2 + $0x10] sm:$0xf] %v2214_v23  ;;  %2219 = vst [vmem:[#allocation2 + $0x38] sm:$0xf] %v2215_v50  ;;  %v2468_v23 = vrot.slane %v4532_v34, 4 }
 0x91d   : > { %2449 = vrot.lane.b32.xlu1 %v4590_v15, %s3920_s25  ;;  %2447 = vrot.lane.b32.xlu0 %v4549_v46, %s3920_s25 }
 0x921   : > { %2177 = vperm.xlu0 %3876, %v300_v25  }
 0x973   : > { %v1955_v20 = vpop.permute.xlu1 %1954  ;;  %v1991_v21 = vpop.permute.xlu0 %1990 }
 0x977   : > { %v1993_v22 = vpop.permute.xlu1 %1992  ;;  %v1957_v40 = vpop.permute.xlu0 %1956 }
 0x978   : > { %v1997_v24 = vsel %vm1216_vm8, %v1991_v21, %v1993_v22  ;;  %v1961_v26 = vsel %vm1171_vm2, %v1955_v20, %v1957_v40 }
 0x979   : > { %v2001_v27 = vsel %vm295_vm14, %v4507_v10, %v1997_v24  ;;  %v1966_v28 = vsel %vm5081_vm4, %v4498_v3, %v1961_v26 }
 0x97a   : > { %2005 = vst [vmem:[#allocation2 + $0x68] sm:$0xf] %v2001_v27  ;;  %1970 = vst [vmem:[#allocation2 + $0x58] sm:$0xf] %v1966_v28 }
 0x97b   : > { %v1995_v30 = vpop.permute.xlu1 %1994  ;;  %v2482_v31 = vpop.permute.xlu0 %2481 }
 0x97c   : > { %v1996_v12 = vsel %vm1216_vm8, %v1993_v22, %v1995_v30 }
 0x97d   : > { %v2002_v36 = vsel %vm5094_vm0, %v4498_v3, %v1996_v12  ;;  %vm5097_vm0 = vmmov %vm5095_vm6  ;;  %v2265_v12 = vld [vmem:[#allocation2 + $0x28] sm:$0xf] }
 0x97e   : > { %2006 = vst [vmem:[#allocation2 + $0x8] sm:$0xf] %v2002_v36 }
 0x97f   : > { %v1959_v37 = vpop.permute.xlu1 %1958  ;;  %v1989_v39 = vpop.permute.xlu0 %1988 }
 0x980   : > { %v1960_v42 = vsel %vm1171_vm2, %v1957_v40, %v1959_v37  ;;  %v1998_v44 = vsel %vm1216_vm8, %v1989_v39, %v1991_v21  ;;  %v1999_v45 = vsel %vm1216_vm8, %v1995_v30, %v1989_v39  ;;  %v2467_v21 = vrot.slane %v4566_v57, 4 }
 0x981   : > { %v1967_v47 = vsel %vm5080_vm3, %v4503_v63, %v1960_v42  ;;  %v2000_v3 = vsel %vm294_vm9, %v4516_v4, %v1998_v44  ;;  %v2003_v59 = vsel %vm297_vm1, %v4503_v63, %v1999_v45  ;;  %v2015_v48 = vld [vmem:[#allocation2 + $0x68] sm:$0xf]  ;;  %v2012_v52 = vld [vmem:[#allocation2 + $0x58] sm:$0xff]  ;;  %v2263_v44 = vld [vmem:[#allocation2 + $0x70] sm:$0xf] }
 0x982   : > { %1971 = vst [vmem:[#allocation2 + $0x18] sm:$0xf] %v1967_v47  ;;  %2004 = vst [vmem:[#allocation2 + $0x50] sm:$0xf] %v2000_v3  ;;  %3779 = vmatprep.subr.msk.mxu0 %vm5095_vm6, %v2015_v48  ;;  %v2261_v45 = vld [vmem:[#allocation2 + $0x38] sm:$0xff] }
 0x983   : > { %2007 = vst [vmem:[#allocation2 + $0x48] sm:$0xf] %v2003_v59  ;;  %2477 = vst [vmem:[#allocation2 + $0x58] sm:$0xf0] %v2469_v41  ;;  %v2484_v55 = vpop.permute.xlu1 %2483  ;;  %v1953_v32 = vpop.permute.xlu0 %1952  ;;  %v2262_v48 = vld [vmem:[#allocation2 + $0x60] sm:$0xf] }
 0x984   : > { %v2488_v56 = vsel %vm1216_vm8, %v2482_v31, %v2484_v55  ;;  %v1962_v58 = vsel %vm1171_vm2, %v1953_v32, %v1955_v20  ;;  %v1963_v33 = vsel %vm1171_vm2, %v1959_v37, %v1953_v32  ;;  %vm5098_vm6 = vmmov %vm5097_vm0  ;;  %v3778_v20 = vld [vmem:[%s5069_s3 + $0xc] sm:$0xf]  ;;  %v2264_v37 = vld [vmem:[#allocation2 + $0x78] sm:$0xf] }
 0x985   : > { %v2492_v63 = vsel %vm295_vm14, %v4532_v34, %v2488_v56  ;;  %v1964_v1 = vsel %vm5082_vm13, %v4516_v4, %v1963_v33  ;;  %v1965_v8 = vsel %vm291_vm5, %v4507_v10, %v1962_v58  ;;  %v2016_v10 = vld [vmem:[#allocation2 + $0x8] sm:$0xf] }
 0x986   : > { %2496 = vst [vmem:[#allocation2 + $0x68] sm:$0xf] %v2492_v63  ;;  %1968 = vst [vmem:[#allocation2 + $0x30] sm:$0xf] %v1964_v1  ;;  %v3792_v63 = vld [vmem:[%s5069_s3 + $0x14] sm:$0xf] }
 0x987   : > { %1969 = vst [vmem:[#allocation2] sm:$0xf] %v1965_v8  ;;  %v2446_v60 = vpop.permute.xlu1 %2445  ;;  %v2480_v2 = vpop.permute.xlu0 %2479 }
 0x988   : > { %v2489_v9 = vsel %vm1216_vm8, %v2480_v2, %v2482_v31 }
 0x989   : > { %v2491_v17 = vsel %vm294_vm9, %v4566_v57, %v2489_v9  ;;  %v2014_v19 = vld [vmem:[#allocation2 + $0x50] sm:$0xf]  ;;  %v2013_v49 = vld [vmem:[#allocation2 + $0x18] sm:$0xff] }
 0x98a   : > { %v2017_v4 = vld [vmem:[#allocation2 + $0x48] sm:$0xf]  ;;  %3780 = vmatpush1.msk.msra.mxu0 %vm5096_vm7, %v2014_v19  ;;  %2495 = vst [vmem:[#allocation2 + $0x50] sm:$0xf] %v2491_v17  ;;  %2478 = vst [vmem:[#allocation2 + $0x18] sm:$0xf0] %v2470_v13 }
 0x98b   : > { %3782 = vmatprep.subr.msk.mxu1 %vm5097_vm0, %v2017_v4  ;;  %v2486_v50 = vpop.permute.xlu1 %2485  ;;  %v2444_v25 = vpop.permute.xlu0 %2443  ;;  %vm5099_vm7 = vcmp.eq.s32.totalorder %v4239_v53, 15  ;;  %vm5100_vm0 = vcmask 97280  }
 0x98c   : > { %3783 = vmatpush1.msk.msra.mxu1 %vm5098_vm6, %v2016_v10  ;;  %v2487_v22 = vsel %vm1216_vm8, %v2484_v55, %v2486_v50  ;;  %v2490_v40 = vsel %vm1216_vm8, %v2486_v50, %v2480_v2  ;;  %v2453_v24 = vsel %vm1171_vm2, %v2444_v25, %v2446_v60  ;;  %v3785_v55 = vld [vmem:[%s5069_s3 + $0x10] sm:$0xf] }
 0x98d   : > { %2134 = vmatprep.subr.mxu1 %v2013_v49  ;;  %v2493_v26 = vsel %vm5099_vm7, %v4549_v46, %v2487_v22  ;;  %v2494_v27 = vsel %vm297_vm1, %v4590_v15, %v2490_v40  ;;  %v2456_v30 = vsel %vm291_vm5, %v4532_v34, %v2453_v24  ;;  %v2010_v31 = vld [vmem:[#allocation2 + $0x30] sm:$0xff]  ;;  %vm5101_vm7 = vmmov %vm5098_vm6 }
 0x98e   : > { %v2011_v28 = vld [vmem:[#allocation2] sm:$0xff]  ;;  %2135 = vmatpush1.msra.mxu1 %v2012_v52  ;;  %2498 = vst [vmem:[#allocation2 + $0x48] sm:$0xf] %v2494_v27  ;;  %2497 = vst [vmem:[#allocation2 + $0x8] sm:$0xf] %v2493_v26  ;;  %v2260_v52 = vld [vmem:[#allocation2 + $0x10] sm:$0xff] }
 0x98f   : > { %2476 = vst [vmem:[#allocation2] sm:$0xf0] %v2468_v23  ;;  %2460 = vst [vmem:[#allocation2] sm:$0xf] %v2456_v30  ;;  %2063 = vmatprep.subr.mxu0 %v2011_v28  ;;  %3784 = vmatmul.mubr.msk.f32.vlgmr.msra.gmra.mxu1 %vm5100_vm0, %v3778_v20  ;;  %v2450_v36 = vpop.permute.xlu1 %2449  ;;  %v2448_v39 = vpop.permute.xlu0 %2447 }
 0x990   : > { %2475 = vst [vmem:[#allocation2 + $0x30] sm:$0xf0] %v2467_v21  ;;  %3789 = vmatprep.subr.msk.mxu1 %vm5098_vm6, %v2265_v12  ;;  %2064 = vmatpush1.msra.mxu0 %v2010_v31  ;;  %v2454_v34 = vsel %vm1171_vm2, %v2450_v36, %v2444_v25  ;;  %v2451_v41 = vsel %vm1171_vm2, %v2448_v39, %v2450_v36 }
 0x991   : > { %3790 = vmatpush1.msk.msra.mxu1 %vm5101_vm7, %v2264_v37  ;;  %v2452_v42 = vsel %vm1171_vm2, %v2446_v60, %v2448_v39  ;;  %3781 = vmatmul.mubr.msk.f32.vlgmr.msra.gmra.mxu0 %vm5100_vm0, %v3778_v20  ;;  %v2455_v47 = vsel %vm5082_vm13, %v4566_v57, %v2454_v34  ;;  %v2458_v59 = vsel %vm5080_vm3, %v4590_v15, %v2451_v41  ;;  %vm5102_vm7 = vmmov %vm5098_vm6  ;;  %v2258_v57 = vld [vmem:[#allocation2 + $0x40] sm:$0xff]  ;;  %v2506_v15 = vld [vmem:[#allocation2 + $0x68] sm:$0xf] }
 0x992   : > { %v2457_v3 = vsel %vm5081_vm4, %v4549_v46, %v2452_v42  ;;  %3786 = vmatprep.subr.msk.mxu0 %vm5098_vm6, %v2263_v44  ;;  %2382 = vmatprep.subr.mxu1 %v2261_v45  ;;  %2459 = vst [vmem:[#allocation2 + $0x30] sm:$0xf] %v2455_v47  ;;  %2462 = vst [vmem:[#allocation2 + $0x18] sm:$0xf] %v2458_v59  ;;  %v2259_v46 = vld [vmem:[#allocation2 + $0x20] sm:$0xff] }
 0x993   : > { %2461 = vst [vmem:[#allocation2 + $0x58] sm:$0xf] %v2457_v3  ;;  %3787 = vmatpush1.msk.msra.mxu0 %vm5102_vm7, %v2262_v48  ;;  %2383 = vmatpush1.msra.mxu1 %v2260_v52  ;;  %vm5103_vm3 = vmmov %vm5100_vm0  ;;  %v2505_v33 = vld [vmem:[#allocation2 + $0x50] sm:$0xf] }
 0x994   : > { %2416 = vmatprep.mubr.f32.mxu1 %v3914_v0  ;;  %2311 = vmatprep.subr.mxu0 %v2259_v46  ;;  %vm5104_vm7 = vmmov %vm5098_vm6 }
 0x995   : > { %3791 = vmatmul.mubr.msk.f32.vlgmr.msra.gmra.mxu1 %vm5100_vm0, %v3785_v55  ;;  %2312 = vmatpush1.msra.mxu0 %v2258_v57  ;;  %v2508_v56 = vld [vmem:[#allocation2 + $0x48] sm:$0xf]  ;;  %vm5105_vm4 = vmmov %vm5098_vm6 }
 0x996   : > { %2345 = vmatprep.mubr.f32.mxu0 %v3914_v0  ;;  %3793 = vmatprep.subr.msk.mxu0 %vm5098_vm6, %v2506_v15  ;;  %v2502_v32 = vld [vmem:[#allocation2] sm:$0xff]  ;;  %v2507_v58 = vld [vmem:[#allocation2 + $0x8] sm:$0xf]  ;;  %vm5106_vm13 = vmmov %vm5105_vm4 }
 0x997   : > { %3788 = vmatmul.mubr.msk.f32.vlgmr.msra.gmra.mxu0 %vm5103_vm3, %v3785_v55  ;;  %3796 = vmatprep.subr.msk.mxu1 %vm5104_vm7, %v2508_v56  ;;  %vm5107_vm3 = vmmov %vm5100_vm0 }
 0x998   : > { %3794 = vmatpush1.msk.msra.mxu0 %vm5105_vm4, %v2505_v33  ;;  %3797 = vmatpush1.msk.msra.mxu1 %vm5106_vm13, %v2507_v58  ;;  %vm5108_vm4 = vmmov %vm5100_vm0  ;;  %vm5109_vm13 = vcmask 1041408  }
 0x999   : > { %2554 = vmatprep.subr.mxu0 %v2502_v32  ;;  %2588 = vmatprep.mubr.f32.mxu0 %v3914_v0  ;;  %v2501_v1 = vld [vmem:[#allocation2 + $0x30] sm:$0xff]  ;;  %v2504_v8 = vld [vmem:[#allocation2 + $0x18] sm:$0xff]  ;;  %vm5110_vm0 = vmmov %vm5109_vm13 }
 0x99a   : > { %v2503_v60 = vld [vmem:[#allocation2 + $0x58] sm:$0xff]  ;;  %2659 = vmatprep.mubr.f32.mxu1 %v3914_v0  ;;  %2555 = vmatpush1.msra.mxu0 %v2501_v1  ;;  %vm5111_vm6 = vmmov %vm5110_vm0 }
 0x99b   : > { %2625 = vmatprep.subr.mxu1 %v2504_v8  ;;  %3795 = vmatmul.mubr.msk.f32.vlgmr.msra.gmra.mxu0 %vm5107_vm3, %v3792_v63  ;;  %vm5112_vm7 = vmmov %vm5110_vm0  ;;  %vm5113_vm3 = vcmp.lt.s32.totalorder %v4102_v61, 16 }
 0x99c   : > { %2626 = vmatpush1.msra.mxu1 %v2503_v60  ;;  %2899 = vmatprep.mubr.f32.mxu0 %v3914_v0  ;;  %v4733_v40 = vpop.permute.xlu0 %2177 }
 0x99d   : > { %3798 = vmatmul.mubr.msk.f32.vlgmr.msra.gmra.mxu1 %vm5108_vm4, %v3792_v63  ;;  %vm5114_vm4 = vmmov %vm5113_vm3 }
 0x99e   : > { %2970 = vmatprep.mubr.f32.mxu1 %v3914_v0 }
 0xa4f   : > { %v2170_v2 = vpop.f32.mrf.mxu1 }
 0xa50   : > { %v2186_v4 = vrot.slane %v2170_v2, 2 }
 0xa51   : > { %v2099_v13 = vpop.f32.mrf.mxu0  ;;  %v2172_v9 = vpop.f32.mrf.mxu1 }
 0xa52   : > { %v2184_v49 = vrot.slane %v2099_v13, 2  ;;  %v2187_v50 = vrot.slane %v2172_v9, 2  ;;  %v2194_v24 = vadd.f32 %v2186_v4, %v4071_v11  ;;  %v2198_v27 = vadd.f32 %v2186_v4, %v4733_v40 }
 0xa53   : > { %v2101_v17 = vpop.f32.mrf.mxu0 }
 0xa54   : > { %v2185_v25 = vrot.slane %v2101_v17, 2  ;;  %v2192_v28 = vadd.f32 %v2184_v49, %v4071_v11  ;;  %v2196_v30 = vadd.f32 %v2184_v49, %v4733_v40  ;;  %v2195_v12 = vadd.f32 %v2187_v50, %v4071_v11 }
 0xa55   : > { %v2418_v19 = vpop.f32.mrf.mxu1  ;;  %v2199_v36 = vadd.f32 %v2187_v50, %v4733_v40 }
 0xa56   : > { %v2429_v20 = vrot.slane %v2418_v19, 2  ;;  %v2193_v37 = vadd.f32 %v2185_v25, %v4071_v11  ;;  %v2197_v39 = vadd.f32 %v2185_v25, %v4733_v40 }
 0xa57   : > { %v2347_v10 = vpop.f32.mrf.mxu0  ;;  %v2420_v23 = vpop.f32.mrf.mxu1 }
 0xa58   : > { %v2427_v21 = vrot.slane %v2347_v10, 2  ;;  %v2430_v26 = vrot.slane %v2420_v23, 2  ;;  %v2437_v41 = vadd.f32 %v2429_v20, %v2194_v24  ;;  %v2441_v3 = vadd.f32 %v2429_v20, %v2198_v27 }
 0xa59   : > { %v2349_v22 = vpop.f32.mrf.mxu0 }
 0xa5a   : > { %v2428_v31 = vrot.slane %v2349_v22, 2  ;;  %v2435_v42 = vadd.f32 %v2427_v21, %v2192_v28  ;;  %v2439_v44 = vadd.f32 %v2427_v21, %v2196_v30  ;;  %v2438_v59 = vadd.f32 %v2430_v26, %v2195_v12 }
 0xa5b   : > { %v2590_v34 = vpop.f32.mrf.mxu0  ;;  %v2442_v58 = vadd.f32 %v2430_v26, %v2199_v36 }
 0xa5c   : > { %v2670_v45 = vrot.slane %v2590_v34, 2  ;;  %v2436_v48 = vadd.f32 %v2428_v31, %v2193_v37  ;;  %v2440_v46 = vadd.f32 %v2428_v31, %v2197_v39 }
 0xa5d   : > { %v2661_v47 = vpop.f32.mrf.mxu1  ;;  %v2592_v55 = vpop.f32.mrf.mxu0 }
 0xa5e   : > { %v2672_v52 = vrot.slane %v2661_v47, 2  ;;  %v2678_v57 = vadd.f32 %v2670_v45, %v2435_v42  ;;  %v2682_v15 = vadd.f32 %v2670_v45, %v2439_v44  ;;  %v2671_v32 = vrot.slane %v2592_v55, 2 }
 0xa5f   : > { %v2663_v56 = vpop.f32.mrf.mxu1 }
 0xa60   : > { %v2680_v11 = vadd.f32 %v2672_v52, %v2437_v41  ;;  %v2684_v33 = vadd.f32 %v2672_v52, %v2441_v3  ;;  %v2673_v63 = vrot.slane %v2663_v56, 2  ;;  %v2686_v1 = vmax.f32 %v2678_v57, 0.0 }
 0xa61   : > { %v2690_v8 = vmax.f32 %v2682_v15, 0.0  ;;  %v2679_v60 = vadd.f32 %v2671_v32, %v2436_v48  ;;  %v2683_v2 = vadd.f32 %v2671_v32, %v2440_v46 }
 0xa62   : > { %v2688_v13 = vmax.f32 %v2680_v11, 0.0  ;;  %v2692_v9 = vmax.f32 %v2684_v33, 0.0  ;;  %v2681_v17 = vadd.f32 %v2673_v63, %v2438_v59  ;;  %v2685_v19 = vadd.f32 %v2673_v63, %v2442_v58 }
 0xa63   : > { %v2702_v4 = vrot.slane %v2686_v1, 6  ;;  %v2703_v49 = vrot.slane %v2690_v8, 6  ;;  %v2687_v10 = vmax.f32 %v2679_v60, 0.0  ;;  %v2691_v23 = vmax.f32 %v2683_v2, 0.0 }
 0xa64   : > { %v2708_v50 = vrot.slane %v2688_v13, 6  ;;  %v2709_v25 = vrot.slane %v2692_v9, 6  ;;  %v2689_v20 = vmax.f32 %v2681_v17, 0.0  ;;  %v2693_v21 = vmax.f32 %v2685_v19, 0.0 }
 0xa65   : > { %v2704_v22 = vsel %vm5109_vm13, %v2702_v4, %v2703_v49  ;;  %v2705_v24 = vrot.slane %v2687_v10, 6  ;;  %v2706_v26 = vrot.slane %v2691_v23, 6  ;;  %vm5115_vm13 = vmmov %vm5113_vm3 }
 0xa66   : > { %v4745_v27 = vadd.f32 %v2704_v22, %v4446_v7  ;;  %v2710_v28 = vsel %vm5110_vm0, %v2708_v50, %v2709_v25  ;;  %v2711_v30 = vrot.slane %v2689_v20, 6  ;;  %v2712_v31 = vrot.slane %v2693_v21, 6  ;;  %vm5116_vm0 = vmmov %vm5113_vm3 }
 0xa67   : > { %v4749_v12 = vadd.f32 %v2710_v28, %v4449_v14  ;;  %v2707_v36 = vsel %vm5111_vm6, %v2705_v24, %v2706_v26  ;;  %vm5120_vm6 = vcmp.eq.s32.totalorder %v4239_v53, 15 }
 0xa68   : > { %v4753_v37 = vadd.f32 %v2707_v36, %v4452_v38  ;;  %v2713_v39 = vsel %vm5112_vm7, %v2711_v30, %v2712_v31  ;;  %v3017_v34 = vrot.slane %v4745_v27, 4 }
 0xa69   : > { %v4758_v41 = vadd.f32 %v2713_v39, %v4456_v18  ;;  %2726 = vrot.lane.b32.xlu0 %v4749_v12, %s3917_s19  ;;  %v3019_v7 = vrot.slane %v4749_v12, 4 }
 0xa6a   : > { %2724 = vrot.lane.b32.xlu1 %v4753_v37, %s3917_s19  ;;  %v3018_v14 = vrot.slane %v4753_v37, 4  ;;  %3025 = vst [vmem:[#allocation2 + $0x40] sm:$0xf0] %v3017_v34 }
 0xa6b   : > { %v3020_v38 = vrot.slane %v4758_v41, 4  ;;  %3027 = vst [vmem:[#allocation2 + $0x10] sm:$0xf0] %v3019_v7  ;;  %v301_v7 = vld [vmem:[%s5071_s5 + $0x18] sm:$0x3] }
 0xa6c   : > { %3026 = vst [vmem:[#allocation2 + $0x20] sm:$0xf0] %v3018_v14 }
 0xa6d   : > { %2728 = vrot.lane.b32.xlu0 %v4758_v41, %s3917_s19  ;;  %3028 = vst [vmem:[#allocation2 + $0x38] sm:$0xf0] %v3020_v38 }
 0xa6e   : > { %2722 = vrot.lane.b32.xlu1 %v4745_v27, %s3917_s19 }
 0xa71   : > { %2742 = vrot.lane.b32.xlu0 %v4749_v12, %s3918_s20 }
 0xa72   : > { %2740 = vrot.lane.b32.xlu1 %v4753_v37, %s3918_s20 }
 0xa75   : > { %2744 = vrot.lane.b32.xlu0 %v4758_v41, %s3918_s20 }
 0xa76   : > { %2738 = vrot.lane.b32.xlu1 %v4745_v27, %s3918_s20 }
 0xa79   : > { %3033 = vrot.lane.b32.xlu0 %v4749_v12, %s3919_s24 }
 0xa7a   : > { %3031 = vrot.lane.b32.xlu1 %v4753_v37, %s3919_s24 }
 0xa7d   : > { %2995 = vrot.lane.b32.xlu0 %v4753_v37, %s3920_s25 }
 0xa7e   : > { %3029 = vrot.lane.b32.xlu1 %v4745_v27, %s3919_s24 }
 0xa81   : > { %3035 = vrot.lane.b32.xlu0 %v4758_v41, %s3919_s24 }
 0xa82   : > { %2993 = vrot.lane.b32.xlu1 %v4745_v27, %s3920_s25 }
 0xa85   : > { %2999 = vrot.lane.b32.xlu0 %v4758_v41, %s3920_s25 }
 0xa86   : > { %2997 = vrot.lane.b32.xlu1 %v4749_v12, %s3920_s25 }
 0xadb   : > { %v2727_v18 = vpop.permute.xlu0 %2726 }
 0xadc   : > { %v2725_v42 = vpop.permute.xlu1 %2724 }
 0xadd   : > { %v2731_v44 = vsel %vm5113_vm3, %v2725_v42, %v2727_v18  ;;  %vm5122_vm3 = vcmp.eq.s32.totalorder %v4126_v16, 0 }
 0xade   : > { %v4800_v45 = vsel %vm4173_vm10, %v4749_v12, %v2731_v44  ;;  %vm5117_vm10 = vcmp.lt.s32.totalorder %v4102_v61, 112 }
 0xadf   : > { %v2780_v47 = vrot.slane %v4800_v45, 4  ;;  %v2729_v3 = vpop.permute.xlu0 %2728  ;;  %vm5121_vm7 = vmmov %vm5117_vm10 }
 0xae0   : > { %v4805_v59 = vsel %vm5114_vm4, %v2727_v18, %v2729_v3  ;;  %v2723_v48 = vpop.permute.xlu1 %2722  ;;  %vm5123_vm4 = vcmp.eq.s32.totalorder %v4239_v53, 0 }
 0xae1   : > { %2788 = vst [vmem:[#allocation2 + $0x58] sm:$0xf0] %v2780_v47  ;;  %v2781_v52 = vrot.slane %v4805_v59, 4  ;;  %v4810_v55 = vsel %vm5115_vm13, %v2723_v48, %v2725_v42  ;;  %v2733_v29 = vsel %vm5116_vm0, %v2729_v3, %v2723_v48  ;;  %vm5124_vm13 = vcmp.eq.s32.totalorder %v4273_v62, 0  ;;  %vm5126_vm0 = vmmov %vm5120_vm6 }
 0xae2   : > { %v4817_v46 = vsel %vm4190_vm11, %v4745_v27, %v2733_v29  ;;  %v2779_v57 = vrot.slane %v4810_v55, 4  ;;  %2756 = vrot.lane.b32.xlu0 %v4810_v55, %s3920_s25  ;;  %2792 = vrot.lane.b32.xlu1 %v4810_v55, %s3919_s24  ;;  %vm5118_vm11 = vmmov %vm5117_vm10 }
 0xae3   : > { %2789 = vst [vmem:[#allocation2 + $0x18] sm:$0xf0] %v2781_v52  ;;  %v2778_v15 = vrot.slane %v4817_v46, 4  ;;  %v2743_v32 = vpop.permute.xlu0 %2742 }
 0xae4   : > { %2787 = vst [vmem:[#allocation2] sm:$0xf0] %v2779_v57  ;;  %v2741_v56 = vpop.permute.xlu1 %2740 }
 0xae5   : > { %2786 = vst [vmem:[#allocation2 + $0x30] sm:$0xf0] %v2778_v15  ;;  %v2747_v35 = vsel %vm5117_vm10, %v2741_v56, %v2743_v32 }
 0xae6   : > { %2794 = vrot.lane.b32.xlu0 %v4800_v45, %s3919_s24  ;;  %2758 = vrot.lane.b32.xlu1 %v4800_v45, %s3920_s25  ;;  %v4834_v33 = vsel %vm4209_vm12, %v4753_v37, %v2747_v35  ;;  %vm5119_vm12 = vmmov %vm5117_vm10 }
 0xae7   : > { %v2745_v58 = vpop.permute.xlu0 %2744  ;;  %vm5127_vm10 = vmmov %vm5124_vm13 }
 0xae8   : > { %v2739_v11 = vpop.permute.xlu1 %2738  ;;  %v4851_v13 = vsel %vm5118_vm11, %v2743_v32, %v2745_v58  ;;  %vm5128_vm11 = vcmask 1043456  }
 0xae9   : > { %v4868_v23 = vsel %vm5119_vm12, %v2739_v11, %v2741_v56  ;;  %v2749_v21 = vsel %vm5121_vm7, %v2745_v58, %v2739_v11  ;;  %v3258_v35 = vrot.slane %v4851_v13, 4  ;;  %vm5129_vm12 = vmmov %vm5122_vm3 }
 0xaea   : > { %2796 = vrot.lane.b32.xlu0 %v4805_v59, %s3919_s24  ;;  %3270 = vrot.lane.b32.xlu1 %v4834_v33, %s3919_s24  ;;  %v4892_v30 = vsel %vm4242_vm15, %v4758_v41, %v2749_v21  ;;  %vm5125_vm15 = vmmov %vm5123_vm4 }
 0xaeb   : > { %v3034_v63 = vpop.permute.xlu0 %3033 }
 0xaec   : > { %v3032_v1 = vpop.permute.xlu1 %3031 }
 0xaed   : > { %v3038_v8 = vsel %vm1216_vm8, %v3032_v1, %v3034_v63 }
 0xaee   : > { %v3042_v60 = vsel %vm295_vm14, %v4753_v37, %v3038_v8  ;;  %2760 = vrot.lane.b32.xlu0 %v4805_v59, %s3920_s25  ;;  %2790 = vrot.lane.b32.xlu1 %v4817_v46, %s3919_s24 }
 0xaef   : > { %3046 = vst [vmem:[#allocation2 + $0x70] sm:$0xf] %v3042_v60  ;;  %v2996_v43 = vpop.permute.xlu0 %2995 }
 0xaf0   : > { %v3030_v2 = vpop.permute.xlu1 %3029 }
 0xaf1   : > { %v3039_v9 = vsel %vm1216_vm8, %v3030_v2, %v3032_v1 }
 0xaf2   : > { %v3041_v17 = vsel %vm294_vm9, %v4745_v27, %v3039_v9  ;;  %3272 = vrot.lane.b32.xlu0 %v4851_v13, %s3919_s24  ;;  %2754 = vrot.lane.b32.xlu1 %v4817_v46, %s3920_s25 }
 0xaf3   : > { %3045 = vst [vmem:[#allocation2 + $0x60] sm:$0xf] %v3041_v17  ;;  %v3036_v19 = vpop.permute.xlu0 %3035 }
 0xaf4   : > { %v3037_v4 = vsel %vm1216_vm8, %v3034_v63, %v3036_v19  ;;  %v3040_v49 = vsel %vm1216_vm8, %v3036_v19, %v3030_v2  ;;  %v2994_v10 = vpop.permute.xlu1 %2993 }
 0xaf5   : > { %v3043_v50 = vsel %vm5120_vm6, %v4749_v12, %v3037_v4  ;;  %v3044_v25 = vsel %vm297_vm1, %v4758_v41, %v3040_v49  ;;  %v3003_v20 = vsel %vm1171_vm2, %v2994_v10, %v2996_v43  ;;  %vm5131_vm6 = vmmov %vm5128_vm11 }
 0xaf6   : > { %3047 = vst [vmem:[#allocation2 + $0x78] sm:$0xf] %v3043_v50  ;;  %3048 = vst [vmem:[#allocation2 + $0x28] sm:$0xf] %v3044_v25  ;;  %v3006_v22 = vsel %vm291_vm5, %v4753_v37, %v3003_v20  ;;  %3234 = vrot.lane.b32.xlu0 %v4834_v33, %s3920_s25  ;;  %3268 = vrot.lane.b32.xlu1 %v4868_v23, %s3919_s24  ;;  %v3259_v20 = vrot.slane %v4892_v30, 4 }
 0xaf7   : > { %3010 = vst [vmem:[#allocation2 + $0x20] sm:$0xf] %v3006_v22  ;;  %v3000_v24 = vpop.permute.xlu0 %2999  ;;  %vm5132_vm7 = vmmov %vm5131_vm6 }
 0xaf8   : > { %v3004_v26 = vsel %vm1171_vm2, %v3000_v24, %v2994_v10  ;;  %v2998_v28 = vpop.permute.xlu1 %2997 }
 0xaf9   : > { %v3005_v31 = vsel %vm5122_vm3, %v4745_v27, %v3004_v26  ;;  %v3001_v36 = vsel %vm1171_vm2, %v2998_v28, %v3000_v24  ;;  %v3002_v39 = vsel %vm1171_vm2, %v2996_v43, %v2998_v28  ;;  %v3257_v28 = vrot.slane %v4834_v33, 4  ;;  %vm5135_vm3 = vmmov %vm5131_vm6 }
 0xafa   : > { %3009 = vst [vmem:[#allocation2 + $0x40] sm:$0xf] %v3005_v31  ;;  %v3007_v34 = vsel %vm5123_vm4, %v4749_v12, %v3002_v39  ;;  %v3008_v54 = vsel %vm5124_vm13, %v4758_v41, %v3001_v36  ;;  %3274 = vrot.lane.b32.xlu0 %v4892_v30, %s3919_s24  ;;  %3232 = vrot.lane.b32.xlu1 %v4868_v23, %s3920_s25  ;;  %v3799_v39 = vld [vmem:[%s5069_s3 + $0x18] sm:$0xf]  ;;  %vm5138_vm4 = vmmov %vm5129_vm12  ;;  %v3055_v61 = vld [vmem:[#allocation2 + $0x60] sm:$0xf] }
 0xafb   : > { %3011 = vst [vmem:[#allocation2 + $0x10] sm:$0xf] %v3007_v34  ;;  %3012 = vst [vmem:[#allocation2 + $0x38] sm:$0xf] %v3008_v54  ;;  %v3256_v34 = vrot.slane %v4868_v23, 4 }
 0xafc   : > { %vm5139_vm13 = vmmov %vm5125_vm15 }
 0xafe   : > { %3238 = vrot.lane.b32.xlu0 %v4892_v30, %s3920_s25  ;;  %3236 = vrot.lane.b32.xlu1 %v4851_v13, %s3920_s25  ;;  %v3052_v16 = vld [vmem:[#allocation2 + $0x20] sm:$0xff] }
 0xb01   : > { %v3051_v53 = vld [vmem:[#allocation2 + $0x40] sm:$0xff] }
 0xb02   : > { %3494 = vperm.xlu1 %3877, %v301_v7  }
 0xb54   : > { %v2757_v14 = vpop.permute.xlu0 %2756  ;;  %v2793_v38 = vpop.permute.xlu1 %2792 }
 0xb58   : > { %v2795_v18 = vpop.permute.xlu0 %2794  ;;  %v2759_v42 = vpop.permute.xlu1 %2758 }
 0xb59   : > { %v2799_v44 = vsel %vm1216_vm8, %v2793_v38, %v2795_v18  ;;  %v2763_v47 = vsel %vm1171_vm2, %v2757_v14, %v2759_v42 }
 0xb5a   : > { %v2803_v3 = vsel %vm295_vm14, %v4810_v55, %v2799_v44  ;;  %v2768_v48 = vsel %vm5125_vm15, %v4800_v45, %v2763_v47  ;;  %vm5140_vm15 = vmmov %vm5127_vm10 }
 0xb5b   : > { %2807 = vst [vmem:[#allocation2 + $0x68] sm:$0xf] %v2803_v3  ;;  %2772 = vst [vmem:[#allocation2 + $0x58] sm:$0xf] %v2768_v48  ;;  %v3058_v3 = vld [vmem:[#allocation2 + $0x28] sm:$0xf] }
 0xb5c   : > { %v2797_v52 = vpop.permute.xlu0 %2796  ;;  %v3271_v29 = vpop.permute.xlu1 %3270 }
 0xb5d   : > { %v2798_v57 = vsel %vm1216_vm8, %v2795_v18, %v2797_v52 }
 0xb5e   : > { %v2804_v15 = vsel %vm5126_vm0, %v4800_v45, %v2798_v57 }
 0xb5f   : > { %2808 = vst [vmem:[#allocation2 + $0x8] sm:$0xf] %v2804_v15  ;;  %v3056_v15 = vld [vmem:[#allocation2 + $0x70] sm:$0xf] }
 0xb60   : > { %v2761_v32 = vpop.permute.xlu0 %2760  ;;  %v2791_v56 = vpop.permute.xlu1 %2790 }
 0xb61   : > { %v2762_v58 = vsel %vm1171_vm2, %v2759_v42, %v2761_v32  ;;  %v2800_v11 = vsel %vm1216_vm8, %v2791_v56, %v2793_v38  ;;  %v2801_v63 = vsel %vm1216_vm8, %v2797_v52, %v2791_v56  ;;  %v3057_v52 = vld [vmem:[#allocation2 + $0x78] sm:$0xf] }
 0xb62   : > { %v2769_v1 = vsel %vm5127_vm10, %v4805_v59, %v2762_v58  ;;  %v2802_v45 = vsel %vm294_vm9, %v4817_v46, %v2800_v11  ;;  %v2805_v8 = vsel %vm297_vm1, %v4805_v59, %v2801_v63  ;;  %v2817_v60 = vld [vmem:[#allocation2 + $0x68] sm:$0xf]  ;;  %v2814_v43 = vld [vmem:[#allocation2 + $0x58] sm:$0xff]  ;;  %v3053_v11 = vld [vmem:[#allocation2 + $0x10] sm:$0xff] }
 0xb63   : > { %2773 = vst [vmem:[#allocation2 + $0x18] sm:$0xf] %v2769_v1  ;;  %2806 = vst [vmem:[#allocation2 + $0x50] sm:$0xf] %v2802_v45  ;;  %3800 = vmatprep.subr.msk.mxu0 %vm5128_vm11, %v2817_v60  ;;  %v3806_v63 = vld [vmem:[%s5069_s3 + $0x1c] sm:$0xf] }
 0xb64   : > { %2809 = vst [vmem:[#allocation2 + $0x48] sm:$0xf] %v2805_v8  ;;  %3266 = vst [vmem:[#allocation2 + $0x58] sm:$0xf0] %v3258_v35  ;;  %v3273_v2 = vpop.permute.xlu0 %3272  ;;  %v2755_v9 = vpop.permute.xlu1 %2754  ;;  %v3813_v45 = vld [vmem:[%s5069_s3 + $0x20] sm:$0xf] }
 0xb65   : > { %v3277_v17 = vsel %vm1216_vm8, %v3271_v29, %v3273_v2  ;;  %v2764_v19 = vsel %vm1171_vm2, %v2755_v9, %v2757_v14  ;;  %v2765_v4 = vsel %vm1171_vm2, %v2761_v32, %v2755_v9  ;;  %v3054_v32 = vld [vmem:[#allocation2 + $0x38] sm:$0xff] }
 0xb66   : > { %v3281_v59 = vsel %vm295_vm14, %v4834_v33, %v3277_v17  ;;  %v2766_v49 = vsel %vm5129_vm12, %v4817_v46, %v2765_v4  ;;  %v2767_v10 = vsel %vm291_vm5, %v4810_v55, %v2764_v19  ;;  %vm5130_vm14 = vmmov %vm5128_vm11  ;;  %v2818_v55 = vld [vmem:[#allocation2 + $0x8] sm:$0xf] }
 0xb67   : > { %3285 = vst [vmem:[#allocation2 + $0x68] sm:$0xf] %v3281_v59  ;;  %2770 = vst [vmem:[#allocation2 + $0x30] sm:$0xf] %v2766_v49 }
 0xb68   : > { %2771 = vst [vmem:[#allocation2] sm:$0xf] %v2767_v10  ;;  %v3235_v50 = vpop.permute.xlu0 %3234  ;;  %v3269_v25 = vpop.permute.xlu1 %3268 }
 0xb69   : > { %v3278_v21 = vsel %vm1216_vm8, %v3269_v25, %v3271_v29 }
 0xb6a   : > { %v3280_v22 = vsel %vm294_vm9, %v4868_v23, %v3278_v21  ;;  %v2816_v24 = vld [vmem:[#allocation2 + $0x50] sm:$0xf]  ;;  %v2815_v26 = vld [vmem:[#allocation2 + $0x18] sm:$0xff]  ;;  %vm5133_vm9 = vmmov %vm5126_vm0 }
 0xb6b   : > { %v2819_v46 = vld [vmem:[#allocation2 + $0x48] sm:$0xf]  ;;  %3801 = vmatpush1.msk.msra.mxu0 %vm5130_vm14, %v2816_v24  ;;  %3284 = vst [vmem:[#allocation2 + $0x50] sm:$0xf] %v3280_v22  ;;  %3267 = vst [vmem:[#allocation2 + $0x18] sm:$0xf0] %v3259_v20 }
 0xb6c   : > { %3803 = vmatprep.subr.msk.mxu1 %vm5131_vm6, %v2819_v46  ;;  %v3275_v31 = vpop.permute.xlu0 %3274  ;;  %v3233_v36 = vpop.permute.xlu1 %3232 }
 0xb6d   : > { %3804 = vmatpush1.msk.msra.mxu1 %vm5132_vm7, %v2818_v55  ;;  %v3276_v54 = vsel %vm1216_vm8, %v3273_v2, %v3275_v31  ;;  %v3279_v7 = vsel %vm1216_vm8, %v3275_v31, %v3269_v25  ;;  %v3242_v14 = vsel %vm1171_vm2, %v3233_v36, %v3235_v50  ;;  %vm5134_vm8 = vcmask 97280  }
 0xb6e   : > { %2936 = vmatprep.subr.mxu1 %v2815_v26  ;;  %v3282_v38 = vsel %vm5133_vm9, %v4851_v13, %v3276_v54  ;;  %v3283_v18 = vsel %vm297_vm1, %v4892_v30, %v3279_v7  ;;  %v3245_v42 = vsel %vm291_vm5, %v4834_v33, %v3242_v14  ;;  %v2812_v47 = vld [vmem:[#allocation2 + $0x30] sm:$0xff]  ;;  %vm5136_vm1 = vmmov %vm5135_vm3  ;;  %v3295_v62 = vld [vmem:[#allocation2 + $0x68] sm:$0xf] }
 0xb6f   : > { %2937 = vmatpush1.msra.mxu1 %v2814_v43  ;;  %v2813_v44 = vld [vmem:[#allocation2] sm:$0xff]  ;;  %3287 = vst [vmem:[#allocation2 + $0x48] sm:$0xf] %v3283_v18  ;;  %3286 = vst [vmem:[#allocation2 + $0x8] sm:$0xf] %v3282_v38 }
 0xb70   : > { %2865 = vmatprep.subr.mxu0 %v2813_v44  ;;  %3249 = vst [vmem:[#allocation2] sm:$0xf] %v3245_v42  ;;  %3265 = vst [vmem:[#allocation2] sm:$0xf0] %v3257_v28  ;;  %3805 = vmatmul.mubr.msk.f32.vlgmr.msra.gmra.mxu1 %vm5134_vm8, %v3799_v39  ;;  %v3239_v48 = vpop.permute.xlu0 %3238  ;;  %v3237_v29 = vpop.permute.xlu1 %3236 }
 0xb71   : > { %3264 = vst [vmem:[#allocation2 + $0x30] sm:$0xf0] %v3256_v34  ;;  %3810 = vmatprep.subr.msk.mxu1 %vm5135_vm3, %v3058_v3  ;;  %2866 = vmatpush1.msra.mxu0 %v2812_v47  ;;  %v3243_v51 = vsel %vm1171_vm2, %v3239_v48, %v3233_v36  ;;  %v3240_v33 = vsel %vm1171_vm2, %v3237_v29, %v3239_v48  ;;  %vm5137_vm5 = vmmov %vm5134_vm8 }
 0xb72   : > { %3811 = vmatpush1.msk.msra.mxu1 %vm5136_vm1, %v3057_v52  ;;  %v3241_v57 = vsel %vm1171_vm2, %v3235_v50, %v3237_v29  ;;  %3802 = vmatmul.mubr.msk.f32.vlgmr.msra.gmra.mxu0 %vm5137_vm5, %v3799_v39  ;;  %v3244_v56 = vsel %vm5138_vm4, %v4868_v23, %v3243_v51  ;;  %v3247_v58 = vsel %vm5140_vm15, %v4892_v30, %v3240_v33  ;;  %vm5141_vm0 = vmmov %vm5136_vm1  ;;  %v3294_v1 = vld [vmem:[#allocation2 + $0x50] sm:$0xf]  ;;  %vm5154_vm4 = vcmask 31744  }
 0xb73   : > { %v3246_v35 = vsel %vm5139_vm13, %v4851_v13, %v3241_v57  ;;  %3807 = vmatprep.subr.msk.mxu0 %vm5141_vm0, %v3056_v15  ;;  %3175 = vmatprep.subr.mxu1 %v3054_v32  ;;  %3248 = vst [vmem:[#allocation2 + $0x30] sm:$0xf] %v3244_v56  ;;  %3251 = vst [vmem:[#allocation2 + $0x18] sm:$0xf] %v3247_v58 }
 0xb74   : > { %3250 = vst [vmem:[#allocation2 + $0x58] sm:$0xf] %v3246_v35  ;;  %vm5142_vm2 = vmmov %vm5141_vm0  ;;  %3176 = vmatpush1.msra.mxu1 %v3053_v11  ;;  %3209 = vmatprep.mubr.f32.mxu1 %v3914_v0 }
 0xb75   : > { %3808 = vmatpush1.msk.msra.mxu0 %vm5142_vm2, %v3055_v61  ;;  %vm5143_vm10 = vmmov %vm5137_vm5  ;;  %3138 = vmatprep.mubr.f32.mxu0 %v3914_v0 }
 0xb76   : > { %3104 = vmatprep.subr.mxu0 %v3052_v16  ;;  %3812 = vmatmul.mubr.msk.f32.vlgmr.msra.gmra.mxu1 %vm5143_vm10, %v3806_v63  ;;  %vm5144_vm11 = vmmov %vm5141_vm0  ;;  %v3297_v23 = vld [vmem:[#allocation2 + $0x48] sm:$0xf] }
 0xb77   : > { %3105 = vmatpush1.msra.mxu0 %v3051_v53  ;;  %v3291_v13 = vld [vmem:[#allocation2] sm:$0xff]  ;;  %v3296_v30 = vld [vmem:[#allocation2 + $0x8] sm:$0xf]  ;;  %vm5145_vm12 = vmmov %vm5137_vm5  ;;  %3448 = vmatprep.mubr.f32.mxu1 %v3914_v0 }
 0xb78   : > { %3814 = vmatprep.subr.msk.mxu0 %vm5144_vm11, %v3295_v62  ;;  %3809 = vmatmul.mubr.msk.f32.vlgmr.msra.gmra.mxu0 %vm5145_vm12, %v3806_v63  ;;  %vm5146_vm14 = vmmov %vm5141_vm0  ;;  %v3491_v53 = vld [vmem:[%s5070_s4] sm:$0xf] }
 0xb79   : > { %3817 = vmatprep.subr.msk.mxu1 %vm5146_vm14, %v3297_v23  ;;  %vm5147_vm6 = vmmov %vm5141_vm0  ;;  %3377 = vmatprep.mubr.f32.mxu0 %v3914_v0 }
 0xb7a   : > { %3815 = vmatpush1.msk.msra.mxu0 %vm5147_vm6, %v3294_v1  ;;  %vm5148_vm7 = vmmov %vm5141_vm0  ;;  %v3290_v8 = vld [vmem:[#allocation2 + $0x30] sm:$0xff]  ;;  %v3293_v60 = vld [vmem:[#allocation2 + $0x18] sm:$0xff] }
 0xb7b   : > { %3818 = vmatpush1.msk.msra.mxu1 %vm5148_vm7, %v3296_v30  ;;  %3343 = vmatprep.subr.mxu0 %v3291_v13  ;;  %v3292_v43 = vld [vmem:[#allocation2 + $0x58] sm:$0xff]  ;;  %vm5149_vm9 = vmmov %vm5137_vm5 }
 0xb7c   : > { %3344 = vmatpush1.msra.mxu0 %v3290_v8  ;;  %3414 = vmatprep.subr.mxu1 %v3293_v60  ;;  %vm5150_vm8 = vmmov %vm5137_vm5 }
 0xb7d   : > { %3816 = vmatmul.mubr.msk.f32.vlgmr.msra.gmra.mxu0 %vm5149_vm9, %v3813_v45  ;;  %3415 = vmatpush1.msra.mxu1 %v3292_v43  ;;  %vm5151_vm3 = vmmov %vm5141_vm0 }
 0xb7e   : > { %3819 = vmatmul.mubr.msk.f32.vlgmr.msra.gmra.mxu1 %vm5150_vm8, %v3813_v45  ;;  %3579 = vmatprep.mubr.f32.mxu0 %v3914_v0  ;;  %vm5152_vm1 = vmmov %vm5141_vm0 }
 0xb7f   : > { %3650 = vmatprep.mubr.f32.mxu1 %v3914_v0  ;;  %vm5153_vm5 = vmmov %vm5141_vm0 }
 0xb80   : > { %vm5155_vm13 = vmmov %vm5141_vm0  ;;  %vm5157_vm0 = vcmask 1041408  }
 0xb81   : > { %vm5156_vm15 = vmmov %vm5154_vm4 }
 0xc30   : > { %v2972_v2 = vpop.f32.mrf.mxu1 }
 0xc31   : > { %v2983_v10 = vrot.slane %v2972_v2, 6  ;;  %v3904_v2 = vld [vmem:[%s3977_s29] sm:$0xff] }
 0xc32   : > { %v2901_v9 = vpop.f32.mrf.mxu0  ;;  %v2974_v17 = vpop.f32.mrf.mxu1 }
 0xc33   : > { %v2981_v59 = vrot.slane %v2901_v9, 6  ;;  %v2984_v22 = vrot.slane %v2974_v17, 6  ;;  %v2991_v55 = vadd.f32 %v2983_v10, %v4733_v40 }
 0xc34   : > { %v2903_v19 = vpop.f32.mrf.mxu0 }
 0xc35   : > { %v2982_v50 = vrot.slane %v2903_v19, 6  ;;  %v2989_v46 = vadd.f32 %v2981_v59, %v4733_v40  ;;  %v2992_v54 = vadd.f32 %v2984_v22, %v4733_v40  ;;  %v3905_v19 = vld [vmem:[%s3977_s29 + $0x8] sm:$0xff] }
 0xc36   : > { %v3211_v4 = vpop.f32.mrf.mxu1 }
 0xc37   : > { %v3222_v24 = vrot.slane %v3211_v4, 6  ;;  %v2990_v31 = vadd.f32 %v2982_v50, %v4733_v40 }
 0xc38   : > { %v3140_v49 = vpop.f32.mrf.mxu0  ;;  %v3213_v20 = vpop.f32.mrf.mxu1 }
 0xc39   : > { %v3220_v25 = vrot.slane %v3140_v49, 6  ;;  %v3223_v0 = vrot.slane %v3213_v20, 6  ;;  %v3230_v7 = vadd.f32 %v3222_v24, %v2991_v55 }
 0xc3a   : > { %v3142_v21 = vpop.f32.mrf.mxu0 }
 0xc3b   : > { %v3221_v26 = vrot.slane %v3142_v21, 6  ;;  %v3228_v36 = vadd.f32 %v3220_v25, %v2989_v46  ;;  %v3231_v3 = vadd.f32 %v3223_v0, %v2992_v54 }
 0xc3d   : > { %v3379_v28 = vpop.f32.mrf.mxu0  ;;  %v3229_v18 = vadd.f32 %v3221_v26, %v2990_v31 }
 0xc3e   : > { %v3459_v39 = vrot.slane %v3379_v28, 6  ;;  %v3450_v34 = vpop.f32.mrf.mxu1 }
 0xc3f   : > { %v3461_v14 = vrot.slane %v3450_v34, 6  ;;  %v3381_v38 = vpop.f32.mrf.mxu0 }
 0xc40   : > { %v3467_v42 = vadd.f32 %v3459_v39, %v3228_v36  ;;  %v3460_v44 = vrot.slane %v3381_v38, 6  ;;  %v3452_v47 = vpop.f32.mrf.mxu1 }
 0xc41   : > { %v3469_v48 = vadd.f32 %v3461_v14, %v3230_v7  ;;  %v3462_v52 = vrot.slane %v3452_v47, 6 }
 0xc42   : > { %v3471_v29 = vmax.f32 %v3467_v42, 0.0  ;;  %v3468_v51 = vadd.f32 %v3460_v44, %v3229_v18 }
 0xc43   : > { %v3473_v33 = vmax.f32 %v3469_v48, 0.0  ;;  %v3470_v57 = vadd.f32 %v3462_v52, %v3231_v3 }
 0xc44   : > { %v3472_v15 = vmax.f32 %v3468_v51, 0.0  ;;  %v3479_v32 = vrot.slane %v3471_v29, 2 }
 0xc45   : > { %v3474_v56 = vmax.f32 %v3470_v57, 0.0  ;;  %v3481_v35 = vrot.slane %v3473_v33, 2 }
 0xc46   : > { %v3480_v58 = vrot.slane %v3472_v15, 2  ;;  %v3487_v63 = vadd.f32 %v3479_v32, %v4745_v27  ;;  %v3495_v27 = vpop.permute.xlu1 %3494 }
 0xc47   : > { %v3482_v61 = vrot.slane %v3474_v56, 2  ;;  %v3489_v62 = vadd.f32 %v3481_v35, %v4749_v12 }
 0xc48   : > { %v3488_v11 = vadd.f32 %v3480_v58, %v4753_v37  ;;  %v3497_v37 = vrot.slane %v3495_v27, 6 }
 0xc49   : > { %v3490_v16 = vadd.f32 %v3482_v61, %v4758_v41  ;;  %v3496_v41 = vrot.slane %v4733_v40, 6 }
 0xc4a   : > { %3820 = vmatprep.subr.msk.mxu0 %vm5151_vm3, %v3488_v11 }
 0xc4b   : > { %3821 = vmatpush1.msk.msra.mxu0 %vm5152_vm1, %v3487_v63  ;;  %3823 = vmatprep.subr.msk.mxu1 %vm5153_vm5, %v3490_v16  ;;  %v3498_v12 = vsel %vm5157_vm0, %v3496_v41, %v3497_v37 }
 0xc4c   : > { %3822 = vmatmul.mubr.msk.f32.vlgmr.msra.gmra.mxu0 %vm5154_vm4, %v3491_v53  ;;  %3824 = vmatpush1.msk.msra.mxu1 %vm5155_vm13, %v3489_v62 }
 0xc4d   : > { %3825 = vmatmul.mubr.msk.f32.vlgmr.msra.gmra.mxu1 %vm5156_vm15, %v3491_v53 }
 0xd0c   : > { %v3581_v13 = vpop.f32.mrf.mxu0 }
 0xd0d   : > { %v3582_v23 = vadd.f32 %v3581_v13, %v3498_v12  ;;  %v3652_v30 = vpop.f32.mrf.mxu1 }
 0xd0e   : > { %v3653_v1 = vadd.f32 %v3652_v30, %v3498_v12  ;;  %v3583_v45 = vpop.f32.mrf.mxu0 }
 0xd0f   : > { %v3584_v8 = vadd.f32 %v3583_v45, %v3498_v12  ;;  %v3654_v60 = vpop.f32.mrf.mxu1  ;;  %v3657_v9 = vadd.f32 %v3904_v2, %v3582_v23 }
 0xd10   : > { %v3655_v43 = vadd.f32 %v3654_v60, %v3498_v12  ;;  %v3659_v4 = vadd.f32 %v3905_v19, %v3653_v1 }
 0xd11   : > { %v3658_v17 = vadd.f32 %v3584_v8, %v3987_v5 }
 0xd12   : > { %v3660_v40 = vadd.f32 %v3655_v43, %v3991_v6 }
 0xd13   : > { %v3663_v59 = vcombine.low %v3657_v9, %v3658_v17 }
 0xd14   : > { %v3668_v49 = vcombine.low %v3659_v4, %v3660_v40 }
 0xd15   : > { %3665 = vst [vmem:[%s258_s10] sm:$0xff] %v3663_v59 }
 0xd16   : > { %3826 = vst [vmem:[%s258_s10 + $0x8] sm:$0xff] %v3668_v49 }
 0xd17 PF: > { %s16_s21 = sadd.s32 1, %s3912_s21  }
 0xd18   : > { %p13_p4 = scmp.ge.s32.totalorder %s16_s21, 4  }
 0xd1a   :  { %15 = sbr.rel (!%p13_p4) target bundleno = 1 (0x1), region = 85 }

</bundles_post_ra>
